<compile_context>
chip_gen: v7x
topology: tpu7x:2x2x1
jax: 0.10.0
libtpu: 0.0.40
codegen_flags: <defaults>
</compile_context>

<pallas_src>
import functools
import math

import jax
import jax.numpy as jnp
from jax.experimental import pallas as pl
from jax.experimental.pallas import tpu as pltpu


_PARAM_ORDER = [
    "sa_qkv_w", "sa_qkv_b", "sa_out_w", "sa_out_b", "sa_ln_g", "sa_ln_b",
    "ca_q_w", "ca_q_b", "ca_kv_w", "ca_kv_b", "ca_out_w", "ca_out_b",
    "ca_ln_g", "ca_ln_b",
    "fc1_w", "fc1_b", "fc2_w", "fc2_b", "fin_ln_g", "fin_ln_b",
]


# ----------------------------------------------------------------------------
# Fused decoder-layer kernel (everything resident in VMEM / vregs)
# ----------------------------------------------------------------------------

def _decoder_layer_kernel(*refs, T, S, B, H, E, eps, matmul_dtype, has_mask):
    n_data = 3 if has_mask else 2
    x_ref, enc_ref = refs[0], refs[1]
    mask_ref = refs[2] if has_mask else None
    (sa_qkv_w_ref, sa_qkv_b_ref, sa_out_w_ref, sa_out_b_ref, sa_ln_g_ref, sa_ln_b_ref,
     ca_q_w_ref, ca_q_b_ref, ca_kv_w_ref, ca_kv_b_ref, ca_out_w_ref, ca_out_b_ref,
     ca_ln_g_ref, ca_ln_b_ref,
     fc1_w_ref, fc1_b_ref, fc2_w_ref, fc2_b_ref, fin_ln_g_ref, fin_ln_b_ref,
     ) = refs[n_data:n_data + 20]
    o_ref = refs[n_data + 20]

    Dh = E // H

    def mm(a, w_ref, b_ref):
        # Low-precision MXU operands (weights already pre-cast), f32 accumulation.
        w = w_ref[...]
        y = jnp.dot(a.astype(w.dtype), w, preferred_element_type=jnp.float32)
        return y + b_ref[...]

    def layer_norm(y, g_ref, b_ref):
        mu = jnp.mean(y, axis=-1, keepdims=True)
        yc = y - mu
        var = jnp.mean(yc * yc, axis=-1, keepdims=True)
        return yc * jax.lax.rsqrt(var + eps) * g_ref[...] + b_ref[...]

    def attention(q2d, k2d, v2d, Tq, Tk, add_mask):
        # q2d: (B*Tq, E), k2d/v2d: (B*Tk, E), batch-major rows (b*Tn + t).
        # Two batched MXU dots over a (B*H, T, Dh) head stack; lane-dense reassembly.
        q2d = q2d.astype(matmul_dtype)
        k2d = k2d.astype(matmul_dtype)
        v2d = v2d.astype(matmul_dtype)

        def heads(a2d, Tn):
            return jnp.stack(
                [a2d[b * Tn:(b + 1) * Tn, h * Dh:(h + 1) * Dh]
                 for b in range(B) for h in range(H)], axis=0)            # (B*H, Tn, Dh)

        qs, ks, vs = heads(q2d, Tq), heads(k2d, Tk), heads(v2d, Tk)
        s = jnp.einsum("bqd,bkd->bqk", qs, ks,
                       preferred_element_type=jnp.float32)                # (B*H, Tq, Tk) f32
        if add_mask is not None:
            s = s + add_mask[None, :, :]
        m = jnp.max(s, axis=-1, keepdims=True)
        p = jnp.exp(s - m)
        p = p * pl.reciprocal(jnp.sum(p, axis=-1, keepdims=True), approx=True)
        ctx = jnp.einsum("bqk,bkd->bqd", p.astype(matmul_dtype), vs,
                         preferred_element_type=jnp.float32)              # (B*H, Tq, Dh)
        # lane-dense reassembly into (B*Tq, E): heads concat on lanes, batches on rows
        rows = [jnp.concatenate([ctx[b * H + h] for h in range(H)], axis=-1)
                for b in range(B)]
        return jnp.concatenate(rows, axis=0)

    # in-VMEM relayout: (T, B*E) / (S, B*E) -> batch-major (B*T, E) / (B*S, E)
    # (only 128-lane-aligned slices + row concats; no masked partial stores anywhere)
    x_all = x_ref[...].astype(jnp.float32)                                # (T, B*E)
    enc_all = enc_ref[...].astype(jnp.float32)                            # (S, B*E)
    x = jnp.concatenate([x_all[:, b * E:(b + 1) * E] for b in range(B)], axis=0)
    enc = jnp.concatenate([enc_all[:, b * E:(b + 1) * E] for b in range(B)], axis=0)
    mask = mask_ref[...].astype(jnp.float32) if has_mask else None        # (T, T) additive

    # ---- self attention block (post-norm: LN(residual + attn)) ----
    residual = x
    qkv = mm(x, sa_qkv_w_ref, sa_qkv_b_ref)                               # (B*T, 3E)
    ctx = attention(qkv[:, :E], qkv[:, E:2 * E], qkv[:, 2 * E:], T, T, mask)
    x = layer_norm(residual + mm(ctx, sa_out_w_ref, sa_out_b_ref),
                   sa_ln_g_ref, sa_ln_b_ref)

    # ---- encoder (cross) attention block ----
    residual = x
    q = mm(x, ca_q_w_ref, ca_q_b_ref)                                     # (B*T, E)
    kv = mm(enc, ca_kv_w_ref, ca_kv_b_ref)                                # (B*S, 2E)
    ctx = attention(q, kv[:, :E], kv[:, E:], T, S, None)
    x = layer_norm(residual + mm(ctx, ca_out_w_ref, ca_out_b_ref),
                   ca_ln_g_ref, ca_ln_b_ref)

    # ---- feed-forward block ----
    residual = x
    h1 = jnp.maximum(mm(x, fc1_w_ref, fc1_b_ref), 0.0)                    # ReLU
    x = layer_norm(residual + mm(h1, fc2_w_ref, fc2_b_ref),
                   fin_ln_g_ref, fin_ln_b_ref)

    # single lane-dense (T, B*E) store in original (T, B, E) row order
    out_tb = jnp.concatenate([x[b * T:(b + 1) * T, :] for b in range(B)], axis=-1)
    o_ref[...] = out_tb.astype(o_ref.dtype)


# ----------------------------------------------------------------------------
# TransformerDecoderLayer forward (single pallas_call)
# ----------------------------------------------------------------------------

def transformer_decoder_layer(prepared_params, mems, x, encoder_out, local_attn_mask,
                              num_heads, eps=1e-5):
    """x: (T, B, E), encoder_out: (S, B, E). Returns (x, attn_dict, None, mems)."""
    T, B, E = x.shape
    S = encoder_out.shape[0]
    assert E % num_heads == 0
    has_mask = local_attn_mask is not None
    matmul_dtype = prepared_params["sa_qkv_w"].dtype   # bf16 by default (prepare_params)

    # free reshapes (identical memory layout) -- no wrapper transposes / copies
    inputs = [x.reshape(T, B * E), encoder_out.reshape(S, B * E)]
    if has_mask:
        inputs.append(local_attn_mask.astype(jnp.float32))
    inputs += [prepared_params[k] for k in _PARAM_ORDER]

    def full_spec(a):
        nd = a.ndim
        return pl.BlockSpec(a.shape, lambda i, _nd=nd: (0,) * _nd)

    kernel = functools.partial(
        _decoder_layer_kernel, T=T, S=S, B=B, H=num_heads, E=E,
        eps=eps, matmul_dtype=matmul_dtype, has_mask=has_mask)

    in_bytes = sum(int(a.size) * a.dtype.itemsize for a in inputs)
    out_bytes = T * B * E * x.dtype.itemsize
    vmem_limit = int(min(max(2 * (in_bytes + out_bytes) + (8 << 20), 16 << 20), 64 << 20))

    out2d = pl.pallas_call(
        kernel,
        out_shape=jax.ShapeDtypeStruct((T, B * E), x.dtype),
        grid=(1,),
        in_specs=[full_spec(a) for a in inputs],
        out_specs=pl.BlockSpec((T, B * E), lambda i: (0, 0)),
        compiler_params=pltpu.CompilerParams(
            dimension_semantics=("arbitrary",),
            vmem_limit_bytes=vmem_limit),
    )(*inputs)

    x_out = out2d.reshape(T, B, E)   # free reshape
    attn = {}                        # need_attn_entropy=False -> no attention statistics
    return x_out, attn, None, mems


# ----------------------------------------------------------------------------
# Parameters: deterministic init + one-time prep (scale folding + bf16 cast)
# ----------------------------------------------------------------------------

def init_params(key, E, F):
    keys = jax.random.split(key, 10)
    ki = iter(keys)

    def xavier(shape):
        fan_in, fan_out = shape
        bound = math.sqrt(6.0 / (fan_in + fan_out))
        return jax.random.uniform(next(ki), shape, jnp.float32, -bound, bound)

    return {
        # self-attention: fused QKV weight (E, 3E)
        "sa_qkv_w": jnp.concatenate([xavier((E, E)), xavier((E, E)), xavier((E, E))], axis=1),
        "sa_qkv_b": jnp.zeros((1, 3 * E), jnp.float32),
        "sa_out_w": xavier((E, E)), "sa_out_b": jnp.zeros((1, E), jnp.float32),
        "sa_ln_g": jnp.ones((1, E), jnp.float32), "sa_ln_b": jnp.zeros((1, E), jnp.float32),
        # cross-attention: Q separate, fused KV weight (E, 2E)
        "ca_q_w": xavier((E, E)), "ca_q_b": jnp.zeros((1, E), jnp.float32),
        "ca_kv_w": jnp.concatenate([xavier((E, E)), xavier((E, E))], axis=1),
        "ca_kv_b": jnp.zeros((1, 2 * E), jnp.float32),
        "ca_out_w": xavier((E, E)), "ca_out_b": jnp.zeros((1, E), jnp.float32),
        "ca_ln_g": jnp.ones((1, E), jnp.float32), "ca_ln_b": jnp.zeros((1, E), jnp.float32),
        # feed-forward
        "fc1_w": xavier((E, F)), "fc1_b": jnp.zeros((1, F), jnp.float32),
        "fc2_w": xavier((F, E)), "fc2_b": jnp.zeros((1, E), jnp.float32),
        "fin_ln_g": jnp.ones((1, E), jnp.float32), "fin_ln_b": jnp.zeros((1, E), jnp.float32),
    }


def prepare_params(params, num_heads, matmul_dtype=jnp.bfloat16):
    """One-time prep: fold 1/sqrt(Dh) into the Q projections and pre-cast weights (HBM side)."""
    E = params["sa_out_w"].shape[0]
    scale = (E // num_heads) ** -0.5
    p = dict(params)
    p["sa_qkv_w"] = params["sa_qkv_w"].at[:, :E].multiply(scale)
    p["sa_qkv_b"] = params["sa_qkv_b"].at[:, :E].multiply(scale)
    p["ca_q_w"] = params["ca_q_w"] * scale
    p["ca_q_b"] = params["ca_q_b"] * scale
    for k in ("sa_qkv_w", "sa_out_w", "ca_q_w", "ca_kv_w", "ca_out_w", "fc1_w", "fc2_w"):
        p[k] = p[k].astype(matmul_dtype)          # biases / LayerNorm params stay f32
    return p


# ----------------------------------------------------------------------------
# Pure-JAX reference (same prepared params / casting discipline) for a sanity check
# ----------------------------------------------------------------------------

def reference_forward(prep, x, encoder_out, local_attn_mask, num_heads, eps=1e-5):
    T, B, E = x.shape
    S = encoder_out.shape[0]
    H = num_heads
    Dh = E // H
    md = prep["sa_qkv_w"].dtype

    def mm(a, w, b):
        return jnp.dot(a.astype(md), w, preferred_element_type=jnp.float32) + b

    def ln(y, g, b):
        mu = jnp.mean(y, -1, keepdims=True)
        yc = y - mu
        return yc * jax.lax.rsqrt(jnp.mean(yc * yc, -1, keepdims=True) + eps) * g + b

    def attention(q2d, k2d, v2d, Tq, Tk, mask):
        q = q2d.reshape(B, Tq, H, Dh).astype(md)
        k = k2d.reshape(B, Tk, H, Dh).astype(md)
        v = v2d.reshape(B, Tk, H, Dh).astype(md)
        s = jnp.einsum("bqhd,bkhd->bhqk", q, k, preferred_element_type=jnp.float32)
        if mask is not None:
            s = s + mask[None, None, :, :]
        p = jax.nn.softmax(s, axis=-1)
        ctx = jnp.einsum("bhqk,bkhd->bqhd", p.astype(md), v, preferred_element_type=jnp.float32)
        return ctx.reshape(B * Tq, E)

    xb = jnp.transpose(x, (1, 0, 2)).reshape(B * T, E).astype(jnp.float32)
    eb = jnp.transpose(encoder_out, (1, 0, 2)).reshape(B * S, E).astype(jnp.float32)
    mask = None if local_attn_mask is None else local_attn_mask.astype(jnp.float32)

    residual = xb
    qkv = mm(xb, prep["sa_qkv_w"], prep["sa_qkv_b"])
    ctx = attention(qkv[:, :E], qkv[:, E:2 * E], qkv[:, 2 * E:], T, T, mask)
    xb = ln(residual + mm(ctx, prep["sa_out_w"], prep["sa_out_b"]), prep["sa_ln_g"], prep["sa_ln_b"])

    residual = xb
    q = mm(xb, prep["ca_q_w"], prep["ca_q_b"])
    kv = mm(eb, prep["ca_kv_w"], prep["ca_kv_b"])
    ctx = attention(q, kv[:, :E], kv[:, E:], T, S, None)
    xb = ln(residual + mm(ctx, prep["ca_out_w"], prep["ca_out_b"]), prep["ca_ln_g"], prep["ca_ln_b"])

    residual = xb
    h1 = jnp.maximum(mm(xb, prep["fc1_w"], prep["fc1_b"]), 0.0)
    xb = ln(residual + mm(h1, prep["fc2_w"], prep["fc2_b"]), prep["fin_ln_g"], prep["fin_ln_b"])

    return jnp.transpose(xb.reshape(B, T, E), (1, 0, 2)).astype(x.dtype)


# ----------------------------------------------------------------------------
# Main
# ----------------------------------------------------------------------------

if __name__ == "__main__":
    T, B, E, H, F, S = 8, 2, 128, 4, 256, 16   # tgt_len, batch, embed, heads, ffn, src_len

    root = jax.random.PRNGKey(0)
    k_param, k_x, k_enc = jax.random.split(root, 3)

    params = init_params(k_param, E, F)
    prep = prepare_params(params, H, matmul_dtype=jnp.bfloat16)

    x = jax.random.normal(k_x, (T, B, E), jnp.float32)              # (seq_len, batch, embed)
    encoder_out = jax.random.normal(k_enc, (S, B, E), jnp.float32)  # (src_len, batch, embed)
    mems = jnp.zeros((1, 1, E), jnp.float32)                        # passed through untouched

    # causal additive mask for decoder self-attention
    row = jnp.arange(T)
    local_attn_mask = jnp.where(row[None, :] > row[:, None], -1e9, 0.0).astype(jnp.float32)

    out, attn, _, mems_out = transformer_decoder_layer(
        prep, mems, x, encoder_out, local_attn_mask, H)
    jax.block_until_ready(out)

    assert out.shape == (T, B, E)
    assert bool(jnp.isfinite(out).all())

    ref = reference_forward(prep, x, encoder_out, local_attn_mask, H)
    max_err = float(jnp.max(jnp.abs(out - ref)))
    assert max_err < 3e-2, f"max abs err vs reference: {max_err}"

    print("KERNEL_OK")
</pallas_src>

<mosaic_0001>
module attributes {stable_mosaic.version = 11 : i64} {
  func.func @_decoder_layer_kernel(%arg0: i32, %arg1: memref<8x256xf32, #tpu.memory_space<vmem>>, %arg2: memref<16x256xf32, #tpu.memory_space<vmem>>, %arg3: memref<8x8xf32, #tpu.memory_space<vmem>>, %arg4: memref<128x384xbf16, #tpu.memory_space<vmem>>, %arg5: memref<1x384xf32, #tpu.memory_space<vmem>>, %arg6: memref<128x128xbf16, #tpu.memory_space<vmem>>, %arg7: memref<1x128xf32, #tpu.memory_space<vmem>>, %arg8: memref<1x128xf32, #tpu.memory_space<vmem>>, %arg9: memref<1x128xf32, #tpu.memory_space<vmem>>, %arg10: memref<128x128xbf16, #tpu.memory_space<vmem>>, %arg11: memref<1x128xf32, #tpu.memory_space<vmem>>, %arg12: memref<128x256xbf16, #tpu.memory_space<vmem>>, %arg13: memref<1x256xf32, #tpu.memory_space<vmem>>, %arg14: memref<128x128xbf16, #tpu.memory_space<vmem>>, %arg15: memref<1x128xf32, #tpu.memory_space<vmem>>, %arg16: memref<1x128xf32, #tpu.memory_space<vmem>>, %arg17: memref<1x128xf32, #tpu.memory_space<vmem>>, %arg18: memref<128x256xbf16, #tpu.memory_space<vmem>>, %arg19: memref<1x256xf32, #tpu.memory_space<vmem>>, %arg20: memref<256x128xbf16, #tpu.memory_space<vmem>>, %arg21: memref<1x128xf32, #tpu.memory_space<vmem>>, %arg22: memref<1x128xf32, #tpu.memory_space<vmem>>, %arg23: memref<1x128xf32, #tpu.memory_space<vmem>>, %arg24: memref<8x256xf32, #tpu.memory_space<vmem>>) attributes {dimension_semantics = [#tpu.dimension_semantics<arbitrary>], iteration_bounds = array<i64: 1>, scalar_prefetch = 0 : i64, scratch_operands = 0 : i64, tpu.core_type = #tpu.core_type<tc>, window_params = [{pipeline_mode = #tpu.pipeline_mode<synchronous>, transform_indices = @transform_0, window_bounds = array<i64: 8, 256>}, {pipeline_mode = #tpu.pipeline_mode<synchronous>, transform_indices = @transform_1, window_bounds = array<i64: 16, 256>}, {pipeline_mode = #tpu.pipeline_mode<synchronous>, transform_indices = @transform_2, window_bounds = array<i64: 8, 8>}, {pipeline_mode = #tpu.pipeline_mode<synchronous>, transform_indices = @transform_3, window_bounds = array<i64: 128, 384>}, {pipeline_mode = #tpu.pipeline_mode<synchronous>, transform_indices = @transform_4, window_bounds = array<i64: 1, 384>}, {pipeline_mode = #tpu.pipeline_mode<synchronous>, transform_indices = @transform_5, window_bounds = array<i64: 128, 128>}, {pipeline_mode = #tpu.pipeline_mode<synchronous>, transform_indices = @transform_6, window_bounds = array<i64: 1, 128>}, {pipeline_mode = #tpu.pipeline_mode<synchronous>, transform_indices = @transform_7, window_bounds = array<i64: 1, 128>}, {pipeline_mode = #tpu.pipeline_mode<synchronous>, transform_indices = @transform_8, window_bounds = array<i64: 1, 128>}, {pipeline_mode = #tpu.pipeline_mode<synchronous>, transform_indices = @transform_9, window_bounds = array<i64: 128, 128>}, {pipeline_mode = #tpu.pipeline_mode<synchronous>, transform_indices = @transform_10, window_bounds = array<i64: 1, 128>}, {pipeline_mode = #tpu.pipeline_mode<synchronous>, transform_indices = @transform_11, window_bounds = array<i64: 128, 256>}, {pipeline_mode = #tpu.pipeline_mode<synchronous>, transform_indices = @transform_12, window_bounds = array<i64: 1, 256>}, {pipeline_mode = #tpu.pipeline_mode<synchronous>, transform_indices = @transform_13, window_bounds = array<i64: 128, 128>}, {pipeline_mode = #tpu.pipeline_mode<synchronous>, transform_indices = @transform_14, window_bounds = array<i64: 1, 128>}, {pipeline_mode = #tpu.pipeline_mode<synchronous>, transform_indices = @transform_15, window_bounds = array<i64: 1, 128>}, {pipeline_mode = #tpu.pipeline_mode<synchronous>, transform_indices = @transform_16, window_bounds = array<i64: 1, 128>}, {pipeline_mode = #tpu.pipeline_mode<synchronous>, transform_indices = @transform_17, window_bounds = array<i64: 128, 256>}, {pipeline_mode = #tpu.pipeline_mode<synchronous>, transform_indices = @transform_18, window_bounds = array<i64: 1, 256>}, {pipeline_mode = #tpu.pipeline_mode<synchronous>, transform_indices = @transform_19, window_bounds = array<i64: 256, 128>}, {pipeline_mode = #tpu.pipeline_mode<synchronous>, transform_indices = @transform_20, window_bounds = array<i64: 1, 128>}, {pipeline_mode = #tpu.pipeline_mode<synchronous>, transform_indices = @transform_21, window_bounds = array<i64: 1, 128>}, {pipeline_mode = #tpu.pipeline_mode<synchronous>, transform_indices = @transform_22, window_bounds = array<i64: 1, 128>}, {pipeline_mode = #tpu.pipeline_mode<synchronous>, transform_indices = @transform_23, window_bounds = array<i64: 8, 256>}]} {
    %c0 = arith.constant 0 : index
    %c0_0 = arith.constant 0 : index
    %0 = vector.load %arg1[%c0, %c0_0] : memref<8x256xf32, #tpu.memory_space<vmem>>, vector<8x256xf32>
    %c0_1 = arith.constant 0 : index
    %c0_2 = arith.constant 0 : index
    %1 = vector.load %arg2[%c0_1, %c0_2] : memref<16x256xf32, #tpu.memory_space<vmem>>, vector<16x256xf32>
    %2 = vector.extract_strided_slice %0 {offsets = [0, 0], sizes = [8, 128], strides = [1, 1]} : vector<8x256xf32> to vector<8x128xf32>
    %3 = vector.extract_strided_slice %0 {offsets = [0, 128], sizes = [8, 128], strides = [1, 1]} : vector<8x256xf32> to vector<8x128xf32>
    %4 = tpu.concatenate %2, %3 in 0 : vector<8x128xf32>, vector<8x128xf32> -> vector<16x128xf32>
    %5 = vector.extract_strided_slice %1 {offsets = [0, 0], sizes = [16, 128], strides = [1, 1]} : vector<16x256xf32> to vector<16x128xf32>
    %6 = vector.extract_strided_slice %1 {offsets = [0, 128], sizes = [16, 128], strides = [1, 1]} : vector<16x256xf32> to vector<16x128xf32>
    %7 = tpu.concatenate %5, %6 in 0 : vector<16x128xf32>, vector<16x128xf32> -> vector<32x128xf32>
    %c0_3 = arith.constant 0 : index
    %c0_4 = arith.constant 0 : index
    %8 = vector.load %arg3[%c0_3, %c0_4] : memref<8x8xf32, #tpu.memory_space<vmem>>, vector<8x8xf32>
    %c0_5 = arith.constant 0 : index
    %c0_6 = arith.constant 0 : index
    %9 = vector.load %arg4[%c0_5, %c0_6] : memref<128x384xbf16, #tpu.memory_space<vmem>>, vector<128x384xbf16>
    %10 = arith.truncf %4 : vector<16x128xf32> to vector<16x128xbf16>
    %cst = arith.constant dense<0.000000e+00> : vector<16x384xf32>
    %11 = tpu.matmul %10, %9, %cst {dimension_numbers = #tpu.dot_dimension_numbers<[1], [0], [0], [1], [0, 0, 1, 1], [], []>} : vector<16x128xbf16>, vector<128x384xbf16>, vector<16x384xf32> -> vector<16x384xf32>
    %c0_7 = arith.constant 0 : index
    %c0_8 = arith.constant 0 : index
    %12 = vector.load %arg5[%c0_7, %c0_8] : memref<1x384xf32, #tpu.memory_space<vmem>>, vector<1x384xf32>
    %13 = vector.broadcast %12 : vector<1x384xf32> to vector<16x384xf32>
    %14 = arith.addf %11, %13 : vector<16x384xf32>
    %15 = vector.extract_strided_slice %14 {offsets = [0, 0], sizes = [16, 128], strides = [1, 1]} : vector<16x384xf32> to vector<16x128xf32>
    %16 = vector.extract_strided_slice %14 {offsets = [0, 128], sizes = [16, 128], strides = [1, 1]} : vector<16x384xf32> to vector<16x128xf32>
    %17 = vector.extract_strided_slice %14 {offsets = [0, 256], sizes = [16, 128], strides = [1, 1]} : vector<16x384xf32> to vector<16x128xf32>
    %18 = arith.truncf %15 : vector<16x128xf32> to vector<16x128xbf16>
    %19 = arith.truncf %16 : vector<16x128xf32> to vector<16x128xbf16>
    %20 = arith.truncf %17 : vector<16x128xf32> to vector<16x128xbf16>
    %21 = vector.extract_strided_slice %18 {offsets = [0, 0], sizes = [8, 32], strides = [1, 1]} : vector<16x128xbf16> to vector<8x32xbf16>
    %22 = vector.extract_strided_slice %18 {offsets = [0, 32], sizes = [8, 32], strides = [1, 1]} : vector<16x128xbf16> to vector<8x32xbf16>
    %23 = vector.extract_strided_slice %18 {offsets = [0, 64], sizes = [8, 32], strides = [1, 1]} : vector<16x128xbf16> to vector<8x32xbf16>
    %24 = vector.extract_strided_slice %18 {offsets = [0, 96], sizes = [8, 32], strides = [1, 1]} : vector<16x128xbf16> to vector<8x32xbf16>
    %25 = vector.extract_strided_slice %18 {offsets = [8, 0], sizes = [8, 32], strides = [1, 1]} : vector<16x128xbf16> to vector<8x32xbf16>
    %26 = vector.extract_strided_slice %18 {offsets = [8, 32], sizes = [8, 32], strides = [1, 1]} : vector<16x128xbf16> to vector<8x32xbf16>
    %27 = vector.extract_strided_slice %18 {offsets = [8, 64], sizes = [8, 32], strides = [1, 1]} : vector<16x128xbf16> to vector<8x32xbf16>
    %28 = vector.extract_strided_slice %18 {offsets = [8, 96], sizes = [8, 32], strides = [1, 1]} : vector<16x128xbf16> to vector<8x32xbf16>
    %29 = vector.shape_cast %21 : vector<8x32xbf16> to vector<1x8x32xbf16>
    %30 = vector.shape_cast %22 : vector<8x32xbf16> to vector<1x8x32xbf16>
    %31 = vector.shape_cast %23 : vector<8x32xbf16> to vector<1x8x32xbf16>
    %32 = vector.shape_cast %24 : vector<8x32xbf16> to vector<1x8x32xbf16>
    %33 = vector.shape_cast %25 : vector<8x32xbf16> to vector<1x8x32xbf16>
    %34 = vector.shape_cast %26 : vector<8x32xbf16> to vector<1x8x32xbf16>
    %35 = vector.shape_cast %27 : vector<8x32xbf16> to vector<1x8x32xbf16>
    %36 = vector.shape_cast %28 : vector<8x32xbf16> to vector<1x8x32xbf16>
    %37 = tpu.concatenate %29, %30, %31, %32, %33, %34, %35, %36 in 0 : vector<1x8x32xbf16>, vector<1x8x32xbf16>, vector<1x8x32xbf16>, vector<1x8x32xbf16>, vector<1x8x32xbf16>, vector<1x8x32xbf16>, vector<1x8x32xbf16>, vector<1x8x32xbf16> -> vector<8x8x32xbf16>
    %38 = vector.extract_strided_slice %19 {offsets = [0, 0], sizes = [8, 32], strides = [1, 1]} : vector<16x128xbf16> to vector<8x32xbf16>
    %39 = vector.extract_strided_slice %19 {offsets = [0, 32], sizes = [8, 32], strides = [1, 1]} : vector<16x128xbf16> to vector<8x32xbf16>
    %40 = vector.extract_strided_slice %19 {offsets = [0, 64], sizes = [8, 32], strides = [1, 1]} : vector<16x128xbf16> to vector<8x32xbf16>
    %41 = vector.extract_strided_slice %19 {offsets = [0, 96], sizes = [8, 32], strides = [1, 1]} : vector<16x128xbf16> to vector<8x32xbf16>
    %42 = vector.extract_strided_slice %19 {offsets = [8, 0], sizes = [8, 32], strides = [1, 1]} : vector<16x128xbf16> to vector<8x32xbf16>
    %43 = vector.extract_strided_slice %19 {offsets = [8, 32], sizes = [8, 32], strides = [1, 1]} : vector<16x128xbf16> to vector<8x32xbf16>
    %44 = vector.extract_strided_slice %19 {offsets = [8, 64], sizes = [8, 32], strides = [1, 1]} : vector<16x128xbf16> to vector<8x32xbf16>
    %45 = vector.extract_strided_slice %19 {offsets = [8, 96], sizes = [8, 32], strides = [1, 1]} : vector<16x128xbf16> to vector<8x32xbf16>
    %46 = vector.shape_cast %38 : vector<8x32xbf16> to vector<1x8x32xbf16>
    %47 = vector.shape_cast %39 : vector<8x32xbf16> to vector<1x8x32xbf16>
    %48 = vector.shape_cast %40 : vector<8x32xbf16> to vector<1x8x32xbf16>
    %49 = vector.shape_cast %41 : vector<8x32xbf16> to vector<1x8x32xbf16>
    %50 = vector.shape_cast %42 : vector<8x32xbf16> to vector<1x8x32xbf16>
    %51 = vector.shape_cast %43 : vector<8x32xbf16> to vector<1x8x32xbf16>
    %52 = vector.shape_cast %44 : vector<8x32xbf16> to vector<1x8x32xbf16>
    %53 = vector.shape_cast %45 : vector<8x32xbf16> to vector<1x8x32xbf16>
    %54 = tpu.concatenate %46, %47, %48, %49, %50, %51, %52, %53 in 0 : vector<1x8x32xbf16>, vector<1x8x32xbf16>, vector<1x8x32xbf16>, vector<1x8x32xbf16>, vector<1x8x32xbf16>, vector<1x8x32xbf16>, vector<1x8x32xbf16>, vector<1x8x32xbf16> -> vector<8x8x32xbf16>
    %55 = vector.extract_strided_slice %20 {offsets = [0, 0], sizes = [8, 32], strides = [1, 1]} : vector<16x128xbf16> to vector<8x32xbf16>
    %56 = vector.extract_strided_slice %20 {offsets = [0, 32], sizes = [8, 32], strides = [1, 1]} : vector<16x128xbf16> to vector<8x32xbf16>
    %57 = vector.extract_strided_slice %20 {offsets = [0, 64], sizes = [8, 32], strides = [1, 1]} : vector<16x128xbf16> to vector<8x32xbf16>
    %58 = vector.extract_strided_slice %20 {offsets = [0, 96], sizes = [8, 32], strides = [1, 1]} : vector<16x128xbf16> to vector<8x32xbf16>
    %59 = vector.extract_strided_slice %20 {offsets = [8, 0], sizes = [8, 32], strides = [1, 1]} : vector<16x128xbf16> to vector<8x32xbf16>
    %60 = vector.extract_strided_slice %20 {offsets = [8, 32], sizes = [8, 32], strides = [1, 1]} : vector<16x128xbf16> to vector<8x32xbf16>
    %61 = vector.extract_strided_slice %20 {offsets = [8, 64], sizes = [8, 32], strides = [1, 1]} : vector<16x128xbf16> to vector<8x32xbf16>
    %62 = vector.extract_strided_slice %20 {offsets = [8, 96], sizes = [8, 32], strides = [1, 1]} : vector<16x128xbf16> to vector<8x32xbf16>
    %63 = vector.shape_cast %55 : vector<8x32xbf16> to vector<1x8x32xbf16>
    %64 = vector.shape_cast %56 : vector<8x32xbf16> to vector<1x8x32xbf16>
    %65 = vector.shape_cast %57 : vector<8x32xbf16> to vector<1x8x32xbf16>
    %66 = vector.shape_cast %58 : vector<8x32xbf16> to vector<1x8x32xbf16>
    %67 = vector.shape_cast %59 : vector<8x32xbf16> to vector<1x8x32xbf16>
    %68 = vector.shape_cast %60 : vector<8x32xbf16> to vector<1x8x32xbf16>
    %69 = vector.shape_cast %61 : vector<8x32xbf16> to vector<1x8x32xbf16>
    %70 = vector.shape_cast %62 : vector<8x32xbf16> to vector<1x8x32xbf16>
    %71 = tpu.concatenate %63, %64, %65, %66, %67, %68, %69, %70 in 0 : vector<1x8x32xbf16>, vector<1x8x32xbf16>, vector<1x8x32xbf16>, vector<1x8x32xbf16>, vector<1x8x32xbf16>, vector<1x8x32xbf16>, vector<1x8x32xbf16>, vector<1x8x32xbf16> -> vector<8x8x32xbf16>
    "tpu.trace_start"() <{level = 10 : i32, message = "bqd,bkd->bqk"}> : () -> ()
    %cst_9 = arith.constant dense<0.000000e+00> : vector<8x8x8xf32>
    %72 = tpu.matmul %37, %54, %cst_9 {dimension_numbers = #tpu.dot_dimension_numbers<[2], [2], [1], [1], [0, 0, 0, 1, 1, 1], [0], [0]>} : vector<8x8x32xbf16>, vector<8x8x32xbf16>, vector<8x8x8xf32> -> vector<8x8x8xf32>
    "tpu.trace_stop"() : () -> ()
    %73 = vector.shape_cast %8 : vector<8x8xf32> to vector<1x8x8xf32>
    %74 = vector.broadcast %73 : vector<1x8x8xf32> to vector<8x8x8xf32>
    %75 = arith.addf %72, %74 : vector<8x8x8xf32>
    %cst_10 = arith.constant dense<0xFF800000> : vector<8x8xf32>
    %76 = vector.multi_reduction <maximumf>, %75, %cst_10 [2] : vector<8x8x8xf32> to vector<8x8xf32>
    %77 = vector.shape_cast %76 : vector<8x8xf32> to vector<8x8x1xf32>
    %78 = vector.broadcast %77 : vector<8x8x1xf32> to vector<8x8x8xf32>
    %79 = arith.subf %75, %78 : vector<8x8x8xf32>
    %80 = math.exp %79 : vector<8x8x8xf32>
    %cst_11 = arith.constant dense<0.000000e+00> : vector<8x8xf32>
    %81 = vector.multi_reduction <add>, %80, %cst_11 [2] : vector<8x8x8xf32> to vector<8x8xf32>
    %82 = vector.shape_cast %81 : vector<8x8xf32> to vector<8x8x1xf32>
    %83 = tpu.reciprocal %82 {approx = true} : vector<8x8x1xf32> -> vector<8x8x1xf32>
    %84 = vector.broadcast %83 : vector<8x8x1xf32> to vector<8x8x8xf32>
    %85 = arith.mulf %80, %84 : vector<8x8x8xf32>
    %86 = arith.truncf %85 : vector<8x8x8xf32> to vector<8x8x8xbf16>
    "tpu.trace_start"() <{level = 10 : i32, message = "bqk,bkd->bqd"}> : () -> ()
    %cst_12 = arith.constant dense<0.000000e+00> : vector<8x8x32xf32>
    %87 = tpu.matmul %86, %71, %cst_12 {dimension_numbers = #tpu.dot_dimension_numbers<[2], [1], [1], [2], [0, 0, 0, 1, 1, 2], [0], [0]>} : vector<8x8x8xbf16>, vector<8x8x32xbf16>, vector<8x8x32xf32> -> vector<8x8x32xf32>
    "tpu.trace_stop"() : () -> ()
    %88 = vector.extract_strided_slice %87 {offsets = [0, 0, 0], sizes = [1, 8, 32], strides = [1, 1, 1]} : vector<8x8x32xf32> to vector<1x8x32xf32>
    %89 = vector.shape_cast %88 : vector<1x8x32xf32> to vector<8x32xf32>
    %90 = vector.extract_strided_slice %87 {offsets = [1, 0, 0], sizes = [1, 8, 32], strides = [1, 1, 1]} : vector<8x8x32xf32> to vector<1x8x32xf32>
    %91 = vector.shape_cast %90 : vector<1x8x32xf32> to vector<8x32xf32>
    %92 = vector.extract_strided_slice %87 {offsets = [2, 0, 0], sizes = [1, 8, 32], strides = [1, 1, 1]} : vector<8x8x32xf32> to vector<1x8x32xf32>
    %93 = vector.shape_cast %92 : vector<1x8x32xf32> to vector<8x32xf32>
    %94 = vector.extract_strided_slice %87 {offsets = [3, 0, 0], sizes = [1, 8, 32], strides = [1, 1, 1]} : vector<8x8x32xf32> to vector<1x8x32xf32>
    %95 = vector.shape_cast %94 : vector<1x8x32xf32> to vector<8x32xf32>
    %96 = tpu.concatenate %89, %91, %93, %95 in 1 : vector<8x32xf32>, vector<8x32xf32>, vector<8x32xf32>, vector<8x32xf32> -> vector<8x128xf32>
    %97 = vector.extract_strided_slice %87 {offsets = [4, 0, 0], sizes = [1, 8, 32], strides = [1, 1, 1]} : vector<8x8x32xf32> to vector<1x8x32xf32>
    %98 = vector.shape_cast %97 : vector<1x8x32xf32> to vector<8x32xf32>
    %99 = vector.extract_strided_slice %87 {offsets = [5, 0, 0], sizes = [1, 8, 32], strides = [1, 1, 1]} : vector<8x8x32xf32> to vector<1x8x32xf32>
    %100 = vector.shape_cast %99 : vector<1x8x32xf32> to vector<8x32xf32>
    %101 = vector.extract_strided_slice %87 {offsets = [6, 0, 0], sizes = [1, 8, 32], strides = [1, 1, 1]} : vector<8x8x32xf32> to vector<1x8x32xf32>
    %102 = vector.shape_cast %101 : vector<1x8x32xf32> to vector<8x32xf32>
    %103 = vector.extract_strided_slice %87 {offsets = [7, 0, 0], sizes = [1, 8, 32], strides = [1, 1, 1]} : vector<8x8x32xf32> to vector<1x8x32xf32>
    %104 = vector.shape_cast %103 : vector<1x8x32xf32> to vector<8x32xf32>
    %105 = tpu.concatenate %98, %100, %102, %104 in 1 : vector<8x32xf32>, vector<8x32xf32>, vector<8x32xf32>, vector<8x32xf32> -> vector<8x128xf32>
    %106 = tpu.concatenate %96, %105 in 0 : vector<8x128xf32>, vector<8x128xf32> -> vector<16x128xf32>
    %c0_13 = arith.constant 0 : index
    %c0_14 = arith.constant 0 : index
    %107 = vector.load %arg6[%c0_13, %c0_14] : memref<128x128xbf16, #tpu.memory_space<vmem>>, vector<128x128xbf16>
    %108 = arith.truncf %106 : vector<16x128xf32> to vector<16x128xbf16>
    %cst_15 = arith.constant dense<0.000000e+00> : vector<16x128xf32>
    %109 = tpu.matmul %108, %107, %cst_15 {dimension_numbers = #tpu.dot_dimension_numbers<[1], [0], [0], [1], [0, 0, 1, 1], [], []>} : vector<16x128xbf16>, vector<128x128xbf16>, vector<16x128xf32> -> vector<16x128xf32>
    %c0_16 = arith.constant 0 : index
    %c0_17 = arith.constant 0 : index
    %110 = vector.load %arg7[%c0_16, %c0_17] : memref<1x128xf32, #tpu.memory_space<vmem>>, vector<1x128xf32>
    %111 = vector.broadcast %110 : vector<1x128xf32> to vector<16x128xf32>
    %112 = arith.addf %109, %111 : vector<16x128xf32>
    %113 = arith.addf %4, %112 : vector<16x128xf32>
    %cst_18 = arith.constant dense<0.000000e+00> : vector<16xf32>
    %114 = vector.multi_reduction <add>, %113, %cst_18 [1] : vector<16x128xf32> to vector<16xf32>
    %115 = vector.shape_cast %114 : vector<16xf32> to vector<16x1xf32>
    %cst_19 = arith.constant 1.280000e+02 : f32
    %116 = vector.broadcast %cst_19 : f32 to vector<16x1xf32>
    %117 = arith.divf %115, %116 : vector<16x1xf32>
    %118 = vector.broadcast %117 : vector<16x1xf32> to vector<16x128xf32>
    %119 = arith.subf %113, %118 : vector<16x128xf32>
    %120 = arith.mulf %119, %119 : vector<16x128xf32>
    %cst_20 = arith.constant dense<0.000000e+00> : vector<16xf32>
    %121 = vector.multi_reduction <add>, %120, %cst_20 [1] : vector<16x128xf32> to vector<16xf32>
    %122 = vector.shape_cast %121 : vector<16xf32> to vector<16x1xf32>
    %cst_21 = arith.constant 1.280000e+02 : f32
    %123 = vector.broadcast %cst_21 : f32 to vector<16x1xf32>
    %124 = arith.divf %122, %123 : vector<16x1xf32>
    %cst_22 = arith.constant 9.99999974E-6 : f32
    %125 = vector.broadcast %cst_22 : f32 to vector<16x1xf32>
    %126 = arith.addf %124, %125 : vector<16x1xf32>
    %127 = math.rsqrt %126 : vector<16x1xf32>
    %128 = vector.broadcast %127 : vector<16x1xf32> to vector<16x128xf32>
    %129 = arith.mulf %119, %128 : vector<16x128xf32>
    %c0_23 = arith.constant 0 : index
    %c0_24 = arith.constant 0 : index
    %130 = vector.load %arg8[%c0_23, %c0_24] : memref<1x128xf32, #tpu.memory_space<vmem>>, vector<1x128xf32>
    %131 = vector.broadcast %130 : vector<1x128xf32> to vector<16x128xf32>
    %132 = arith.mulf %129, %131 : vector<16x128xf32>
    %c0_25 = arith.constant 0 : index
    %c0_26 = arith.constant 0 : index
    %133 = vector.load %arg9[%c0_25, %c0_26] : memref<1x128xf32, #tpu.memory_space<vmem>>, vector<1x128xf32>
    %134 = vector.broadcast %133 : vector<1x128xf32> to vector<16x128xf32>
    %135 = arith.addf %132, %134 : vector<16x128xf32>
    %c0_27 = arith.constant 0 : index
    %c0_28 = arith.constant 0 : index
    %136 = vector.load %arg10[%c0_27, %c0_28] : memref<128x128xbf16, #tpu.memory_space<vmem>>, vector<128x128xbf16>
    %137 = arith.truncf %135 : vector<16x128xf32> to vector<16x128xbf16>
    %cst_29 = arith.constant dense<0.000000e+00> : vector<16x128xf32>
    %138 = tpu.matmul %137, %136, %cst_29 {dimension_numbers = #tpu.dot_dimension_numbers<[1], [0], [0], [1], [0, 0, 1, 1], [], []>} : vector<16x128xbf16>, vector<128x128xbf16>, vector<16x128xf32> -> vector<16x128xf32>
    %c0_30 = arith.constant 0 : index
    %c0_31 = arith.constant 0 : index
    %139 = vector.load %arg11[%c0_30, %c0_31] : memref<1x128xf32, #tpu.memory_space<vmem>>, vector<1x128xf32>
    %140 = vector.broadcast %139 : vector<1x128xf32> to vector<16x128xf32>
    %141 = arith.addf %138, %140 : vector<16x128xf32>
    %c0_32 = arith.constant 0 : index
    %c0_33 = arith.constant 0 : index
    %142 = vector.load %arg12[%c0_32, %c0_33] : memref<128x256xbf16, #tpu.memory_space<vmem>>, vector<128x256xbf16>
    %143 = arith.truncf %7 : vector<32x128xf32> to vector<32x128xbf16>
    %cst_34 = arith.constant dense<0.000000e+00> : vector<32x256xf32>
    %144 = tpu.matmul %143, %142, %cst_34 {dimension_numbers = #tpu.dot_dimension_numbers<[1], [0], [0], [1], [0, 0, 1, 1], [], []>} : vector<32x128xbf16>, vector<128x256xbf16>, vector<32x256xf32> -> vector<32x256xf32>
    %c0_35 = arith.constant 0 : index
    %c0_36 = arith.constant 0 : index
    %145 = vector.load %arg13[%c0_35, %c0_36] : memref<1x256xf32, #tpu.memory_space<vmem>>, vector<1x256xf32>
    %146 = vector.broadcast %145 : vector<1x256xf32> to vector<32x256xf32>
    %147 = arith.addf %144, %146 : vector<32x256xf32>
    %148 = vector.extract_strided_slice %147 {offsets = [0, 0], sizes = [32, 128], strides = [1, 1]} : vector<32x256xf32> to vector<32x128xf32>
    %149 = vector.extract_strided_slice %147 {offsets = [0, 128], sizes = [32, 128], strides = [1, 1]} : vector<32x256xf32> to vector<32x128xf32>
    %150 = arith.truncf %141 : vector<16x128xf32> to vector<16x128xbf16>
    %151 = arith.truncf %148 : vector<32x128xf32> to vector<32x128xbf16>
    %152 = arith.truncf %149 : vector<32x128xf32> to vector<32x128xbf16>
    %153 = vector.extract_strided_slice %150 {offsets = [0, 0], sizes = [8, 32], strides = [1, 1]} : vector<16x128xbf16> to vector<8x32xbf16>
    %154 = vector.extract_strided_slice %150 {offsets = [0, 32], sizes = [8, 32], strides = [1, 1]} : vector<16x128xbf16> to vector<8x32xbf16>
    %155 = vector.extract_strided_slice %150 {offsets = [0, 64], sizes = [8, 32], strides = [1, 1]} : vector<16x128xbf16> to vector<8x32xbf16>
    %156 = vector.extract_strided_slice %150 {offsets = [0, 96], sizes = [8, 32], strides = [1, 1]} : vector<16x128xbf16> to vector<8x32xbf16>
    %157 = vector.extract_strided_slice %150 {offsets = [8, 0], sizes = [8, 32], strides = [1, 1]} : vector<16x128xbf16> to vector<8x32xbf16>
    %158 = vector.extract_strided_slice %150 {offsets = [8, 32], sizes = [8, 32], strides = [1, 1]} : vector<16x128xbf16> to vector<8x32xbf16>
    %159 = vector.extract_strided_slice %150 {offsets = [8, 64], sizes = [8, 32], strides = [1, 1]} : vector<16x128xbf16> to vector<8x32xbf16>
    %160 = vector.extract_strided_slice %150 {offsets = [8, 96], sizes = [8, 32], strides = [1, 1]} : vector<16x128xbf16> to vector<8x32xbf16>
    %161 = vector.shape_cast %153 : vector<8x32xbf16> to vector<1x8x32xbf16>
    %162 = vector.shape_cast %154 : vector<8x32xbf16> to vector<1x8x32xbf16>
    %163 = vector.shape_cast %155 : vector<8x32xbf16> to vector<1x8x32xbf16>
    %164 = vector.shape_cast %156 : vector<8x32xbf16> to vector<1x8x32xbf16>
    %165 = vector.shape_cast %157 : vector<8x32xbf16> to vector<1x8x32xbf16>
    %166 = vector.shape_cast %158 : vector<8x32xbf16> to vector<1x8x32xbf16>
    %167 = vector.shape_cast %159 : vector<8x32xbf16> to vector<1x8x32xbf16>
    %168 = vector.shape_cast %160 : vector<8x32xbf16> to vector<1x8x32xbf16>
    %169 = tpu.concatenate %161, %162, %163, %164, %165, %166, %167, %168 in 0 : vector<1x8x32xbf16>, vector<1x8x32xbf16>, vector<1x8x32xbf16>, vector<1x8x32xbf16>, vector<1x8x32xbf16>, vector<1x8x32xbf16>, vector<1x8x32xbf16>, vector<1x8x32xbf16> -> vector<8x8x32xbf16>
    %170 = vector.extract_strided_slice %151 {offsets = [0, 0], sizes = [16, 32], strides = [1, 1]} : vector<32x128xbf16> to vector<16x32xbf16>
    %171 = vector.extract_strided_slice %151 {offsets = [0, 32], sizes = [16, 32], strides = [1, 1]} : vector<32x128xbf16> to vector<16x32xbf16>
    %172 = vector.extract_strided_slice %151 {offsets = [0, 64], sizes = [16, 32], strides = [1, 1]} : vector<32x128xbf16> to vector<16x32xbf16>
    %173 = vector.extract_strided_slice %151 {offsets = [0, 96], sizes = [16, 32], strides = [1, 1]} : vector<32x128xbf16> to vector<16x32xbf16>
    %174 = vector.extract_strided_slice %151 {offsets = [16, 0], sizes = [16, 32], strides = [1, 1]} : vector<32x128xbf16> to vector<16x32xbf16>
    %175 = vector.extract_strided_slice %151 {offsets = [16, 32], sizes = [16, 32], strides = [1, 1]} : vector<32x128xbf16> to vector<16x32xbf16>
    %176 = vector.extract_strided_slice %151 {offsets = [16, 64], sizes = [16, 32], strides = [1, 1]} : vector<32x128xbf16> to vector<16x32xbf16>
    %177 = vector.extract_strided_slice %151 {offsets = [16, 96], sizes = [16, 32], strides = [1, 1]} : vector<32x128xbf16> to vector<16x32xbf16>
    %178 = vector.shape_cast %170 : vector<16x32xbf16> to vector<1x16x32xbf16>
    %179 = vector.shape_cast %171 : vector<16x32xbf16> to vector<1x16x32xbf16>
    %180 = vector.shape_cast %172 : vector<16x32xbf16> to vector<1x16x32xbf16>
    %181 = vector.shape_cast %173 : vector<16x32xbf16> to vector<1x16x32xbf16>
    %182 = vector.shape_cast %174 : vector<16x32xbf16> to vector<1x16x32xbf16>
    %183 = vector.shape_cast %175 : vector<16x32xbf16> to vector<1x16x32xbf16>
    %184 = vector.shape_cast %176 : vector<16x32xbf16> to vector<1x16x32xbf16>
    %185 = vector.shape_cast %177 : vector<16x32xbf16> to vector<1x16x32xbf16>
    %186 = tpu.concatenate %178, %179, %180, %181, %182, %183, %184, %185 in 0 : vector<1x16x32xbf16>, vector<1x16x32xbf16>, vector<1x16x32xbf16>, vector<1x16x32xbf16>, vector<1x16x32xbf16>, vector<1x16x32xbf16>, vector<1x16x32xbf16>, vector<1x16x32xbf16> -> vector<8x16x32xbf16>
    %187 = vector.extract_strided_slice %152 {offsets = [0, 0], sizes = [16, 32], strides = [1, 1]} : vector<32x128xbf16> to vector<16x32xbf16>
    %188 = vector.extract_strided_slice %152 {offsets = [0, 32], sizes = [16, 32], strides = [1, 1]} : vector<32x128xbf16> to vector<16x32xbf16>
    %189 = vector.extract_strided_slice %152 {offsets = [0, 64], sizes = [16, 32], strides = [1, 1]} : vector<32x128xbf16> to vector<16x32xbf16>
    %190 = vector.extract_strided_slice %152 {offsets = [0, 96], sizes = [16, 32], strides = [1, 1]} : vector<32x128xbf16> to vector<16x32xbf16>
    %191 = vector.extract_strided_slice %152 {offsets = [16, 0], sizes = [16, 32], strides = [1, 1]} : vector<32x128xbf16> to vector<16x32xbf16>
    %192 = vector.extract_strided_slice %152 {offsets = [16, 32], sizes = [16, 32], strides = [1, 1]} : vector<32x128xbf16> to vector<16x32xbf16>
    %193 = vector.extract_strided_slice %152 {offsets = [16, 64], sizes = [16, 32], strides = [1, 1]} : vector<32x128xbf16> to vector<16x32xbf16>
    %194 = vector.extract_strided_slice %152 {offsets = [16, 96], sizes = [16, 32], strides = [1, 1]} : vector<32x128xbf16> to vector<16x32xbf16>
    %195 = vector.shape_cast %187 : vector<16x32xbf16> to vector<1x16x32xbf16>
    %196 = vector.shape_cast %188 : vector<16x32xbf16> to vector<1x16x32xbf16>
    %197 = vector.shape_cast %189 : vector<16x32xbf16> to vector<1x16x32xbf16>
    %198 = vector.shape_cast %190 : vector<16x32xbf16> to vector<1x16x32xbf16>
    %199 = vector.shape_cast %191 : vector<16x32xbf16> to vector<1x16x32xbf16>
    %200 = vector.shape_cast %192 : vector<16x32xbf16> to vector<1x16x32xbf16>
    %201 = vector.shape_cast %193 : vector<16x32xbf16> to vector<1x16x32xbf16>
    %202 = vector.shape_cast %194 : vector<16x32xbf16> to vector<1x16x32xbf16>
    %203 = tpu.concatenate %195, %196, %197, %198, %199, %200, %201, %202 in 0 : vector<1x16x32xbf16>, vector<1x16x32xbf16>, vector<1x16x32xbf16>, vector<1x16x32xbf16>, vector<1x16x32xbf16>, vector<1x16x32xbf16>, vector<1x16x32xbf16>, vector<1x16x32xbf16> -> vector<8x16x32xbf16>
    "tpu.trace_start"() <{level = 10 : i32, message = "bqd,bkd->bqk"}> : () -> ()
    %cst_37 = arith.constant dense<0.000000e+00> : vector<8x8x16xf32>
    %204 = tpu.matmul %169, %186, %cst_37 {dimension_numbers = #tpu.dot_dimension_numbers<[2], [2], [1], [1], [0, 0, 0, 1, 1, 1], [0], [0]>} : vector<8x8x32xbf16>, vector<8x16x32xbf16>, vector<8x8x16xf32> -> vector<8x8x16xf32>
    "tpu.trace_stop"() : () -> ()
    %cst_38 = arith.constant dense<0xFF800000> : vector<8x8xf32>
    %205 = vector.multi_reduction <maximumf>, %204, %cst_38 [2] : vector<8x8x16xf32> to vector<8x8xf32>
    %206 = vector.shape_cast %205 : vector<8x8xf32> to vector<8x8x1xf32>
    %207 = vector.broadcast %206 : vector<8x8x1xf32> to vector<8x8x16xf32>
    %208 = arith.subf %204, %207 : vector<8x8x16xf32>
    %209 = math.exp %208 : vector<8x8x16xf32>
    %cst_39 = arith.constant dense<0.000000e+00> : vector<8x8xf32>
    %210 = vector.multi_reduction <add>, %209, %cst_39 [2] : vector<8x8x16xf32> to vector<8x8xf32>
    %211 = vector.shape_cast %210 : vector<8x8xf32> to vector<8x8x1xf32>
    %212 = tpu.reciprocal %211 {approx = true} : vector<8x8x1xf32> -> vector<8x8x1xf32>
    %213 = vector.broadcast %212 : vector<8x8x1xf32> to vector<8x8x16xf32>
    %214 = arith.mulf %209, %213 : vector<8x8x16xf32>
    %215 = arith.truncf %214 : vector<8x8x16xf32> to vector<8x8x16xbf16>
    "tpu.trace_start"() <{level = 10 : i32, message = "bqk,bkd->bqd"}> : () -> ()
    %cst_40 = arith.constant dense<0.000000e+00> : vector<8x8x32xf32>
    %216 = tpu.matmul %215, %203, %cst_40 {dimension_numbers = #tpu.dot_dimension_numbers<[2], [1], [1], [2], [0, 0, 0, 1, 1, 2], [0], [0]>} : vector<8x8x16xbf16>, vector<8x16x32xbf16>, vector<8x8x32xf32> -> vector<8x8x32xf32>
    "tpu.trace_stop"() : () -> ()
    %217 = vector.extract_strided_slice %216 {offsets = [0, 0, 0], sizes = [1, 8, 32], strides = [1, 1, 1]} : vector<8x8x32xf32> to vector<1x8x32xf32>
    %218 = vector.shape_cast %217 : vector<1x8x32xf32> to vector<8x32xf32>
    %219 = vector.extract_strided_slice %216 {offsets = [1, 0, 0], sizes = [1, 8, 32], strides = [1, 1, 1]} : vector<8x8x32xf32> to vector<1x8x32xf32>
    %220 = vector.shape_cast %219 : vector<1x8x32xf32> to vector<8x32xf32>
    %221 = vector.extract_strided_slice %216 {offsets = [2, 0, 0], sizes = [1, 8, 32], strides = [1, 1, 1]} : vector<8x8x32xf32> to vector<1x8x32xf32>
    %222 = vector.shape_cast %221 : vector<1x8x32xf32> to vector<8x32xf32>
    %223 = vector.extract_strided_slice %216 {offsets = [3, 0, 0], sizes = [1, 8, 32], strides = [1, 1, 1]} : vector<8x8x32xf32> to vector<1x8x32xf32>
    %224 = vector.shape_cast %223 : vector<1x8x32xf32> to vector<8x32xf32>
    %225 = tpu.concatenate %218, %220, %222, %224 in 1 : vector<8x32xf32>, vector<8x32xf32>, vector<8x32xf32>, vector<8x32xf32> -> vector<8x128xf32>
    %226 = vector.extract_strided_slice %216 {offsets = [4, 0, 0], sizes = [1, 8, 32], strides = [1, 1, 1]} : vector<8x8x32xf32> to vector<1x8x32xf32>
    %227 = vector.shape_cast %226 : vector<1x8x32xf32> to vector<8x32xf32>
    %228 = vector.extract_strided_slice %216 {offsets = [5, 0, 0], sizes = [1, 8, 32], strides = [1, 1, 1]} : vector<8x8x32xf32> to vector<1x8x32xf32>
    %229 = vector.shape_cast %228 : vector<1x8x32xf32> to vector<8x32xf32>
    %230 = vector.extract_strided_slice %216 {offsets = [6, 0, 0], sizes = [1, 8, 32], strides = [1, 1, 1]} : vector<8x8x32xf32> to vector<1x8x32xf32>
    %231 = vector.shape_cast %230 : vector<1x8x32xf32> to vector<8x32xf32>
    %232 = vector.extract_strided_slice %216 {offsets = [7, 0, 0], sizes = [1, 8, 32], strides = [1, 1, 1]} : vector<8x8x32xf32> to vector<1x8x32xf32>
    %233 = vector.shape_cast %232 : vector<1x8x32xf32> to vector<8x32xf32>
    %234 = tpu.concatenate %227, %229, %231, %233 in 1 : vector<8x32xf32>, vector<8x32xf32>, vector<8x32xf32>, vector<8x32xf32> -> vector<8x128xf32>
    %235 = tpu.concatenate %225, %234 in 0 : vector<8x128xf32>, vector<8x128xf32> -> vector<16x128xf32>
    %c0_41 = arith.constant 0 : index
    %c0_42 = arith.constant 0 : index
    %236 = vector.load %arg14[%c0_41, %c0_42] : memref<128x128xbf16, #tpu.memory_space<vmem>>, vector<128x128xbf16>
    %237 = arith.truncf %235 : vector<16x128xf32> to vector<16x128xbf16>
    %cst_43 = arith.constant dense<0.000000e+00> : vector<16x128xf32>
    %238 = tpu.matmul %237, %236, %cst_43 {dimension_numbers = #tpu.dot_dimension_numbers<[1], [0], [0], [1], [0, 0, 1, 1], [], []>} : vector<16x128xbf16>, vector<128x128xbf16>, vector<16x128xf32> -> vector<16x128xf32>
    %c0_44 = arith.constant 0 : index
    %c0_45 = arith.constant 0 : index
    %239 = vector.load %arg15[%c0_44, %c0_45] : memref<1x128xf32, #tpu.memory_space<vmem>>, vector<1x128xf32>
    %240 = vector.broadcast %239 : vector<1x128xf32> to vector<16x128xf32>
    %241 = arith.addf %238, %240 : vector<16x128xf32>
    %242 = arith.addf %135, %241 : vector<16x128xf32>
    %cst_46 = arith.constant dense<0.000000e+00> : vector<16xf32>
    %243 = vector.multi_reduction <add>, %242, %cst_46 [1] : vector<16x128xf32> to vector<16xf32>
    %244 = vector.shape_cast %243 : vector<16xf32> to vector<16x1xf32>
    %cst_47 = arith.constant 1.280000e+02 : f32
    %245 = vector.broadcast %cst_47 : f32 to vector<16x1xf32>
    %246 = arith.divf %244, %245 : vector<16x1xf32>
    %247 = vector.broadcast %246 : vector<16x1xf32> to vector<16x128xf32>
    %248 = arith.subf %242, %247 : vector<16x128xf32>
    %249 = arith.mulf %248, %248 : vector<16x128xf32>
    %cst_48 = arith.constant dense<0.000000e+00> : vector<16xf32>
    %250 = vector.multi_reduction <add>, %249, %cst_48 [1] : vector<16x128xf32> to vector<16xf32>
    %251 = vector.shape_cast %250 : vector<16xf32> to vector<16x1xf32>
    %cst_49 = arith.constant 1.280000e+02 : f32
    %252 = vector.broadcast %cst_49 : f32 to vector<16x1xf32>
    %253 = arith.divf %251, %252 : vector<16x1xf32>
    %cst_50 = arith.constant 9.99999974E-6 : f32
    %254 = vector.broadcast %cst_50 : f32 to vector<16x1xf32>
    %255 = arith.addf %253, %254 : vector<16x1xf32>
    %256 = math.rsqrt %255 : vector<16x1xf32>
    %257 = vector.broadcast %256 : vector<16x1xf32> to vector<16x128xf32>
    %258 = arith.mulf %248, %257 : vector<16x128xf32>
    %c0_51 = arith.constant 0 : index
    %c0_52 = arith.constant 0 : index
    %259 = vector.load %arg16[%c0_51, %c0_52] : memref<1x128xf32, #tpu.memory_space<vmem>>, vector<1x128xf32>
    %260 = vector.broadcast %259 : vector<1x128xf32> to vector<16x128xf32>
    %261 = arith.mulf %258, %260 : vector<16x128xf32>
    %c0_53 = arith.constant 0 : index
    %c0_54 = arith.constant 0 : index
    %262 = vector.load %arg17[%c0_53, %c0_54] : memref<1x128xf32, #tpu.memory_space<vmem>>, vector<1x128xf32>
    %263 = vector.broadcast %262 : vector<1x128xf32> to vector<16x128xf32>
    %264 = arith.addf %261, %263 : vector<16x128xf32>
    %c0_55 = arith.constant 0 : index
    %c0_56 = arith.constant 0 : index
    %265 = vector.load %arg18[%c0_55, %c0_56] : memref<128x256xbf16, #tpu.memory_space<vmem>>, vector<128x256xbf16>
    %266 = arith.truncf %264 : vector<16x128xf32> to vector<16x128xbf16>
    %cst_57 = arith.constant dense<0.000000e+00> : vector<16x256xf32>
    %267 = tpu.matmul %266, %265, %cst_57 {dimension_numbers = #tpu.dot_dimension_numbers<[1], [0], [0], [1], [0, 0, 1, 1], [], []>} : vector<16x128xbf16>, vector<128x256xbf16>, vector<16x256xf32> -> vector<16x256xf32>
    %c0_58 = arith.constant 0 : index
    %c0_59 = arith.constant 0 : index
    %268 = vector.load %arg19[%c0_58, %c0_59] : memref<1x256xf32, #tpu.memory_space<vmem>>, vector<1x256xf32>
    %269 = vector.broadcast %268 : vector<1x256xf32> to vector<16x256xf32>
    %270 = arith.addf %267, %269 : vector<16x256xf32>
    %cst_60 = arith.constant 0.000000e+00 : f32
    %271 = vector.broadcast %cst_60 : f32 to vector<16x256xf32>
    %272 = arith.maximumf %270, %271 : vector<16x256xf32>
    %c0_61 = arith.constant 0 : index
    %c0_62 = arith.constant 0 : index
    %273 = vector.load %arg20[%c0_61, %c0_62] : memref<256x128xbf16, #tpu.memory_space<vmem>>, vector<256x128xbf16>
    %274 = arith.truncf %272 : vector<16x256xf32> to vector<16x256xbf16>
    %cst_63 = arith.constant dense<0.000000e+00> : vector<16x128xf32>
    %275 = tpu.matmul %274, %273, %cst_63 {dimension_numbers = #tpu.dot_dimension_numbers<[1], [0], [0], [1], [0, 0, 1, 1], [], []>} : vector<16x256xbf16>, vector<256x128xbf16>, vector<16x128xf32> -> vector<16x128xf32>
    %c0_64 = arith.constant 0 : index
    %c0_65 = arith.constant 0 : index
    %276 = vector.load %arg21[%c0_64, %c0_65] : memref<1x128xf32, #tpu.memory_space<vmem>>, vector<1x128xf32>
    %277 = vector.broadcast %276 : vector<1x128xf32> to vector<16x128xf32>
    %278 = arith.addf %275, %277 : vector<16x128xf32>
    %279 = arith.addf %264, %278 : vector<16x128xf32>
    %cst_66 = arith.constant dense<0.000000e+00> : vector<16xf32>
    %280 = vector.multi_reduction <add>, %279, %cst_66 [1] : vector<16x128xf32> to vector<16xf32>
    %281 = vector.shape_cast %280 : vector<16xf32> to vector<16x1xf32>
    %cst_67 = arith.constant 1.280000e+02 : f32
    %282 = vector.broadcast %cst_67 : f32 to vector<16x1xf32>
    %283 = arith.divf %281, %282 : vector<16x1xf32>
    %284 = vector.broadcast %283 : vector<16x1xf32> to vector<16x128xf32>
    %285 = arith.subf %279, %284 : vector<16x128xf32>
    %286 = arith.mulf %285, %285 : vector<16x128xf32>
    %cst_68 = arith.constant dense<0.000000e+00> : vector<16xf32>
    %287 = vector.multi_reduction <add>, %286, %cst_68 [1] : vector<16x128xf32> to vector<16xf32>
    %288 = vector.shape_cast %287 : vector<16xf32> to vector<16x1xf32>
    %cst_69 = arith.constant 1.280000e+02 : f32
    %289 = vector.broadcast %cst_69 : f32 to vector<16x1xf32>
    %290 = arith.divf %288, %289 : vector<16x1xf32>
    %cst_70 = arith.constant 9.99999974E-6 : f32
    %291 = vector.broadcast %cst_70 : f32 to vector<16x1xf32>
    %292 = arith.addf %290, %291 : vector<16x1xf32>
    %293 = math.rsqrt %292 : vector<16x1xf32>
    %294 = vector.broadcast %293 : vector<16x1xf32> to vector<16x128xf32>
    %295 = arith.mulf %285, %294 : vector<16x128xf32>
    %c0_71 = arith.constant 0 : index
    %c0_72 = arith.constant 0 : index
    %296 = vector.load %arg22[%c0_71, %c0_72] : memref<1x128xf32, #tpu.memory_space<vmem>>, vector<1x128xf32>
    %297 = vector.broadcast %296 : vector<1x128xf32> to vector<16x128xf32>
    %298 = arith.mulf %295, %297 : vector<16x128xf32>
    %c0_73 = arith.constant 0 : index
    %c0_74 = arith.constant 0 : index
    %299 = vector.load %arg23[%c0_73, %c0_74] : memref<1x128xf32, #tpu.memory_space<vmem>>, vector<1x128xf32>
    %300 = vector.broadcast %299 : vector<1x128xf32> to vector<16x128xf32>
    %301 = arith.addf %298, %300 : vector<16x128xf32>
    %302 = vector.extract_strided_slice %301 {offsets = [0, 0], sizes = [8, 128], strides = [1, 1]} : vector<16x128xf32> to vector<8x128xf32>
    %303 = vector.extract_strided_slice %301 {offsets = [8, 0], sizes = [8, 128], strides = [1, 1]} : vector<16x128xf32> to vector<8x128xf32>
    %304 = tpu.concatenate %302, %303 in 1 : vector<8x128xf32>, vector<8x128xf32> -> vector<8x256xf32>
    %c0_75 = arith.constant 0 : index
    %c0_76 = arith.constant 0 : index
    %305 = vector.load %arg24[%c0_75, %c0_76] : memref<8x256xf32, #tpu.memory_space<vmem>>, vector<8x256xf32>
    tpu.vector_store %arg24[%c0_75, %c0_76], %304 {strides = array<i32>} : memref<8x256xf32, #tpu.memory_space<vmem>>, vector<8x256xf32>,
    return
  }
  func.func @transform_0(%arg0: i32) -> (i32, i32) {
    %c0_i32 = arith.constant 0 : i32
    %c0_i32_0 = arith.constant 0 : i32
    %c0_i32_1 = arith.constant 0 : i32
    return %c0_i32, %c0_i32_0 : i32, i32
  }
  func.func @transform_1(%arg0: i32) -> (i32, i32) {
    %c0_i32 = arith.constant 0 : i32
    %c0_i32_0 = arith.constant 0 : i32
    %c0_i32_1 = arith.constant 0 : i32
    return %c0_i32, %c0_i32_0 : i32, i32
  }
  func.func @transform_2(%arg0: i32) -> (i32, i32) {
    %c0_i32 = arith.constant 0 : i32
    %c0_i32_0 = arith.constant 0 : i32
    %c0_i32_1 = arith.constant 0 : i32
    return %c0_i32, %c0_i32_0 : i32, i32
  }
  func.func @transform_3(%arg0: i32) -> (i32, i32) {
    %c0_i32 = arith.constant 0 : i32
    %c0_i32_0 = arith.constant 0 : i32
    %c0_i32_1 = arith.constant 0 : i32
    return %c0_i32, %c0_i32_0 : i32, i32
  }
  func.func @transform_4(%arg0: i32) -> (i32, i32) {
    %c0_i32 = arith.constant 0 : i32
    %c0_i32_0 = arith.constant 0 : i32
    %c0_i32_1 = arith.constant 0 : i32
    return %c0_i32, %c0_i32_0 : i32, i32
  }
  func.func @transform_5(%arg0: i32) -> (i32, i32) {
    %c0_i32 = arith.constant 0 : i32
    %c0_i32_0 = arith.constant 0 : i32
    %c0_i32_1 = arith.constant 0 : i32
    return %c0_i32, %c0_i32_0 : i32, i32
  }
  func.func @transform_6(%arg0: i32) -> (i32, i32) {
    %c0_i32 = arith.constant 0 : i32
    %c0_i32_0 = arith.constant 0 : i32
    %c0_i32_1 = arith.constant 0 : i32
    return %c0_i32, %c0_i32_0 : i32, i32
  }
  func.func @transform_7(%arg0: i32) -> (i32, i32) {
    %c0_i32 = arith.constant 0 : i32
    %c0_i32_0 = arith.constant 0 : i32
    %c0_i32_1 = arith.constant 0 : i32
    return %c0_i32, %c0_i32_0 : i32, i32
  }
  func.func @transform_8(%arg0: i32) -> (i32, i32) {
    %c0_i32 = arith.constant 0 : i32
    %c0_i32_0 = arith.constant 0 : i32
    %c0_i32_1 = arith.constant 0 : i32
    return %c0_i32, %c0_i32_0 : i32, i32
  }
  func.func @transform_9(%arg0: i32) -> (i32, i32) {
    %c0_i32 = arith.constant 0 : i32
    %c0_i32_0 = arith.constant 0 : i32
    %c0_i32_1 = arith.constant 0 : i32
    return %c0_i32, %c0_i32_0 : i32, i32
  }
  func.func @transform_10(%arg0: i32) -> (i32, i32) {
    %c0_i32 = arith.constant 0 : i32
    %c0_i32_0 = arith.constant 0 : i32
    %c0_i32_1 = arith.constant 0 : i32
    return %c0_i32, %c0_i32_0 : i32, i32
  }
  func.func @transform_11(%arg0: i32) -> (i32, i32) {
    %c0_i32 = arith.constant 0 : i32
    %c0_i32_0 = arith.constant 0 : i32
    %c0_i32_1 = arith.constant 0 : i32
    return %c0_i32, %c0_i32_0 : i32, i32
  }
  func.func @transform_12(%arg0: i32) -> (i32, i32) {
    %c0_i32 = arith.constant 0 : i32
    %c0_i32_0 = arith.constant 0 : i32
    %c0_i32_1 = arith.constant 0 : i32
    return %c0_i32, %c0_i32_0 : i32, i32
  }
  func.func @transform_13(%arg0: i32) -> (i32, i32) {
    %c0_i32 = arith.constant 0 : i32
    %c0_i32_0 = arith.constant 0 : i32
    %c0_i32_1 = arith.constant 0 : i32
    return %c0_i32, %c0_i32_0 : i32, i32
  }
  func.func @transform_14(%arg0: i32) -> (i32, i32) {
    %c0_i32 = arith.constant 0 : i32
    %c0_i32_0 = arith.constant 0 : i32
    %c0_i32_1 = arith.constant 0 : i32
    return %c0_i32, %c0_i32_0 : i32, i32
  }
  func.func @transform_15(%arg0: i32) -> (i32, i32) {
    %c0_i32 = arith.constant 0 : i32
    %c0_i32_0 = arith.constant 0 : i32
    %c0_i32_1 = arith.constant 0 : i32
    return %c0_i32, %c0_i32_0 : i32, i32
  }
  func.func @transform_16(%arg0: i32) -> (i32, i32) {
    %c0_i32 = arith.constant 0 : i32
    %c0_i32_0 = arith.constant 0 : i32
    %c0_i32_1 = arith.constant 0 : i32
    return %c0_i32, %c0_i32_0 : i32, i32
  }
  func.func @transform_17(%arg0: i32) -> (i32, i32) {
    %c0_i32 = arith.constant 0 : i32
    %c0_i32_0 = arith.constant 0 : i32
    %c0_i32_1 = arith.constant 0 : i32
    return %c0_i32, %c0_i32_0 : i32, i32
  }
  func.func @transform_18(%arg0: i32) -> (i32, i32) {
    %c0_i32 = arith.constant 0 : i32
    %c0_i32_0 = arith.constant 0 : i32
    %c0_i32_1 = arith.constant 0 : i32
    return %c0_i32, %c0_i32_0 : i32, i32
  }
  func.func @transform_19(%arg0: i32) -> (i32, i32) {
    %c0_i32 = arith.constant 0 : i32
    %c0_i32_0 = arith.constant 0 : i32
    %c0_i32_1 = arith.constant 0 : i32
    return %c0_i32, %c0_i32_0 : i32, i32
  }
  func.func @transform_20(%arg0: i32) -> (i32, i32) {
    %c0_i32 = arith.constant 0 : i32
    %c0_i32_0 = arith.constant 0 : i32
    %c0_i32_1 = arith.constant 0 : i32
    return %c0_i32, %c0_i32_0 : i32, i32
  }
  func.func @transform_21(%arg0: i32) -> (i32, i32) {
    %c0_i32 = arith.constant 0 : i32
    %c0_i32_0 = arith.constant 0 : i32
    %c0_i32_1 = arith.constant 0 : i32
    return %c0_i32, %c0_i32_0 : i32, i32
  }
  func.func @transform_22(%arg0: i32) -> (i32, i32) {
    %c0_i32 = arith.constant 0 : i32
    %c0_i32_0 = arith.constant 0 : i32
    %c0_i32_1 = arith.constant 0 : i32
    return %c0_i32, %c0_i32_0 : i32, i32
  }
  func.func @transform_23(%arg0: i32) -> (i32, i32) {
    %c0_i32 = arith.constant 0 : i32
    %c0_i32_0 = arith.constant 0 : i32
    %c0_i32_1 = arith.constant 0 : i32
    return %c0_i32, %c0_i32_0 : i32, i32
  }
}

</mosaic_0001>

<bundles_post_ra>
// kernel: tpu_custom_call.1
= control target key start
LH: loop header
LB: loop body
LE: loop exit
PB: predicated region body
PF: predicated region fallthrough
CT: control target
= control target key end

     0   :  { %s5060_s0 = inlined_call_operand.hbm [shape: f32[8,256], index: 0, kind: input, shape index: {}]   ;;  %s5061_s1 = inlined_call_operand.hbm [shape: f32[16,256], index: 1, kind: input, shape index: {}]   ;;  %s5062_s2 = inlined_call_operand.hbm [shape: f32[8,8], index: 2, kind: input, shape index: {}]   ;;  %s5063_s3 = inlined_call_operand.hbm [shape: bf16[128,384], index: 3, kind: input, shape index: {}]   ;;  %s5064_s4 = inlined_call_operand.vmem [shape: f32[1,384], index: 4, kind: input, shape index: {}]   ;;  %s5065_s5 = inlined_call_operand.hbm [shape: bf16[128,128], index: 5, kind: input, shape index: {}]   ;;  %s5066_s6 = inlined_call_operand.vmem [shape: f32[1,128], index: 6, kind: input, shape index: {}]   ;;  %s5067_s7 = inlined_call_operand.vmem [shape: f32[1,128], index: 7, kind: input, shape index: {}]   ;;  %s5068_s8 = inlined_call_operand.vmem [shape: f32[1,128], index: 8, kind: input, shape index: {}]   ;;  %s5069_s9 = inlined_call_operand.hbm [shape: bf16[128,128], index: 9, kind: input, shape index: {}]   ;;  %s5070_s10 = inlined_call_operand.vmem [shape: f32[1,128], index: 10, kind: input, shape index: {}]   ;;  %s5071_s11 = inlined_call_operand.hbm [shape: bf16[128,256], index: 11, kind: input, shape index: {}]   ;;  %s5072_s12 = inlined_call_operand.vmem [shape: f32[1,256], index: 12, kind: input, shape index: {}]   ;;  %s5073_s13 = inlined_call_operand.hbm [shape: bf16[128,128], index: 13, kind: input, shape index: {}]   ;;  %s5074_s14 = inlined_call_operand.vmem [shape: f32[1,128], index: 14, kind: input, shape index: {}]   ;;  %s5075_s15 = inlined_call_operand.vmem [shape: f32[1,128], index: 15, kind: input, shape index: {}]   ;;  %s5076_s16 = inlined_call_operand.vmem [shape: f32[1,128], index: 16, kind: input, shape index: {}]   ;;  %s5077_s17 = inlined_call_operand.hbm [shape: bf16[128,256], index: 17, kind: input, shape index: {}]   ;;  %s5078_s18 = inlined_call_operand.vmem [shape: f32[1,256], index: 18, kind: input, shape index: {}]   ;;  %s5079_s19 = inlined_call_operand.hbm [shape: bf16[256,128], index: 19, kind: input, shape index: {}]   ;;  %s5080_s20 = inlined_call_operand.vmem [shape: f32[1,128], index: 20, kind: input, shape index: {}]   ;;  %s5081_s21 = inlined_call_operand.vmem [shape: f32[1,128], index: 21, kind: input, shape index: {}]   ;;  %s5082_s22 = inlined_call_operand.vmem [shape: f32[1,128], index: 22, kind: input, shape index: {}]   ;;  %s5083_s23 = inlined_call_operand.hbm [shape: f32[8,256], index: 23, kind: output, shape index: {}]  }
   0x1   :  { %5090 = sst [smem:[#allocation27_spill]] %s5060_s0 }
   0x2   :  { %5091 = sst [smem:[#allocation28_spill]] %s5061_s1 }
   0x3   :  { %5092 = sst [smem:[#allocation29_spill]] %s5062_s2 }
   0x4   :  { %5093 = sst [smem:[#allocation30_spill]] %s5063_s3 }
   0x5   :  { %5094 = sst [smem:[#allocation31_spill]] %s5064_s4 }
   0x6   :  { %5095 = sst [smem:[#allocation32_spill]] %s5065_s5 }
   0x7   :  { %5096 = sst [smem:[#allocation33_spill]] %s5066_s6 }
   0x8   :  { %5097 = sst [smem:[#allocation34_spill]] %s5067_s7 }
   0x9   :  { %5098 = sst [smem:[#allocation35_spill]] %s5082_s22 }
   0xa   :  { %5099 = sst [smem:[#allocation36_spill]] %s5083_s23 }
   0xb   :  { %28 = vsyncpa [#allocation3], 0 }
   0xc   :  { %29 = vsyncpa [#allocation6], 0 }
   0xd   :  { %30 = vsyncpa [#allocation9], 0 }
   0xe   :  { %31 = vsyncpa [#allocation12], 0 }
   0xf   :  { %32 = vsyncpa [#allocation15], 0 }
  0x10   :  { %33 = vsyncpa [#allocation18], 0 }
  0x11   :  { %34 = vsyncpa [#allocation4], 0  ;;  %s4306_s4 = smov [#allocation5]   ;;  %s5100_s5 = sld [smem:[#allocation28_spill]] }
  0x12   :  { %s50_s30 = sshll.u32 %s4306_s4, 4  ;;  %s51_s30 = int_to_ptr.vmem [resolvable:$true] %s50_s30 }
  0x17   :  { %s4050_s1 = scalar_lea.hbm %s5100_s5, 512 }
  0x18   :  { %p4051_p0 = scmp.ne.s32.totalorder %s5100_s5, %s4050_s1  ;;  %p4054_p1 = scmp.lt.u32.totalorder %s4050_s1, %s5100_s5 }
  0x1a   :  { %p4056_p2 = pnand %p4054_p1, %p4051_p0 }
  0x1c   :  { %4059 = shalt.err (!%p4056_p2)
}
  0x1d   :  { %s4060_s7 = scalar_lea.vmem %s51_s30, 512  ;;  %p4065_p4 = scmp.lt.s32.totalorder %s51_s30, %s51_s30 }
  0x1e   :  { %p4061_p3 = scmp.ne.s32.totalorder %s51_s30, %s4060_s7  ;;  %p4066_p5 = scmp.lt.s32.totalorder %s4060_s7, %s4060_s7 }
  0x20   :  { %p4067_p6 = por %p4066_p5, %p4065_p4 }
  0x22   :  { %p4068_p7 = pnand %p4067_p6, %p4061_p3 }
  0x24   :  { %4071 = shalt.err (!%p4068_p7)
}
  0x25   :  { %s4307_s28 = smov 256   ;;  %s4308_s29 = smov 16  }
  0x26   :  { %56 = dma.hbm_to_vmem [thread:$0]  %s5100_s5, 512, %s51_s30, [#allocation6], %s4307_s28, %s4307_s28, %s4308_s29  }
  0x27   :  { %s4309_s4 = smov [#allocation8]   ;;  %s5101_s26 = sld [smem:[#allocation30_spill]] }
  0x28   :  { %s72_s24 = sshll.u32 %s4309_s4, 4  ;;  %s73_s24 = int_to_ptr.vmem [resolvable:$true] %s72_s24 }
  0x2d   :  { %s4072_s2 = scalar_lea.hbm %s5101_s26, 3072 }
  0x2e   :  { %p4073_p8 = scmp.ne.s32.totalorder %s5101_s26, %s4072_s2  ;;  %p4076_p9 = scmp.lt.u32.totalorder %s4072_s2, %s5101_s26 }
  0x30   :  { %p4078_p10 = pnand %p4076_p9, %p4073_p8 }
  0x32   :  { %4081 = shalt.err (!%p4078_p10)
}
  0x33   :  { %s4082_s22 = scalar_lea.vmem %s73_s24, 3072  ;;  %p4087_p12 = scmp.lt.s32.totalorder %s73_s24, %s73_s24 }
  0x34   :  { %p4083_p11 = scmp.ne.s32.totalorder %s73_s24, %s4082_s22  ;;  %p4088_p13 = scmp.lt.s32.totalorder %s4082_s22, %s4082_s22 }
  0x36   :  { %p4089_p0 = por %p4088_p13, %p4087_p12 }
  0x38   :  { %p4090_p1 = pnand %p4089_p0, %p4083_p11 }
  0x3a   :  { %4093 = shalt.err (!%p4090_p1)
}
  0x3b   :  { %s4310_s30 = smov 192   ;;  %s4311_s5 = smov 12  }
  0x3c   :  { %78 = dma.hbm_to_vmem [thread:$0]  %s5101_s26, 3072, %s73_s24, [#allocation9], %s4310_s30, %s4310_s30, %s4311_s5  }
  0x3d   :  { %s4312_s3 = smov [#allocation11]   ;;  %s4313_s4 = smov [#allocation14]  }
  0x3e   :  { %s104_s0 = sshll.u32 %s4312_s3, 4  ;;  %s132_s23 = sshll.u32 %s4313_s4, 4  ;;  %s105_s0 = int_to_ptr.vmem [resolvable:$true] %s104_s0  ;;  %s4474_s23 = int_to_ptr.vmem [resolvable:$true] %s132_s23 }
  0x3f   :  { %s4094_s22 = scalar_lea.hbm %s5069_s9, 1024 }
  0x40   :  { %p4095_p2 = scmp.ne.s32.totalorder %s5069_s9, %s4094_s22  ;;  %p4098_p3 = scmp.lt.u32.totalorder %s4094_s22, %s5069_s9 }
  0x42   :  { %p4100_p4 = pnand %p4098_p3, %p4095_p2 }
  0x44   :  { %4103 = shalt.err (!%p4100_p4)
}
  0x45   :  { %s4104_s24 = scalar_lea.vmem %s105_s0, 1024  ;;  %p4109_p6 = scmp.lt.s32.totalorder %s105_s0, %s105_s0 }
  0x46   :  { %p4105_p5 = scmp.ne.s32.totalorder %s105_s0, %s4104_s24  ;;  %p4110_p7 = scmp.lt.s32.totalorder %s4104_s24, %s4104_s24 }
  0x48   :  { %p4111_p8 = por %p4110_p7, %p4109_p6 }
  0x4a   :  { %p4112_p9 = pnand %p4111_p8, %p4105_p5 }
  0x4c   :  { %4115 = shalt.err (!%p4112_p9)
}
  0x4d   :  { %s4314_s26 = smov 64   ;;  %s4315_s30 = smov 4  }
  0x4e   :  { %110 = dma.hbm_to_vmem [thread:$0]  %s5069_s9, 1024, %s105_s0, [#allocation12], %s4314_s26, %s4314_s26, %s4315_s30  }
  0x4f   :  { %s4116_s4 = scalar_lea.hbm %s5073_s13, 1024 }
  0x50   :  { %p4117_p10 = scmp.ne.s32.totalorder %s5073_s13, %s4116_s4  ;;  %p4120_p11 = scmp.lt.u32.totalorder %s4116_s4, %s5073_s13 }
  0x52   :  { %p4122_p12 = pnand %p4120_p11, %p4117_p10 }
  0x54   :  { %4125 = shalt.err (!%p4122_p12)
}
  0x55   :  { %s4126_s6 = scalar_lea.vmem %s4474_s23, 1024  ;;  %p4131_p0 = scmp.lt.s32.totalorder %s4474_s23, %s4474_s23 }
  0x56   :  { %p4127_p13 = scmp.ne.s32.totalorder %s4474_s23, %s4126_s6  ;;  %p4132_p1 = scmp.lt.s32.totalorder %s4126_s6, %s4126_s6 }
  0x58   :  { %p4133_p2 = por %p4132_p1, %p4131_p0 }
  0x5a   :  { %p4134_p3 = pnand %p4133_p2, %p4127_p13 }
  0x5c   :  { %4137 = shalt.err (!%p4134_p3)
}
  0x5d   :  { %138 = dma.hbm_to_vmem [thread:$0]  %s5073_s13, 1024, %s4474_s23, [#allocation15], %s4314_s26, %s4314_s26, %s4315_s30  }
  0x5e   :  { %s4316_s27 = smov [#allocation2]   ;;  %s4317_s24 = smov [#allocation7]  }
  0x5f   :  { %s41_s7 = sshll.u32 %s4316_s27, 4  ;;  %s63_s5 = sshll.u32 %s4317_s24, 4  ;;  %s42_s7 = int_to_ptr.vmem [resolvable:$true] %s41_s7  ;;  %s64_s5 = int_to_ptr.vmem [resolvable:$true] %s63_s5 }
  0x60   :  { %s5102_s3 = sld [smem:[#allocation27_spill]] }
  0x66   :  { %s4138_s4 = scalar_lea.hbm %s5102_s3, 256 }
  0x67   :  { %p4139_p4 = scmp.ne.s32.totalorder %s5102_s3, %s4138_s4  ;;  %p4142_p5 = scmp.lt.u32.totalorder %s4138_s4, %s5102_s3 }
  0x69   :  { %p4144_p6 = pnand %p4142_p5, %p4139_p4 }
  0x6b   :  { %4147 = shalt.err (!%p4144_p6)
}
  0x6c   :  { %s4148_s13 = scalar_lea.vmem %s42_s7, 256  ;;  %p4153_p8 = scmp.lt.s32.totalorder %s42_s7, %s42_s7 }
  0x6d   :  { %p4149_p7 = scmp.ne.s32.totalorder %s42_s7, %s4148_s13  ;;  %p4154_p9 = scmp.lt.s32.totalorder %s4148_s13, %s4148_s13 }
  0x6f   :  { %p4155_p10 = por %p4154_p9, %p4153_p8 }
  0x71   :  { %p4156_p11 = pnand %p4155_p10, %p4149_p7 }
  0x73   :  { %4159 = shalt.err (!%p4156_p11)
}
  0x74   :  { %44 = dma.hbm_to_vmem [thread:$0]  %s5102_s3, 256, %s42_s7, [#allocation3]  }
  0x75   :  { %s5103_s27 = sld [smem:[#allocation29_spill]] }
  0x7b   :  { %s4160_s24 = scalar_lea.hbm %s5103_s27, 128 }
  0x7c   :  { %p4161_p12 = scmp.ne.s32.totalorder %s5103_s27, %s4160_s24  ;;  %p4164_p13 = scmp.lt.u32.totalorder %s4160_s24, %s5103_s27 }
  0x7e   :  { %p4166_p0 = pnand %p4164_p13, %p4161_p12 }
  0x80   :  { %4169 = shalt.err (!%p4166_p0)
}
  0x81   :  { %s4170_s1 = scalar_lea.vmem %s64_s5, 128  ;;  %p4175_p2 = scmp.lt.s32.totalorder %s64_s5, %s64_s5 }
  0x82   :  { %p4171_p1 = scmp.ne.s32.totalorder %s64_s5, %s4170_s1  ;;  %p4176_p3 = scmp.lt.s32.totalorder %s4170_s1, %s4170_s1 }
  0x84   :  { %p4177_p4 = por %p4176_p3, %p4175_p2 }
  0x86   :  { %p4178_p5 = pnand %p4177_p4, %p4171_p1 }
  0x88   :  { %4181 = shalt.err (!%p4178_p5)
}
  0x89   :  { %66 = dma.hbm_to_vmem [thread:$0]  %s5103_s27, 128, %s64_s5, [#allocation6]  }
  0x8a   :  { %s4318_s22 = smov [#allocation10]   ;;  %s4319_s13 = smov [#allocation13]  }
  0x8b   :  { %s86_s2 = sshll.u32 %s4318_s22, 4  ;;  %s118_s23 = sshll.u32 %s4319_s13, 4  ;;  %s87_s2 = int_to_ptr.vmem [resolvable:$true] %s86_s2  ;;  %s4535_s23 = int_to_ptr.vmem [resolvable:$true] %s118_s23 }
  0x8c   :  { %s5104_s0 = sld [smem:[#allocation32_spill]] }
  0x92   :  { %s4182_s24 = scalar_lea.hbm %s5104_s0, 1024 }
  0x93   :  { %p4183_p6 = scmp.ne.s32.totalorder %s5104_s0, %s4182_s24  ;;  %p4186_p7 = scmp.lt.u32.totalorder %s4182_s24, %s5104_s0 }
  0x95   :  { %p4188_p8 = pnand %p4186_p7, %p4183_p6 }
  0x97   :  { %4191 = shalt.err (!%p4188_p8)
}
  0x98   :  { %s4192_s5 = scalar_lea.vmem %s87_s2, 1024  ;;  %p4197_p10 = scmp.lt.s32.totalorder %s87_s2, %s87_s2 }
  0x99   :  { %p4193_p9 = scmp.ne.s32.totalorder %s87_s2, %s4192_s5  ;;  %p4198_p11 = scmp.lt.s32.totalorder %s4192_s5, %s4192_s5 }
  0x9b   :  { %p4199_p12 = por %p4198_p11, %p4197_p10 }
  0x9d   :  { %p4200_p13 = pnand %p4199_p12, %p4193_p9 }
  0x9f   :  { %4203 = shalt.err (!%p4200_p13)
}
  0xa0   :  { %92 = dma.hbm_to_vmem [thread:$0]  %s5104_s0, 1024, %s87_s2, [#allocation9], %s4314_s26, %s4314_s26, %s4315_s30  }
  0xa1   :  { %s4204_s22 = scalar_lea.hbm %s5071_s11, 2048 }
  0xa2   :  { %p4205_p0 = scmp.ne.s32.totalorder %s5071_s11, %s4204_s22  ;;  %p4208_p1 = scmp.lt.u32.totalorder %s4204_s22, %s5071_s11 }
  0xa4   :  { %p4210_p2 = pnand %p4208_p1, %p4205_p0 }
  0xa6   :  { %4213 = shalt.err (!%p4210_p2)
}
  0xa7   :  { %s4214_s28 = scalar_lea.vmem %s4535_s23, 2048  ;;  %p4219_p4 = scmp.lt.s32.totalorder %s4535_s23, %s4535_s23 }
  0xa8   :  { %p4215_p3 = scmp.ne.s32.totalorder %s4535_s23, %s4214_s28  ;;  %p4220_p5 = scmp.lt.s32.totalorder %s4214_s28, %s4214_s28 }
  0xaa   :  { %p4221_p6 = por %p4220_p5, %p4219_p4 }
  0xac   :  { %p4222_p7 = pnand %p4221_p6, %p4215_p3 }
  0xae   :  { %4225 = shalt.err (!%p4222_p7)
}
  0xaf   :  { %s4320_s2 = smov 128   ;;  %s4321_s0 = smov 8  }
  0xb0   :  { %124 = dma.hbm_to_vmem [thread:$0]  %s5071_s11, 2048, %s4535_s23, [#allocation12], %s4320_s2, %s4320_s2, %s4321_s0  }
  0xb1   :  { %s4322_s25 = smov [#allocation16]   ;;  %s4323_s27 = smov [#allocation17]  }
  0xb2   :  { %s150_s5 = sshll.u32 %s4322_s25, 4  ;;  %s164_s1 = sshll.u32 %s4323_s27, 4  ;;  %s151_s5 = int_to_ptr.vmem [resolvable:$true] %s150_s5  ;;  %s4569_s1 = int_to_ptr.vmem [resolvable:$true] %s164_s1 }
  0xb3   :  { %s4226_s22 = scalar_lea.hbm %s5077_s17, 2048 }
  0xb4   :  { %p4227_p8 = scmp.ne.s32.totalorder %s5077_s17, %s4226_s22  ;;  %p4230_p9 = scmp.lt.u32.totalorder %s4226_s22, %s5077_s17 }
  0xb6   :  { %p4232_p10 = pnand %p4230_p9, %p4227_p8 }
  0xb8   :  { %4235 = shalt.err (!%p4232_p10)
}
  0xb9   :  { %s4236_s11 = scalar_lea.vmem %s151_s5, 2048  ;;  %p4241_p12 = scmp.lt.s32.totalorder %s151_s5, %s151_s5 }
  0xba   :  { %p4237_p11 = scmp.ne.s32.totalorder %s151_s5, %s4236_s11  ;;  %p4242_p13 = scmp.lt.s32.totalorder %s4236_s11, %s4236_s11 }
  0xbc   :  { %p4243_p0 = por %p4242_p13, %p4241_p12 }
  0xbe   :  { %p4244_p1 = pnand %p4243_p0, %p4237_p11 }
  0xc0   :  { %4247 = shalt.err (!%p4244_p1)
}
  0xc1   :  { %156 = dma.hbm_to_vmem [thread:$0]  %s5077_s17, 2048, %s151_s5, [#allocation15], %s4320_s2, %s4320_s2, %s4321_s0  }
  0xc2   :  { %s4248_s25 = scalar_lea.hbm %s5079_s19, 2048 }
  0xc3   :  { %p4249_p2 = scmp.ne.s32.totalorder %s5079_s19, %s4248_s25  ;;  %p4252_p3 = scmp.lt.u32.totalorder %s4248_s25, %s5079_s19 }
  0xc5   :  { %p4254_p4 = pnand %p4252_p3, %p4249_p2 }
  0xc7   :  { %4257 = shalt.err (!%p4254_p4)
}
  0xc8   :  { %s4258_s13 = scalar_lea.vmem %s4569_s1, 2048  ;;  %p4263_p6 = scmp.lt.s32.totalorder %s4569_s1, %s4569_s1 }
  0xc9   :  { %p4259_p5 = scmp.ne.s32.totalorder %s4569_s1, %s4258_s13  ;;  %p4264_p7 = scmp.lt.s32.totalorder %s4258_s13, %s4258_s13 }
  0xcb   :  { %p4265_p8 = por %p4264_p7, %p4263_p6 }
  0xcd   :  { %p4266_p9 = pnand %p4265_p8, %p4259_p5 }
  0xcf   :  { %4269 = shalt.err (!%p4266_p9)
}
  0xd0   :  { %170 = dma.hbm_to_vmem [thread:$0]  %s5079_s19, 2048, %s4569_s1, [#allocation18], %s4314_s26, %s4314_s26, %s4315_s30  }
  0xd1   :  { %4292 = dma.done.wait [#allocation3], 256  }
  0xd2   :  { %4293 = vsyncadd [#allocation3], 4294967040 }
  0xd3   :  { %4294 = dma.done.wait [#allocation6], 640  }
  0xd4   :  { %4295 = vsyncadd [#allocation6], 4294966656 }
  0xd5   :  { %4296 = dma.done.wait [#allocation9], 4096  }
  0xd6   :  { %4297 = vsyncadd [#allocation9], 4294963200 }
  0xd7   :  { %4298 = dma.done.wait [#allocation12], 3072  }
  0xd8   :  { %4299 = vsyncadd [#allocation12], 4294964224 }
  0xd9   :  { %4300 = dma.done.wait [#allocation15], 3072  }
  0xda   :  { %4301 = vsyncadd [#allocation15], 4294964224 }
  0xdb   :  { %4302 = dma.done.wait [#allocation18], 2048  }
  0xdc   :  { %4303 = vsyncadd [#allocation18], 4294965248  ;;  %v4324_v0 = vmov 0   ;;  %v3852_v1 = vld [vmem:[#allocation8 + $0x4] ss:$12 sps:$4 sm:$0xff]   ;;  %v208_v17 = vld [vmem:[#allocation2] sm:$0xff]  ;;  %v250_v29 = vlaneseq }
  0xdd   :  { %425 = vmatprep.mubr.bf16.mxu0 %v4324_v0  ;;  %v3854_v2 = vld [vmem:[#allocation8] ss:$12 sps:$4 sm:$0xff]   ;;  %393 = vmatprep.subr.bf16.mxu0 %v3852_v1  ;;  %v3855_v3 = vld [vmem:[#allocation8 + $0x1c] ss:$12 sps:$4 sm:$0xff]   ;;  %v3857_v4 = vld [vmem:[#allocation8 + $0x18] ss:$12 sps:$4 sm:$0xff]  }
  0xde   :  { %394 = vmatpush1.bf16.msra.mxu0 %v3854_v2  ;;  %v3858_v5 = vld [vmem:[#allocation8 + $0x34] ss:$12 sps:$4 sm:$0xff]   ;;  %v3860_v6 = vld [vmem:[#allocation8 + $0x30] ss:$12 sps:$4 sm:$0xff]   ;;  %v3861_v7 = vld [vmem:[#allocation8 + $0x4c] ss:$12 sps:$4 sm:$0xff]  }
  0xdf   :  { %395 = vmatprep.subr.bf16.mxu0 %v3855_v3  ;;  %v3863_v8 = vld [vmem:[#allocation8 + $0x48] ss:$12 sps:$4 sm:$0xff]   ;;  %v3864_v9 = vld [vmem:[#allocation8 + $0x64] ss:$12 sps:$4 sm:$0xff]   ;;  %v3866_v10 = vld [vmem:[#allocation8 + $0x60] ss:$12 sps:$4 sm:$0xff]  }
  0xe0   :  { %v3867_v11 = vld [vmem:[#allocation8 + $0x7c] ss:$12 sps:$4 sm:$0xff]   ;;  %v3869_v12 = vld [vmem:[#allocation8 + $0x78] ss:$12 sps:$4 sm:$0xff]   ;;  %v3870_v13 = vld [vmem:[#allocation8 + $0x94] ss:$12 sps:$4 sm:$0xff]  }
  0xe1   :  { %v3872_v14 = vld [vmem:[#allocation8 + $0x90] ss:$12 sps:$4 sm:$0xff]   ;;  %v3873_v15 = vld [vmem:[#allocation8 + $0xac] ss:$12 sps:$4 sm:$0xff]   ;;  %v3875_v16 = vld [vmem:[#allocation8 + $0xa8] ss:$12 sps:$4 sm:$0xff]  }
  0xe2   :  { %396 = vmatpush1.bf16.msra.mxu0 %v3857_v4  ;;  %v209_v18 = vld [vmem:[#allocation2 + $0x8] sm:$0xff]  ;;  %v4325_v20 = vmov 0.0   ;;  %vm4326_vm0 = vmmov 0   ;;  %v3877_v22 = vld [vmem:[#allocation8 + $0x20] ss:$12 sps:$4 sm:$0xff]   ;;  %v4620_v30 = vshrl.u32 %v250_v29, 7 }
  0xe3   :  { %397 = vmatprep.subr.bf16.mxu0 %v3858_v5  ;;  %v247_v19 = vpack.c.bf16 %v209_v18, %v208_v17  ;;  %3526 = vmatprep.subr.bf16.mxu1 %v4325_v20  ;;  %v3876_v21 = vld [vmem:[#allocation8 + $0x8] ss:$12 sps:$4 sm:$0xff]   ;;  %v3878_v23 = vld [vmem:[#allocation8 + $0x38] ss:$12 sps:$4 sm:$0xff]   ;;  %v3879_v24 = vld [vmem:[#allocation8 + $0x50] ss:$12 sps:$4 sm:$0xff]  }
  0xe4   :  { %3542 = vmatprep.mubr.msk.bf16.mxu1 %vm4326_vm0, %v4325_v20  ;;  %3527 = vmatpush3.bf16.msra.mxu1 %v3876_v21  ;;  %v3880_v25 = vld [vmem:[#allocation8 + $0x68] ss:$12 sps:$4 sm:$0xff]   ;;  %v3881_v26 = vld [vmem:[#allocation8 + $0x80] ss:$12 sps:$4 sm:$0xff]   ;;  %v3882_v27 = vld [vmem:[#allocation8 + $0x98] ss:$12 sps:$4 sm:$0xff]  }
  0xe5   :  { %3528 = vmatprep.subr.bf16.mxu1 %v4325_v20  ;;  %v3883_v28 = vld [vmem:[#allocation8 + $0xb0] ss:$12 sps:$4 sm:$0xff]   ;;  %v4623_v31 = vsub.s32 0, %v4620_v30  ;;  %s5105_s0 = sld [smem:[#allocation31_spill]]  ;;  %v4631_v33 = vsub.s32 1, %v4620_v30  ;;  %vm522_vm1 = vcmask 261120  }
  0xe6   :  { %398 = vmatpush1.bf16.msra.mxu0 %v3860_v6  ;;  %s4327_s5 = smov 96   ;;  %s4328_s1 = smov 32   ;;  %vm991_vm2 = vcmask 1043456   ;;  %vm891_vm3 = vcmask 64512   ;;  %vm1370_vm4 = vcmask 523264   ;;  %vm1372_vm5 = vcmask 785408  }
  0xe7   :  { %399 = vmatprep.subr.bf16.mxu0 %v3861_v7  ;;  %v260_v7 = vsub.s32 2, %v4620_v30  ;;  %s5106_s24 = sld [smem:[#allocation33_spill]]  ;;  %s5107_s28 = sld [smem:[#allocation34_spill]]  ;;  %vm2242_vm6 = vcmask 130048  }
  0xe8   :  { %3529 = vmatpush3.bf16.msra.mxu1 %v3877_v22  ;;  %s5108_s30 = sld [smem:[#allocation35_spill]] }
  0xe9   :  { %3530 = vmatprep.subr.bf16.mxu1 %v4325_v20 }
  0xea   :  { %400 = vmatpush1.bf16.msra.mxu0 %v3863_v8 }
  0xeb   :  { %401 = vmatprep.subr.bf16.mxu0 %v3864_v9  ;;  %v4628_v32 = vld [vmem:[%s5105_s0] sm:$0x7]  ;;  %s4329_s0 = smov [#allocation19]  }
  0xec   :  { %3531 = vmatpush3.bf16.msra.mxu1 %v3878_v23  ;;  %v253_v34 = vrot.slane %v4628_v32, %v4623_v31  ;;  %v257_v36 = vrot.slane %v4628_v32, %v4631_v33  ;;  %v261_v8 = vrot.slane %v4628_v32, %v260_v7 }
  0xed   :  { %3532 = vmatprep.subr.bf16.mxu1 %v4325_v20 }
  0xee   :  { %402 = vmatpush1.bf16.msra.mxu0 %v3866_v10 }
  0xef   :  { %403 = vmatprep.subr.bf16.mxu0 %v3867_v11 }
  0xf0   :  { %3533 = vmatpush3.bf16.msra.mxu1 %v3879_v24 }
  0xf1   :  { %3534 = vmatprep.subr.bf16.mxu1 %v4325_v20 }
  0xf2   :  { %404 = vmatpush1.bf16.msra.mxu0 %v3869_v12 }
  0xf3   :  { %405 = vmatprep.subr.bf16.mxu0 %v3870_v13 }
  0xf4   :  { %3535 = vmatpush3.bf16.msra.mxu1 %v3880_v25 }
  0xf5   :  { %3536 = vmatprep.subr.bf16.mxu1 %v4325_v20 }
  0xf6   :  { %406 = vmatpush1.bf16.msra.mxu0 %v3872_v14 }
  0xf7   :  { %407 = vmatprep.subr.bf16.mxu0 %v3873_v15  ;;  %v214_v15 = vld [vmem:[#allocation7] sm:$0xff] }
  0xf8   :  { %3537 = vmatpush3.bf16.msra.mxu1 %v3881_v26 }
  0xf9   :  { %3538 = vmatprep.subr.bf16.mxu1 %v4325_v20 }
  0xfa   :  { %408 = vmatpush1.bf16.msra.mxu0 %v3875_v16 }
  0xfb   :  { %3546 = vmatprep.subr.bf16.mxu0 %v4325_v20 }
  0xfc   :  { %3539 = vmatpush3.bf16.msra.mxu1 %v3882_v27 }
  0xfd   :  { %426 = vmatmul.mubr.bf16.vlgmr.msra.gmra.mrb[0].mxu0 %v247_v19  ;;  %3540 = vmatprep.subr.bf16.mxu1 %v4325_v20 }
  0xfe   :  { %3548 = vmatprep.mubr.msk.bf16.mxu0 %vm4326_vm0, %v4325_v20 }
 0x100   :  { %3541 = vmatpush3.bf16.msra.mxu1 %v3883_v28 }
 0x101   :  { %3564 = vmatprep.subr.bf16.mxu1 %v4325_v20 }
 0x103   :  { %3543 = vmatmul.mubr.bf16.vlgmr.msra.gmra.mrb[0].mxu1 %v247_v19 }
 0x104   :  { %3566 = vmatprep.mubr.msk.bf16.mxu1 %vm4326_vm0, %v4325_v20 }
 0x1d0   :  { %v427_v35 = vpop.f32.mrb[0].mxu0 }
 0x1d1   :  { %v429_v37 = vpop.f32.mrb[1].mxu0  ;;  %v428_v39 = vadd.f32 %v427_v35, %v253_v34 }
 0x1d2   :  { %v431_v38 = vpop.f32.mrb[2].mxu0  ;;  %v430_v42 = vadd.f32 %v429_v37, %v257_v36 }
 0x1d3   :  { %v432_v40 = vadd.f32 %v431_v38, %v253_v34  ;;  %v433_v41 = vpop.f32.mrb[3].mxu0 }
 0x1d4   :  { %v434_v43 = vadd.f32 %v433_v41, %v257_v36 }
 0x1d5   :  { %v477_v44 = vpack.c.bf16 %v432_v40, %v428_v39 }
 0x1d6   :  { %v478_v45 = vpack.c.bf16 %v434_v43, %v430_v42  ;;  %v470_v2 = vpop.f32.mrb[0].mxu1 }
 0x1d7   :  { %v487_v48 = vrot.slane %v477_v44, 4  ;;  %v3544_v3 = vpop.f32.mrb[1].mxu1  ;;  %v471_v9 = vadd.f32 %v470_v2, %v261_v8 }
 0x1d8   :  { %497 = vrot.lane.b32.xlu1 %v478_v45, %s4314_s26  ;;  %495 = vrot.lane.b32.xlu0 %v478_v45, %s4327_s5  ;;  %v527_v46 = vsel %vm522_vm1, %v478_v45, 0  ;;  %v501_v47 = vrot.slane %v478_v45, 4  ;;  %v473_v10 = vpop.f32.mrb[2].mxu1 }
 0x1d9   :  { %3547 = vmatpush3.bf16.xpose.msra.mxu0 %v527_v46  ;;  %v474_v11 = vadd.f32 %v473_v10, %v261_v8  ;;  %v3545_v12 = vpop.f32.mrb[3].mxu1 }
 0x1da   :  { %3552 = vmatprep.subr.bf16.mxu0 %v4325_v20  ;;  %v711_v61 = vsel %vm522_vm1, %v501_v47, 0 }
 0x1db   :  { %v4691_v13 = vpack.c.bf16 %v474_v11, %v471_v9 }
 0x1dc   :  { %499 = vrot.lane.b32.xlu1 %v478_v45, %s4328_s1  ;;  %481 = vrot.lane.b32.xlu0 %v477_v44, %s4327_s5 }
 0x1dd   :  { %v993_v14 = vsel %vm991_vm2, %v4691_v13, 0  ;;  %v4719_v9 = vrot.slane %v4691_v13, 4 }
 0x1e0   :  { %485 = vrot.lane.b32.xlu1 %v477_v44, %s4328_s1  ;;  %483 = vrot.lane.b32.xlu0 %v477_v44, %s4314_s26 }
 0x1e1   :  { %3549 = vmatmul.mubr.msk.bf16.vlgmr.msra.gmra.mrb[4].mxu0 %vm522_vm1, %v477_v44 }
 0x1e2   :  { %3554 = vmatprep.mubr.msk.bf16.mxu0 %vm4326_vm0, %v4325_v20 }
 0x1e4   :  { %504 = vrot.lane.b32.xlu1 %v501_v47, %s4314_s26  ;;  %502 = vrot.lane.b32.xlu0 %v501_v47, %s4327_s5 }
 0x1e8   :  { %506 = vrot.lane.b32.xlu1 %v501_v47, %s4328_s1  ;;  %488 = vrot.lane.b32.xlu0 %v487_v48, %s4327_s5 }
 0x1ec   :  { %492 = vrot.lane.b32.xlu1 %v487_v48, %s4328_s1  ;;  %490 = vrot.lane.b32.xlu0 %v487_v48, %s4314_s26 }
 0x24a   :  { %v498_v49 = vpop.permute.xlu1 %497  ;;  %v496_v50 = vpop.permute.xlu0 %495 }
 0x24b   :  { %v573_v51 = vsel %vm522_vm1, %v496_v50, 0  ;;  %v619_v57 = vsel %vm522_vm1, %v498_v49, 0 }
 0x24c   :  { %3553 = vmatpush3.bf16.xpose.msra.mxu0 %v573_v51 }
 0x24d   :  { %3558 = vmatprep.subr.bf16.mxu0 %v4325_v20 }
 0x24e   :  { %v500_v52 = vpop.permute.xlu1 %499  ;;  %v482_v53 = vpop.permute.xlu0 %481 }
 0x24f   :  { %v665_v54 = vsel %vm522_vm1, %v500_v52, 0 }
 0x250   :  { %3565 = vmatpush3.bf16.xpose.msra.mxu1 %v665_v54 }
 0x251   :  { %3576 = vmatprep.subr.bf16.mxu1 %v4325_v20 }
 0x252   :  { %v486_v55 = vpop.permute.xlu1 %485  ;;  %v484_v56 = vpop.permute.xlu0 %483 }
 0x253   :  { %3555 = vmatmul.mubr.msk.bf16.vlgmr.msra.gmra.mrb[8].mxu0 %vm522_vm1, %v482_v53 }
 0x254   :  { %3559 = vmatpush3.bf16.xpose.msra.mxu0 %v619_v57  ;;  %3560 = vmatprep.mubr.msk.bf16.mxu0 %vm4326_vm0, %v4325_v20 }
 0x255   :  { %3570 = vmatprep.subr.bf16.mxu0 %v4325_v20 }
 0x256   :  { %v505_v58 = vpop.permute.xlu1 %504  ;;  %v503_v59 = vpop.permute.xlu0 %502 }
 0x257   :  { %v757_v60 = vsel %vm522_vm1, %v503_v59, 0  ;;  %3567 = vmatmul.mubr.msk.bf16.vlgmr.msra.gmra.mrb[4].mxu1 %vm522_vm1, %v486_v55  ;;  %v803_v4 = vsel %vm522_vm1, %v505_v58, 0 }
 0x258   :  { %3577 = vmatpush3.bf16.xpose.msra.mxu1 %v757_v60  ;;  %3578 = vmatprep.mubr.msk.bf16.mxu1 %vm4326_vm0, %v4325_v20 }
 0x259   :  { %3588 = vmatprep.subr.bf16.mxu1 %v4325_v20 }
 0x25a   :  { %v507_v62 = vpop.permute.xlu1 %506  ;;  %v489_v63 = vpop.permute.xlu0 %488 }
 0x25b   :  { %3561 = vmatmul.mubr.msk.bf16.vlgmr.msra.gmra.mrb[12].mxu0 %vm522_vm1, %v484_v56  ;;  %v849_v1 = vsel %vm522_vm1, %v507_v62, 0 }
 0x25c   :  { %3571 = vmatpush3.bf16.xpose.msra.mxu0 %v711_v61  ;;  %3572 = vmatprep.mubr.msk.bf16.mxu0 %vm4326_vm0, %v4325_v20 }
 0x25d   :  { %3582 = vmatprep.subr.bf16.mxu0 %v4325_v20 }
 0x25e   :  { %v493_v5 = vpop.permute.xlu1 %492  ;;  %v491_v6 = vpop.permute.xlu0 %490 }
 0x25f   :  { %3579 = vmatmul.mubr.msk.bf16.vlgmr.msra.gmra.mrb[8].mxu1 %vm522_vm1, %v489_v63 }
 0x260   :  { %3589 = vmatpush3.bf16.xpose.msra.mxu1 %v849_v1  ;;  %3590 = vmatprep.mubr.msk.bf16.mxu1 %vm4326_vm0, %v4325_v20 }
 0x261   :  { %3600 = vmatprep.subr.bf16.mxu1 %v4325_v20 }
 0x263   :  { %3573 = vmatmul.mubr.msk.bf16.vlgmr.msra.gmra.mrb[16].mxu0 %vm522_vm1, %v487_v48 }
 0x264   :  { %3583 = vmatpush3.bf16.xpose.msra.mxu0 %v803_v4  ;;  %3584 = vmatprep.mubr.msk.bf16.mxu0 %vm4326_vm0, %v4325_v20 }
 0x265   :  { %3594 = vmatprep.subr.bf16.mxu0 %v4325_v20 }
 0x267   :  { %3591 = vmatmul.mubr.msk.bf16.vlgmr.msra.gmra.mrb[12].mxu1 %vm522_vm1, %v493_v5 }
 0x268   :  { %3602 = vmatprep.mubr.msk.bf16.mxu1 %vm4326_vm0, %v4325_v20 }
 0x26b   :  { %3585 = vmatmul.mubr.msk.bf16.vlgmr.msra.gmra.mrb[20].mxu0 %vm522_vm1, %v491_v6 }
 0x26c   :  { %3596 = vmatprep.mubr.msk.bf16.mxu0 %vm4326_vm0, %v4325_v20  ;;  %3595 = vmatpush3.bf16.msra.mxu0 %v993_v14 }
 0x26d   :  { %3606 = vmatprep.subr.bf16.mxu0 %v4325_v20 }
 0x2b4   :  { %v563_v16 = vpop.f32.mrb[4].mxu0 }
 0x2b5   :  { %v564_v17 = vadd.f32 %v563_v16, %v214_v15  ;;  %v3550_v18 = vpop.f32.mrb[5].mxu0 }
 0x2b6   :  { %v566_v19 = vpop.f32.mrb[6].mxu0 }
 0x2b7   :  { %v3551_v21 = vpop.f32.mrb[7].mxu0  ;;  %v892_v22 = vsel %vm891_vm3, %v564_v17, -inf }
 0x2b8   :  { %893 = vmax.xlane.f32.xlu0 %v892_v22 }
 0x326   :  { %v609_v23 = vpop.f32.mrb[8].mxu0 }
 0x327   :  { %v610_v24 = vadd.f32 %v609_v23, %v214_v15  ;;  %v3556_v25 = vpop.f32.mrb[9].mxu0 }
 0x328   :  { %v612_v26 = vpop.f32.mrb[10].mxu0 }
 0x329   :  { %v3557_v27 = vpop.f32.mrb[11].mxu0  ;;  %v895_v28 = vsel %vm891_vm3, %v610_v24, -inf }
 0x32a   :  { %v701_v29 = vpop.f32.mrb[4].mxu1  ;;  %896 = vmax.xlane.f32.xlu1 %v895_v28 }
 0x32b   :  { %v3568_v30 = vpop.f32.mrb[5].mxu1  ;;  %v702_v39 = vadd.f32 %v701_v29, %v214_v15 }
 0x32c   :  { %v704_v32 = vpop.f32.mrb[6].mxu1 }
 0x32d   :  { %v3569_v34 = vpop.f32.mrb[7].mxu1  ;;  %v901_v47 = vsel %vm891_vm3, %v702_v39, -inf }
 0x32e   :  { %v655_v35 = vpop.f32.mrb[12].mxu0 }
 0x32f   :  { %v656_v36 = vadd.f32 %v655_v35, %v214_v15  ;;  %v3562_v37 = vpop.f32.mrb[13].mxu0 }
 0x330   :  { %v658_v38 = vpop.f32.mrb[14].mxu0 }
 0x331   :  { %v3563_v40 = vpop.f32.mrb[15].mxu0  ;;  %v898_v41 = vsel %vm891_vm3, %v656_v36, -inf }
 0x332   :  { %899 = vmax.xlane.f32.xlu0 %v898_v41  ;;  %v793_v42 = vpop.f32.mrb[8].mxu1 }
 0x333   :  { %v3580_v43 = vpop.f32.mrb[9].mxu1  ;;  %v4699_v45 = vadd.f32 %v793_v42, %v214_v15 }
 0x334   :  { %v796_v44 = vpop.f32.mrb[10].mxu1 }
 0x335   :  { %v3581_v46 = vpop.f32.mrb[11].mxu1  ;;  %v907_v53 = vsel %vm891_vm3, %v4699_v45, -inf }
 0x336   :  { %902 = vmax.xlane.f32.xlu0 %v901_v47  ;;  %v747_v48 = vpop.f32.mrb[16].mxu0 }
 0x337   :  { %v748_v49 = vadd.f32 %v747_v48, %v214_v15  ;;  %v3574_v50 = vpop.f32.mrb[17].mxu0 }
 0x338   :  { %v750_v51 = vpop.f32.mrb[18].mxu0 }
 0x339   :  { %v3575_v52 = vpop.f32.mrb[19].mxu0  ;;  %v904_v54 = vsel %vm891_vm3, %v748_v49, -inf }
 0x33a   :  { %908 = vmax.xlane.f32.xlu0 %v907_v53  ;;  %v885_v55 = vpop.f32.mrb[12].mxu1  ;;  %905 = vmax.xlane.f32.xlu1 %v904_v54 }
 0x33b   :  { %v4705_v56 = vadd.f32 %v885_v55, %v214_v15  ;;  %v3592_v57 = vpop.f32.mrb[13].mxu1 }
 0x33c   :  { %v888_v58 = vpop.f32.mrb[14].mxu1 }
 0x33d   :  { %v3593_v59 = vpop.f32.mrb[15].mxu1  ;;  %v913_v60 = vsel %vm891_vm3, %v4705_v56, -inf }
 0x33e   :  { %914 = vmax.xlane.f32.xlu0 %v913_v60  ;;  %v839_v61 = vpop.f32.mrb[20].mxu0 }
 0x33f   :  { %v840_v62 = vadd.f32 %v839_v61, %v214_v15  ;;  %v3586_v63 = vpop.f32.mrb[21].mxu0 }
 0x340   :  { %v842_v1 = vpop.f32.mrb[22].mxu0 }
 0x341   :  { %v3587_v2 = vpop.f32.mrb[23].mxu0  ;;  %v910_v3 = vsel %vm891_vm3, %v840_v62, -inf }
 0x342   :  { %911 = vmax.xlane.f32.xlu1 %v910_v3 }
 0x345   :  { %v894_v4 = vpop.xlane.xlu0 %893 }
 0x346   :  { %v916_v5 = vsub.f32 %v564_v17, %v894_v4 }
 0x348   :  { %v924_v6 = vmul.f32 1.442695, %v916_v5 }
 0x34a   :  { %3972 = vpow2.f32 %v924_v6 }
 0x353   :  { %509 = vrot.lane.b32.xlu1 %v4691_v13, %s4327_s5 }
 0x354   :  { %v4712_v7 = vpop.eup %3972 }
 0x355   :  { %v940_v8 = vsel %vm891_vm3, %v4712_v7, 0.0 }
 0x377   :  { %941 = vadd.xlane.f32.xlu1 %v940_v8  ;;  %v1177_v8 = vsel %vm991_vm2, %v4719_v9, 0 }
 0x388   :  { %513 = vrot.lane.b32.xlu1 %v4691_v13, %s4328_s1 }
 0x38c   :  { %516 = vrot.lane.b32.xlu1 %v4719_v9, %s4327_s5 }
 0x3b7   :  { %v897_v10 = vpop.xlane.xlu1 %896 }
 0x3b8   :  { %v917_v11 = vsub.f32 %v610_v24, %v897_v10 }
 0x3ba   :  { %v926_v12 = vmul.f32 1.442695, %v917_v11 }
 0x3bc   :  { %3974 = vpow2.f32 %v926_v12 }
 0x3bf   :  { %v900_v14 = vpop.xlane.xlu0 %899 }
 0x3c0   :  { %v918_v15 = vsub.f32 %v656_v36, %v900_v14 }
 0x3c2   :  { %v928_v16 = vmul.f32 1.442695, %v918_v15 }
 0x3c3   :  { %v903_v17 = vpop.xlane.xlu0 %902 }
 0x3c4   :  { %3976 = vpow2.f32 %v928_v16  ;;  %v919_v18 = vsub.f32 %v702_v39, %v903_v17 }
 0x3c6   :  { %v3975_v19 = vpop.eup %3974  ;;  %v930_v21 = vmul.f32 1.442695, %v919_v18 }
 0x3c7   :  { %v906_v22 = vpop.xlane.xlu1 %905  ;;  %v943_v23 = vsel %vm891_vm3, %v3975_v19, 0.0  ;;  %v909_v41 = vpop.xlane.xlu0 %908 }
 0x3c8   :  { %3978 = vpow2.f32 %v930_v21  ;;  %v920_v25 = vsub.f32 %v748_v49, %v906_v22  ;;  %944 = vadd.xlane.f32.xlu0 %v943_v23  ;;  %v921_v42 = vsub.f32 %v4699_v45, %v909_v41  ;;  %v3887_v41 = vld [vmem:[#allocation10 + $0x18] sm:$0xff]  }
 0x3ca   :  { %v932_v26 = vmul.f32 1.442695, %v920_v25  ;;  %v934_v44 = vmul.f32 1.442695, %v921_v42 }
 0x3cb   :  { %v915_v43 = vpop.xlane.xlu0 %914 }
 0x3cc   :  { %3980 = vpow2.f32 %v932_v26  ;;  %v923_v46 = vsub.f32 %v4705_v56, %v915_v43 }
 0x3ce   :  { %v4724_v27 = vpop.eup %3976  ;;  %v938_v47 = vmul.f32 1.442695, %v923_v46 }
 0x3cf   :  { %v912_v24 = vpop.xlane.xlu1 %911  ;;  %v946_v28 = vsel %vm891_vm3, %v4724_v27, 0.0 }
 0x3d0   :  { %v922_v29 = vsub.f32 %v840_v62, %v912_v24  ;;  %947 = vadd.xlane.f32.xlu1 %v946_v28 }
 0x3d2   :  { %v4728_v30 = vpop.eup %3978  ;;  %v936_v32 = vmul.f32 1.442695, %v922_v29 }
 0x3d3   :  { %v510_v34 = vpop.permute.xlu1 %509  ;;  %v949_v35 = vsel %vm891_vm3, %v4728_v30, 0.0 }
 0x3d4   :  { %3982 = vpow2.f32 %v936_v32  ;;  %v1039_v36 = vsel %vm991_vm2, %v510_v34, 0  ;;  %950 = vadd.xlane.f32.xlu0 %v949_v35 }
 0x3d5   :  { %3601 = vmatpush3.bf16.msra.mxu1 %v1039_v36  ;;  %3984 = vpow2.f32 %v934_v44 }
 0x3d6   :  { %3612 = vmatprep.subr.bf16.mxu1 %v4325_v20  ;;  %v4734_v37 = vpop.eup %3980  ;;  %3986 = vpow2.f32 %v938_v47 }
 0x3d7   :  { %v952_v38 = vsel %vm891_vm3, %v4734_v37, 0.0 }
 0x3d8   :  { %953 = vadd.xlane.f32.xlu1 %v952_v38  ;;  %v3884_v38 = vld [vmem:[#allocation10] sm:$0xff]  }
 0x3de   :  { %v4738_v39 = vpop.eup %3982 }
 0x3df   :  { %v958_v40 = vsel %vm891_vm3, %v4738_v39, 0.0  ;;  %v4748_v49 = vpop.eup %3984 }
 0x3e0   :  { %959 = vadd.xlane.f32.xlu1 %v958_v40  ;;  %v4752_v50 = vpop.eup %3986  ;;  %v3886_v40 = vld [vmem:[#allocation10 + $0x10] sm:$0xff]  }
 0x3e1   :  { %v961_v45 = vsel %vm891_vm3, %v4752_v50, 0.0 }
 0x3ea   :  { %511 = vrot.lane.b32.xlu0 %v4691_v13, %s4314_s26  ;;  %v955_v13 = vsel %vm891_vm3, %v4748_v49, 0.0 }
 0x3f1   :  { %520 = vrot.lane.b32.xlu1 %v4719_v9, %s4328_s1 }
 0x404   :  { %v942_v48 = vpop.xlane.xlu1 %941 }
 0x405   :  { %3988 = vrcp.f32 %v942_v48 }
 0x408   :  { %v514_v54 = vpop.permute.xlu1 %513 }
 0x409   :  { %956 = vadd.xlane.f32.xlu0 %v955_v13  ;;  %v1131_v62 = vsel %vm991_vm2, %v514_v54, 0 }
 0x40c   :  { %v517_v56 = vpop.permute.xlu1 %516 }
 0x40d   :  { %962 = vadd.xlane.f32.xlu0 %v961_v45  ;;  %v1223_v12 = vsel %vm991_vm2, %v517_v56, 0 }
 0x40f   :  { %v3989_v51 = vpop.eup %3988 }
 0x410   :  { %v972_v52 = vmul.f32 %v3989_v51, %v4712_v7 }
 0x412   :  { %v980_v53 = vpack.c.bf16 %v972_v52, %v972_v52 }
 0x414   :  { %3597 = vmatmul.mubr.msk.bf16.vlgmr.msra.gmra.mrb[24].mxu0 %vm891_vm3, %v980_v53 }
 0x415   :  { %3608 = vmatprep.mubr.msk.bf16.mxu0 %vm4326_vm0, %v4325_v20 }
 0x423   :  { %518 = vrot.lane.b32.xlu0 %v4719_v9, %s4314_s26 }
 0x455   :  { %v945_v55 = vpop.xlane.xlu0 %944 }
 0x456   :  { %3990 = vrcp.f32 %v945_v55 }
 0x45d   :  { %v948_v57 = vpop.xlane.xlu1 %947 }
 0x45e   :  { %3992 = vrcp.f32 %v948_v57  ;;  %v3888_v57 = vld [vmem:[#allocation10 + $0x20] sm:$0xff]  }
 0x460   :  { %v3991_v58 = vpop.eup %3990 }
 0x461   :  { %v973_v59 = vmul.f32 %v3991_v58, %v3975_v19  ;;  %v951_v60 = vpop.xlane.xlu0 %950  ;;  %v3889_v58 = vld [vmem:[#allocation10 + $0x28] sm:$0xff]  }
 0x462   :  { %3994 = vrcp.f32 %v951_v60 }
 0x463   :  { %v981_v61 = vpack.c.bf16 %v973_v59, %v973_v59  ;;  %v3890_v59 = vld [vmem:[#allocation10 + $0x30] sm:$0xff]  }
 0x465   :  { %v512_v63 = vpop.permute.xlu0 %511  ;;  %3603 = vmatmul.mubr.msk.bf16.vlgmr.msra.gmra.mrb[16].mxu1 %vm891_vm3, %v981_v61  ;;  %v954_v2 = vpop.xlane.xlu1 %953 }
 0x466   :  { %v1085_v1 = vsel %vm991_vm2, %v512_v63, 0  ;;  %3613 = vmatpush3.bf16.msra.mxu1 %v1131_v62  ;;  %3614 = vmatprep.mubr.msk.bf16.mxu1 %vm4326_vm0, %v4325_v20  ;;  %3996 = vrcp.f32 %v954_v2 }
 0x467   :  { %3607 = vmatpush3.bf16.msra.mxu0 %v1085_v1  ;;  %3624 = vmatprep.subr.bf16.mxu1 %v4325_v20  ;;  %v3891_v1 = vld [vmem:[#allocation10 + $0x38] sm:$0xff]  }
 0x468   :  { %v3993_v3 = vpop.eup %3992  ;;  %3618 = vmatprep.subr.bf16.mxu0 %v4325_v20 }
 0x469   :  { %v974_v4 = vmul.f32 %v3993_v3, %v4724_v27 }
 0x46b   :  { %v982_v5 = vpack.c.bf16 %v974_v4, %v974_v4 }
 0x46c   :  { %v3995_v6 = vpop.eup %3994 }
 0x46d   :  { %v975_v7 = vmul.f32 %v3995_v6, %v4728_v30  ;;  %3609 = vmatmul.mubr.msk.bf16.vlgmr.msra.gmra.mrb[28].mxu0 %vm891_vm3, %v982_v5  ;;  %v960_v15 = vpop.xlane.xlu1 %959 }
 0x46e   :  { %3619 = vmatpush3.bf16.msra.mxu0 %v1177_v8  ;;  %3620 = vmatprep.mubr.msk.bf16.mxu0 %vm4326_vm0, %v4325_v20  ;;  %3998 = vrcp.f32 %v960_v15 }
 0x46f   :  { %v983_v10 = vpack.c.bf16 %v975_v7, %v975_v7  ;;  %3630 = vmatprep.subr.bf16.mxu0 %v4325_v20 }
 0x470   :  { %v3997_v11 = vpop.eup %3996 }
 0x471   :  { %3615 = vmatmul.mubr.msk.bf16.vlgmr.msra.gmra.mrb[20].mxu1 %vm891_vm3, %v983_v10  ;;  %v976_v14 = vmul.f32 %v3997_v11, %v4734_v37  ;;  %v521_v27 = vpop.permute.xlu1 %520 }
 0x472   :  { %3625 = vmatpush3.bf16.msra.mxu1 %v1223_v12  ;;  %3626 = vmatprep.mubr.msk.bf16.mxu1 %vm4326_vm0, %v4325_v20  ;;  %v1315_v29 = vsel %vm991_vm2, %v521_v27, 0 }
 0x473   :  { %3636 = vmatprep.subr.bf16.mxu1 %v4325_v20  ;;  %v984_v9 = vpack.c.bf16 %v976_v14, %v976_v14 }
 0x475   :  { %3621 = vmatmul.mubr.msk.bf16.vlgmr.msra.gmra.mrb[32].mxu0 %vm891_vm3, %v984_v9 }
 0x476   :  { %3632 = vmatprep.mubr.msk.bf16.mxu0 %vm4326_vm0, %v4325_v20 }
 0x478   :  { %v3999_v17 = vpop.eup %3998 }
 0x479   :  { %v978_v19 = vmul.f32 %v3999_v17, %v4738_v39  ;;  %v3885_v39 = vld [vmem:[#allocation10 + $0x8] sm:$0xff]  }
 0x47b   :  { %v986_v25 = vpack.c.bf16 %v978_v19, %v978_v19 }
 0x496   :  { %v957_v16 = vpop.xlane.xlu0 %956 }
 0x497   :  { %4000 = vrcp.f32 %v957_v16 }
 0x49a   :  { %v963_v18 = vpop.xlane.xlu0 %962 }
 0x49b   :  { %4002 = vrcp.f32 %v963_v18 }
 0x49e   :  { %v519_v21 = vpop.permute.xlu0 %518 }
 0x49f   :  { %v1269_v22 = vsel %vm991_vm2, %v519_v21, 0 }
 0x4a0   :  { %3631 = vmatpush3.bf16.msra.mxu0 %v1269_v22 }
 0x4a1   :  { %v4001_v23 = vpop.eup %4000  ;;  %3642 = vmatprep.subr.bf16.mxu0 %v4325_v20 }
 0x4a2   :  { %v977_v26 = vmul.f32 %v4001_v23, %v4748_v49 }
 0x4a3   :  { %3633 = vmatmul.mubr.msk.bf16.vlgmr.msra.gmra.mrb[36].mxu0 %vm891_vm3, %v986_v25 }
 0x4a4   :  { %v985_v24 = vpack.c.bf16 %v977_v26, %v977_v26  ;;  %3658 = vmatprep.mubr.msk.bf16.mxu0 %vm4326_vm0, %v4325_v20  ;;  %3643 = vmatpush3.bf16.msra.mxu0 %v3884_v38 }
 0x4a5   :  { %v4003_v28 = vpop.eup %4002  ;;  %3644 = vmatprep.subr.bf16.mxu0 %v4325_v20 }
 0x4a6   :  { %3627 = vmatmul.mubr.msk.bf16.vlgmr.msra.gmra.mrb[24].mxu1 %vm891_vm3, %v985_v24  ;;  %v979_v30 = vmul.f32 %v4003_v28, %v4752_v50 }
 0x4a7   :  { %3637 = vmatpush3.bf16.msra.mxu1 %v1315_v29  ;;  %3638 = vmatprep.mubr.msk.bf16.mxu1 %vm4326_vm0, %v4325_v20 }
 0x4a8   :  { %3662 = vmatprep.subr.bf16.mxu1 %v4325_v20  ;;  %v987_v32 = vpack.c.bf16 %v979_v30, %v979_v30  ;;  %3645 = vmatpush3.bf16.msra.mxu0 %v3885_v39 }
 0x4a9   :  { %3646 = vmatprep.subr.bf16.mxu0 %v4325_v20 }
 0x4ac   :  { %3647 = vmatpush3.bf16.msra.mxu0 %v3886_v40  ;;  %v4048_v40 = vld [vmem:[#allocation2] sm:$0xff] }
 0x4ad   :  { %3648 = vmatprep.subr.bf16.mxu0 %v4325_v20 }
 0x4ae   :  { %3639 = vmatmul.mubr.msk.bf16.vlgmr.msra.gmra.mrb[28].mxu1 %vm891_vm3, %v987_v32  ;;  %v3306_v32 = vld [vmem:[%s5106_s24] ss:$0 sm:$0xff] }
 0x4af   :  { %3678 = vmatprep.mubr.msk.bf16.mxu1 %vm4326_vm0, %v4325_v20 }
 0x4b0   :  { %3649 = vmatpush3.bf16.msra.mxu0 %v3887_v41 }
 0x4b1   :  { %3650 = vmatprep.subr.bf16.mxu0 %v4325_v20 }
 0x4b4   :  { %3651 = vmatpush3.bf16.msra.mxu0 %v3888_v57 }
 0x4b5   :  { %3652 = vmatprep.subr.bf16.mxu0 %v4325_v20 }
 0x4b8   :  { %3653 = vmatpush3.bf16.msra.mxu0 %v3889_v58 }
 0x4b9   :  { %3654 = vmatprep.subr.bf16.mxu0 %v4325_v20 }
 0x4bc   :  { %3655 = vmatpush3.bf16.msra.mxu0 %v3890_v59 }
 0x4bd   :  { %3656 = vmatprep.subr.bf16.mxu0 %v4325_v20 }
 0x4c0   :  { %3657 = vmatpush3.bf16.msra.mxu0 %v3891_v1  ;;  %v3912_v1 = vld [vmem:[#allocation13 + $0x54] ss:$8 sps:$4 sm:$0xff]  }
 0x4e7   :  { %v4802_v34 = vpop.f32.mrb[24].mxu0 }
 0x4e8   :  { %v3598_v35 = vpop.f32.mrb[25].mxu0 }
 0x4e9   :  { %v1032_v36 = vpop.f32.mrb[26].mxu0 }
 0x4ea   :  { %v3599_v37 = vpop.f32.mrb[27].mxu0 }
 0x538   :  { %v1075_v42 = vpop.f32.mrb[16].mxu1 }
 0x539   :  { %v3604_v43 = vpop.f32.mrb[17].mxu1 }
 0x53a   :  { %v1078_v44 = vpop.f32.mrb[18].mxu1 }
 0x53b   :  { %v3605_v46 = vpop.f32.mrb[19].mxu1  ;;  %v3892_v44 = vld [vmem:[#allocation13] ss:$8 sps:$4 sm:$0xff]  }
 0x53c   :  { %v3894_v46 = vld [vmem:[#allocation13 + $0x4] ss:$8 sps:$4 sm:$0xff]  }
 0x53d   :  { %1768 = vmatprep.subr.bf16.mxu0 %v3894_v46 }
 0x540   :  { %v1121_v47 = vpop.f32.mrb[28].mxu0 }
 0x541   :  { %v3610_v48 = vpop.f32.mrb[29].mxu0 }
 0x542   :  { %v1124_v49 = vpop.f32.mrb[30].mxu0  ;;  %v3901_v48 = vld [vmem:[#allocation11] sm:$0xff]  }
 0x543   :  { %v3611_v13 = vpop.f32.mrb[31].mxu0  ;;  %v3895_v49 = vld [vmem:[#allocation13 + $0x10] ss:$8 sps:$4 sm:$0xff]   ;;  %3663 = vmatpush3.bf16.msra.mxu1 %v3901_v48 }
 0x544   :  { %v1167_v50 = vpop.f32.mrb[20].mxu1  ;;  %v3900_v13 = vld [vmem:[#allocation13 + $0x24] ss:$8 sps:$4 sm:$0xff]   ;;  %3664 = vmatprep.subr.bf16.mxu1 %v4325_v20 }
 0x545   :  { %v3616_v45 = vpop.f32.mrb[21].mxu1 }
 0x546   :  { %v1170_v51 = vpop.f32.mrb[22].mxu1  ;;  %v3898_v45 = vld [vmem:[#allocation13 + $0x20] ss:$8 sps:$4 sm:$0xff]  }
 0x547   :  { %v3617_v52 = vpop.f32.mrb[23].mxu1  ;;  %v3904_v51 = vld [vmem:[#allocation13 + $0x34] ss:$8 sps:$4 sm:$0xff]  }
 0x548   :  { %v1213_v53 = vpop.f32.mrb[32].mxu0  ;;  %v3902_v52 = vld [vmem:[#allocation13 + $0x30] ss:$8 sps:$4 sm:$0xff]  }
 0x549   :  { %v3622_v54 = vpop.f32.mrb[33].mxu0 }
 0x54a   :  { %v1216_v55 = vpop.f32.mrb[34].mxu0 }
 0x54b   :  { %v3623_v56 = vpop.f32.mrb[35].mxu0 }
 0x576   :  { %v1305_v60 = vpop.f32.mrb[36].mxu0 }
 0x577   :  { %v3827_v61 = vpack.i.bf16 %v1305_v60, %v1121_v47  ;;  %v3634_v62 = vpop.f32.mrb[37].mxu0  ;;  %v3897_v47 = vld [vmem:[#allocation13 + $0x14] ss:$8 sps:$4 sm:$0xff]  }
 0x578   :  { %v1308_v63 = vpop.f32.mrb[38].mxu0  ;;  %v3906_v62 = vld [vmem:[#allocation13 + $0x40] ss:$8 sps:$4 sm:$0xff]  }
 0x579   :  { %v1259_v2 = vpop.f32.mrb[24].mxu1  ;;  %3828 = vrot.lane.b32.xlu1 %v3827_v61, %s4314_s26  ;;  %v3635_v3 = vpop.f32.mrb[39].mxu0  ;;  %v3908_v61 = vld [vmem:[#allocation13 + $0x44] ss:$8 sps:$4 sm:$0xff]   ;;  %v3909_v63 = vld [vmem:[#allocation11 + $0x10] sm:$0xff]  }
 0x57a   :  { %v3822_v4 = vpack.i.bf16 %v1259_v2, %v1075_v42  ;;  %v3628_v5 = vpop.f32.mrb[25].mxu1  ;;  %v4049_v42 = vld [vmem:[#allocation2 + $0x8] sm:$0xff]  ;;  %v3913_v3 = vld [vmem:[#allocation11 + $0x18] sm:$0xff]  }
 0x57b   :  { %v1262_v6 = vpop.f32.mrb[26].mxu1  ;;  %v3910_v2 = vld [vmem:[#allocation13 + $0x50] ss:$8 sps:$4 sm:$0xff]   ;;  %v3914_v5 = vld [vmem:[#allocation13 + $0x60] ss:$8 sps:$4 sm:$0xff]  }
 0x57c   :  { %3823 = vrot.lane.b32.xlu0 %v3822_v4, %s4328_s1  ;;  %v3629_v7 = vpop.f32.mrb[27].mxu1  ;;  %v3916_v4 = vld [vmem:[#allocation13 + $0x64] ss:$8 sps:$4 sm:$0xff]  }
 0x57d   :  { %v3917_v6 = vld [vmem:[#allocation11 + $0x20] sm:$0xff]   ;;  %v3920_v7 = vld [vmem:[#allocation13 + $0x74] ss:$8 sps:$4 sm:$0xff]  }
 0x581   :  { %v1351_v8 = vpop.f32.mrb[28].mxu1 }
 0x582   :  { %v3832_v10 = vpack.i.bf16 %v1351_v8, %v1167_v50  ;;  %v3640_v11 = vpop.f32.mrb[29].mxu1  ;;  %v3905_v50 = vld [vmem:[#allocation11 + $0x8] sm:$0xff]   ;;  %v3918_v8 = vld [vmem:[#allocation13 + $0x70] ss:$8 sps:$4 sm:$0xff]  }
 0x583   :  { %v1354_v12 = vpop.f32.mrb[30].mxu1  ;;  %3665 = vmatpush3.bf16.msra.mxu1 %v3905_v50  ;;  %v210_v11 = vld [vmem:[#allocation5] sm:$0xff] }
 0x584   :  { %3833 = vrot.lane.b32.xlu0 %v3832_v10, %s4327_s5  ;;  %v3641_v14 = vpop.f32.mrb[31].mxu1  ;;  %3666 = vmatprep.subr.bf16.mxu1 %v4325_v20  ;;  %v3921_v10 = vld [vmem:[#allocation11 + $0x28] sm:$0xff]  }
 0x585   :  { %v212_v12 = vld [vmem:[#allocation5 + $0x10] sm:$0xff] }
 0x586   :  { %v1674_v14 = vpack.c.bf16 %v212_v12, %v210_v11 }
 0x587   :  { %3667 = vmatpush3.bf16.msra.mxu1 %v3909_v63 }
 0x588   :  { %3668 = vmatprep.subr.bf16.mxu1 %v4325_v20 }
 0x58b   :  { %3669 = vmatpush3.bf16.msra.mxu1 %v3913_v3 }
 0x58c   :  { %3670 = vmatprep.subr.bf16.mxu1 %v4325_v20 }
 0x58f   :  { %3671 = vmatpush3.bf16.msra.mxu1 %v3917_v6 }
 0x590   :  { %3672 = vmatprep.subr.bf16.mxu1 %v4325_v20 }
 0x593   :  { %3673 = vmatpush3.bf16.msra.mxu1 %v3921_v10 }
 0x594   :  { %3674 = vmatprep.subr.bf16.mxu1 %v4325_v20 }
 0x5eb   :  { %v3829_v17 = vpop.permute.xlu1 %3828 }
 0x5ec   :  { %v3831_v21 = vunpack.i.h.bf16 %v3829_v17  ;;  %v3830_v22 = vunpack.i.l.bf16 %v3829_v17  ;;  %v213_v17 = vld [vmem:[#allocation5 + $0x18] sm:$0xff] }
 0x5ee   :  { %v3824_v9 = vpop.permute.xlu0 %3823 }
 0x5ef   :  { %v3826_v15 = vunpack.i.h.bf16 %v3824_v9  ;;  %v3825_v16 = vunpack.i.l.bf16 %v3824_v9  ;;  %v3922_v9 = vld [vmem:[#allocation11 + $0x30] sm:$0xff]  }
 0x5f0   :  { %3675 = vmatpush3.bf16.msra.mxu1 %v3922_v9 }
 0x5f1   :  { %v1369_v18 = vsel %vm522_vm1, %v4802_v34, %v3825_v16  ;;  %v1386_v19 = vsel %vm522_vm1, %v1213_v53, %v3826_v15  ;;  %v3923_v15 = vld [vmem:[#allocation11 + $0x38] sm:$0xff]   ;;  %3676 = vmatprep.subr.bf16.mxu1 %v4325_v20  ;;  %v211_v16 = vld [vmem:[#allocation5 + $0x8] sm:$0xff] }
 0x5f2   :  { %v1371_v27 = vsel %vm1370_vm4, %v1369_v18, %v3830_v22  ;;  %v1387_v24 = vsel %vm1370_vm4, %v1386_v19, %v3831_v21  ;;  %v1675_v18 = vpack.c.bf16 %v213_v17, %v211_v16 }
 0x5f4   :  { %3677 = vmatpush3.bf16.msra.mxu1 %v3923_v15 }
 0x5f5   :  { %3682 = vmatprep.subr.bf16.mxu1 %v4325_v20 }
 0x5f6   :  { %v3834_v23 = vpop.permute.xlu0 %3833 }
 0x5f7   :  { %v3836_v25 = vunpack.i.h.bf16 %v3834_v23  ;;  %v3835_v26 = vunpack.i.l.bf16 %v3834_v23 }
 0x5f9   :  { %v1373_v28 = vsel %vm1372_vm5, %v1371_v27, %v3835_v26  ;;  %v1388_v29 = vsel %vm1372_vm5, %v1387_v24, %v3836_v25  ;;  %v3315_v24 = vld [vmem:[%s5107_s28] ss:$0 sm:$0xff] }
 0x5fa   :  { %v1405_v30 = vpack.c.bf16 %v1388_v29, %v1373_v28 }
 0x5fc   :  { %3659 = vmatmul.mubr.bf16.vlgmr.msra.gmra.mrb[40].mxu0 %v1405_v30 }
 0x5fd   :  { %1800 = vmatprep.mubr.bf16.mxu0 %v4324_v0  ;;  %1769 = vmatpush1.bf16.msra.mxu0 %v3892_v44 }
 0x5fe   :  { %1770 = vmatprep.subr.bf16.mxu0 %v3897_v47 }
 0x601   :  { %1771 = vmatpush1.bf16.msra.mxu0 %v3895_v49 }
 0x602   :  { %1772 = vmatprep.subr.bf16.mxu0 %v3900_v13 }
 0x605   :  { %1773 = vmatpush1.bf16.msra.mxu0 %v3898_v45 }
 0x606   :  { %1774 = vmatprep.subr.bf16.mxu0 %v3904_v51 }
 0x609   :  { %1775 = vmatpush1.bf16.msra.mxu0 %v3902_v52 }
 0x60a   :  { %1776 = vmatprep.subr.bf16.mxu0 %v3908_v61 }
 0x60d   :  { %1777 = vmatpush1.bf16.msra.mxu0 %v3906_v62  ;;  %v3317_v62 = vld [vmem:[%s5070_s10] ss:$0 sm:$0xff] }
 0x60e   :  { %1778 = vmatprep.subr.bf16.mxu0 %v3912_v1 }
 0x611   :  { %1779 = vmatpush1.bf16.msra.mxu0 %v3910_v2 }
 0x612   :  { %1780 = vmatprep.subr.bf16.mxu0 %v3916_v4 }
 0x615   :  { %1781 = vmatpush1.bf16.msra.mxu0 %v3914_v5 }
 0x616   :  { %1782 = vmatprep.subr.bf16.mxu0 %v3920_v7 }
 0x619   :  { %1783 = vmatpush1.bf16.msra.mxu0 %v3918_v8 }
 0x61a   :  { %3712 = vmatprep.subr.bf16.mxu0 %v4325_v20 }
 0x61c   :  { %1801 = vmatmul.mubr.bf16.vlgmr.msra.gmra.mrb[44].mxu0 %v1674_v14 }
 0x61d   :  { %1810 = vmatprep.mubr.bf16.mxu0 %v4324_v0 }
 0x624   :  { %1811 = vmatmul.mubr.bf16.gmra.mrb[48].mxu0 %v1675_v18 }
 0x625   :  { %3714 = vmatprep.mubr.msk.bf16.mxu0 %vm4326_vm0, %v4325_v20 }
 0x6cf   :  { %v1495_v34 = vpop.f32.mrb[40].mxu0 }
 0x6d0   :  { %v1496_v35 = vadd.f32 %v3306_v32, %v1495_v34  ;;  %v3660_v36 = vpop.f32.mrb[41].mxu0  ;;  %v3316_v34 = vld [vmem:[%s5068_s8] ss:$0 sm:$0xff] }
 0x6d1   :  { %v1498_v37 = vpop.f32.mrb[42].mxu0 }
 0x6d2   :  { %v1499_v38 = vadd.f32 %v3306_v32, %v1498_v37  ;;  %v3661_v39 = vpop.f32.mrb[43].mxu0  ;;  %v1502_v41 = vadd.f32 %v4048_v40, %v1496_v35 }
 0x6d3   :  { %v1676_v39 = vld [vmem:[%s5072_s12] sm:$0x3] }
 0x6d4   :  { %1504 = vadd.xlane.f32.xlu1 %v1502_v41  ;;  %v1503_v43 = vadd.f32 %v4049_v42, %v1499_v38  ;;  %v1681_v40 = vrot.slane %v1676_v39, %v4623_v31 }
 0x6d6   :  { %1506 = vadd.xlane.f32.xlu0 %v1503_v43 }
 0x6ef   :  { %v1802_v42 = vpop.f32.mrb[44].mxu0 }
 0x6f0   :  { %v1804_v44 = vpop.f32.mrb[45].mxu0 }
 0x6f1   :  { %v1806_v47 = vpop.f32.mrb[46].mxu0 }
 0x6f2   :  { %v1807_v48 = vadd.f32 %v1806_v47, %v1681_v40  ;;  %v1808_v49 = vpop.f32.mrb[47].mxu0 }
 0x6f7   :  { %v1812_v52 = vpop.f32.mrb[48].mxu0 }
 0x761   :  { %v1505_v53 = vpop.xlane.xlu1 %1504 }
 0x762   :  { %v1509_v54 = vmul.f32 0.0078125, %v1505_v53  ;;  %v1813_v53 = vadd.f32 %v1812_v52, %v1681_v40 }
 0x763   :  { %v1507_v55 = vpop.xlane.xlu0 %1506 }
 0x764   :  { %v1511_v56 = vsub.f32 %v1502_v41, %v1509_v54  ;;  %v1510_v57 = vmul.f32 0.0078125, %v1507_v55  ;;  %v1685_v41 = vrot.slane %v1676_v39, %v4631_v33  ;;  %v1814_v54 = vpop.f32.mrb[49].mxu0 }
 0x766   :  { %v1512_v58 = vsub.f32 %v1503_v43, %v1510_v57  ;;  %v1513_v59 = vmul.f32 %v1511_v56, %v1511_v56  ;;  %v1803_v43 = vadd.f32 %v1802_v42, %v1681_v40  ;;  %v1805_v46 = vadd.f32 %v1804_v44, %v1685_v41 }
 0x767   :  { %v1809_v13 = vadd.f32 %v1808_v49, %v1685_v41  ;;  %v1815_v55 = vadd.f32 %v1814_v54, %v1685_v41 }
 0x768   :  { %1515 = vadd.xlane.f32.xlu0 %v1513_v59  ;;  %v1514_v60 = vmul.f32 %v1512_v58, %v1512_v58  ;;  %v1822_v50 = vpack.c.bf16 %v1807_v48, %v1803_v43 }
 0x769   :  { %v4856_v45 = vpack.c.bf16 %v1809_v13, %v1805_v46 }
 0x76a   :  { %1517 = vadd.xlane.f32.xlu1 %v1514_v60  ;;  %v1878_v51 = vsel %vm522_vm1, %v1822_v50, 0 }
 0x77e   :  { %1841 = vrot.lane.b32.xlu0 %v1822_v50, %s4327_s5 }
 0x7f5   :  { %v1516_v19 = vpop.xlane.xlu0 %1515 }
 0x7f6   :  { %v1519_v21 = vmul.f32 0.0078125, %v1516_v19 }
 0x7f7   :  { %v1518_v22 = vpop.xlane.xlu1 %1517 }
 0x7f8   :  { %v1521_v23 = vadd.f32 1e-05, %v1519_v21  ;;  %v1520_v25 = vmul.f32 0.0078125, %v1518_v22 }
 0x7f9   :  { %v1842_v6 = vpop.permute.xlu0 %1841 }
 0x7fa   :  { %4004 = vrsqrt.f32 %v1521_v23  ;;  %v1522_v26 = vadd.f32 1e-05, %v1520_v25  ;;  %v1924_v8 = vsel %vm522_vm1, %v1842_v6, 0 }
 0x7fc   :  { %4006 = vrsqrt.f32 %v1522_v26 }
 0x804   :  { %v4005_v27 = vpop.eup %4004 }
 0x805   :  { %v1525_v28 = vmul.f32 %v4005_v27, %v1511_v56  ;;  %v1816_v56 = vpop.f32.mrb[50].mxu0 }
 0x806   :  { %v4007_v29 = vpop.eup %4006  ;;  %v1817_v57 = vadd.f32 %v1816_v56, %v1681_v40  ;;  %v1818_v59 = vpop.f32.mrb[51].mxu0 }
 0x807   :  { %v1526_v30 = vmul.f32 %v4007_v29, %v1512_v58  ;;  %v1534_v32 = vmul.f32 %v3315_v24, %v1525_v28  ;;  %v1819_v60 = vadd.f32 %v1818_v59, %v1685_v41 }
 0x808   :  { %v1823_v58 = vpack.c.bf16 %v1817_v57, %v1813_v53 }
 0x809   :  { %v1535_v35 = vmul.f32 %v3315_v24, %v1526_v30  ;;  %v4843_v36 = vadd.f32 %v3316_v34, %v1534_v32  ;;  %v4861_v61 = vpack.c.bf16 %v1819_v60, %v1815_v55 }
 0x80a   :  { %v2062_v26 = vsel %vm522_vm1, %v1823_v58, 0 }
 0x80b   :  { %v4845_v37 = vadd.f32 %v3316_v34, %v1535_v35 }
 0x80d   :  { %v1561_v38 = vpack.c.bf16 %v4845_v37, %v4843_v36 }
 0x80f   :  { %3679 = vmatmul.mubr.bf16.vlgmr.msra.gmra.mrb[32].mxu1 %v1561_v38 }
 0x810   :  { %3684 = vmatprep.mubr.msk.bf16.mxu1 %vm4326_vm0, %v4325_v20  ;;  %3683 = vmatpush3.bf16.xpose.msra.mxu1 %v1878_v51 }
 0x811   :  { %3688 = vmatprep.subr.bf16.mxu1 %v4325_v20 }
 0x8e2   :  { %v1651_v63 = vpop.f32.mrb[32].mxu1 }
 0x8e3   :  { %v3680_v1 = vpop.f32.mrb[33].mxu1  ;;  %v1652_v3 = vadd.f32 %v3317_v62, %v1651_v63 }
 0x8e4   :  { %v1654_v2 = vpop.f32.mrb[34].mxu1 }
 0x8e5   :  { %v1655_v4 = vadd.f32 %v3317_v62, %v1654_v2  ;;  %v3681_v5 = vpop.f32.mrb[35].mxu1 }
 0x8e7   :  { %v1821_v7 = vpack.c.bf16 %v1655_v4, %v1652_v3 }
 0x8e9   :  { %1827 = vrot.lane.b32.xlu1 %v1821_v7, %s4327_s5  ;;  %1829 = vrot.lane.b32.xlu0 %v1821_v7, %s4314_s26  ;;  %v1833_v10 = vrot.slane %v1821_v7, 4 }
 0x8ea   :  { %3685 = vmatmul.mubr.msk.bf16.vlgmr.msra.gmra.mrb[36].mxu1 %vm522_vm1, %v1821_v7 }
 0x8eb   :  { %3689 = vmatpush3.bf16.xpose.msra.mxu1 %v1924_v8  ;;  %3690 = vmatprep.mubr.msk.bf16.mxu1 %vm4326_vm0, %v4325_v20 }
 0x8ec   :  { %3694 = vmatprep.subr.bf16.mxu1 %v4325_v20 }
 0x8ed   :  { %1843 = vrot.lane.b32.xlu1 %v1822_v50, %s4314_s26  ;;  %1831 = vrot.lane.b32.xlu0 %v1821_v7, %s4328_s1 }
 0x8f1   :  { %1845 = vrot.lane.b32.xlu1 %v1822_v50, %s4328_s1  ;;  %1850 = vrot.lane.b32.xlu0 %v1823_v58, %s4314_s26 }
 0x8f5   :  { %1848 = vrot.lane.b32.xlu1 %v1823_v58, %s4327_s5  ;;  %1852 = vrot.lane.b32.xlu0 %v1823_v58, %s4328_s1 }
 0x8f9   :  { %1834 = vrot.lane.b32.xlu1 %v1833_v10, %s4327_s5  ;;  %1838 = vrot.lane.b32.xlu0 %v1833_v10, %s4328_s1 }
 0x8fd   :  { %1836 = vrot.lane.b32.xlu1 %v1833_v10, %s4314_s26 }
 0x95b   :  { %v1828_v11 = vpop.permute.xlu1 %1827  ;;  %v1830_v12 = vpop.permute.xlu0 %1829 }
 0x95c   :  { %3691 = vmatmul.mubr.msk.bf16.vlgmr.msra.gmra.mrb[40].mxu1 %vm522_vm1, %v1828_v11 }
 0x95d   :  { %3696 = vmatprep.mubr.msk.bf16.mxu1 %vm4326_vm0, %v4325_v20 }
 0x95f   :  { %v1844_v14 = vpop.permute.xlu1 %1843  ;;  %v1832_v15 = vpop.permute.xlu0 %1831 }
 0x960   :  { %v1970_v9 = vsel %vm522_vm1, %v1844_v14, 0 }
 0x961   :  { %3695 = vmatpush3.bf16.xpose.msra.mxu1 %v1970_v9 }
 0x962   :  { %3700 = vmatprep.subr.bf16.mxu1 %v4325_v20 }
 0x963   :  { %v1846_v16 = vpop.permute.xlu1 %1845  ;;  %v1851_v17 = vpop.permute.xlu0 %1850 }
 0x964   :  { %v2016_v19 = vsel %vm522_vm1, %v1846_v16, 0  ;;  %v2154_v27 = vsel %vm522_vm1, %v1851_v17, 0 }
 0x967   :  { %v1849_v18 = vpop.permute.xlu1 %1848  ;;  %v1853_v22 = vpop.permute.xlu0 %1852 }
 0x968   :  { %v2108_v21 = vsel %vm522_vm1, %v1849_v18, 0  ;;  %3697 = vmatmul.mubr.msk.bf16.vlgmr.msra.gmra.mrb[44].mxu1 %vm522_vm1, %v1830_v12  ;;  %v2200_v23 = vsel %vm522_vm1, %v1853_v22, 0 }
 0x969   :  { %3701 = vmatpush3.bf16.xpose.msra.mxu1 %v2016_v19  ;;  %3713 = vmatpush3.bf16.xpose.msra.mxu0 %v2108_v21 }
 0x96a   :  { %3702 = vmatprep.mubr.msk.bf16.mxu1 %vm4326_vm0, %v4325_v20  ;;  %3706 = vmatprep.subr.bf16.mxu1 %v4325_v20 }
 0x96b   :  { %3724 = vmatprep.subr.bf16.mxu0 %v4325_v20  ;;  %v1835_v25 = vpop.permute.xlu1 %1834  ;;  %v1839_v24 = vpop.permute.xlu0 %1838 }
 0x96f   :  { %v1837_v28 = vpop.permute.xlu1 %1836 }
 0x970   :  { %3703 = vmatmul.mubr.msk.bf16.vlgmr.msra.gmra.mrb[48].mxu1 %vm522_vm1, %v1832_v15  ;;  %3715 = vmatmul.mubr.msk.bf16.vlgmr.msra.gmra.mrb[52].mxu0 %vm522_vm1, %v1835_v25 }
 0x971   :  { %3707 = vmatpush3.bf16.xpose.msra.mxu1 %v2062_v26  ;;  %3725 = vmatpush3.bf16.xpose.msra.mxu0 %v2200_v23 }
 0x972   :  { %3708 = vmatprep.mubr.msk.bf16.mxu1 %vm4326_vm0, %v4325_v20  ;;  %3726 = vmatprep.mubr.msk.bf16.mxu0 %vm4326_vm0, %v4325_v20 }
 0x973   :  { %3718 = vmatprep.subr.bf16.mxu1 %v4325_v20  ;;  %3736 = vmatprep.subr.bf16.mxu0 %v4325_v20 }
 0x978   :  { %3709 = vmatmul.mubr.msk.bf16.vlgmr.msra.gmra.mrb[52].mxu1 %vm522_vm1, %v1833_v10  ;;  %3727 = vmatmul.mubr.msk.bf16.vlgmr.msra.gmra.mrb[56].mxu0 %vm522_vm1, %v1839_v24 }
 0x979   :  { %3719 = vmatpush3.bf16.xpose.msra.mxu1 %v2154_v27  ;;  %3720 = vmatprep.mubr.msk.bf16.mxu1 %vm4326_vm0, %v4325_v20 }
 0x97a   :  { %3730 = vmatprep.subr.bf16.mxu1 %v4325_v20  ;;  %3738 = vmatprep.mubr.msk.bf16.mxu0 %vm4326_vm0, %v4325_v20 }
 0x980   :  { %3721 = vmatmul.mubr.msk.bf16.vlgmr.msra.gmra.mrb[56].mxu1 %vm522_vm1, %v1837_v28 }
 0x981   :  { %3731 = vmatpush3.bf16.msra.mxu1 %v4856_v45  ;;  %3732 = vmatprep.mubr.msk.bf16.mxu1 %vm4326_vm0, %v4325_v20 }
 0x982   :  { %3742 = vmatprep.subr.bf16.mxu1 %v4325_v20 }
 0x9bd   :  { %v1914_v29 = vpop.f32.mrb[36].mxu1 }
 0x9be   :  { %v3686_v30 = vpop.f32.mrb[37].mxu1  ;;  %v2243_v32 = vsel %vm2242_vm6, %v1914_v29, -inf }
 0x9bf   :  { %2244 = vmax.xlane.f32.xlu1 %v2243_v32  ;;  %v1917_v34 = vpop.f32.mrb[38].mxu1 }
 0x9c0   :  { %v3687_v35 = vpop.f32.mrb[39].mxu1 }
 0xa2f   :  { %v1960_v38 = vpop.f32.mrb[40].mxu1 }
 0xa30   :  { %v3692_v39 = vpop.f32.mrb[41].mxu1  ;;  %v2246_v40 = vsel %vm2242_vm6, %v1960_v38, -inf }
 0xa31   :  { %2247 = vmax.xlane.f32.xlu0 %v2246_v40  ;;  %v1963_v41 = vpop.f32.mrb[42].mxu1 }
 0xa32   :  { %v3693_v42 = vpop.f32.mrb[43].mxu1 }
 0xa3b   :  { %v2006_v43 = vpop.f32.mrb[44].mxu1 }
 0xa3c   :  { %v3698_v44 = vpop.f32.mrb[45].mxu1  ;;  %v2249_v46 = vsel %vm2242_vm6, %v2006_v43, -inf }
 0xa3d   :  { %2250 = vmax.xlane.f32.xlu0 %v2249_v46  ;;  %v2009_v47 = vpop.f32.mrb[46].mxu1 }
 0xa3e   :  { %v3699_v48 = vpop.f32.mrb[47].mxu1 }
 0xa43   :  { %v2052_v49 = vpop.f32.mrb[48].mxu1  ;;  %v2144_v13 = vpop.f32.mrb[52].mxu0 }
 0xa44   :  { %v3704_v50 = vpop.f32.mrb[49].mxu1  ;;  %v3716_v51 = vpop.f32.mrb[53].mxu0  ;;  %v2252_v52 = vsel %vm2242_vm6, %v2052_v49, -inf  ;;  %v2258_v57 = vsel %vm2242_vm6, %v2144_v13, -inf }
 0xa45   :  { %v2147_v53 = vpop.f32.mrb[54].mxu0  ;;  %2253 = vmax.xlane.f32.xlu1 %v2252_v52  ;;  %v2055_v54 = vpop.f32.mrb[50].mxu1 }
 0xa46   :  { %v3705_v55 = vpop.f32.mrb[51].mxu1  ;;  %v3717_v56 = vpop.f32.mrb[55].mxu0 }
 0xa49   :  { %2259 = vmax.xlane.f32.xlu1 %v2258_v57 }
 0xa4b   :  { %v2236_v58 = vpop.f32.mrb[56].mxu0  ;;  %v4922_v59 = vpop.f32.mrb[52].mxu1 }
 0xa4c   :  { %v3710_v60 = vpop.f32.mrb[53].mxu1  ;;  %v2264_v62 = vsel %vm2242_vm6, %v2236_v58, -inf  ;;  %v2255_v63 = vsel %vm2242_vm6, %v4922_v59, -inf  ;;  %v3728_v1 = vpop.f32.mrb[57].mxu0 }
 0xa4d   :  { %2265 = vmax.xlane.f32.xlu1 %v2264_v62  ;;  %2256 = vmax.xlane.f32.xlu0 %v2255_v63  ;;  %v2101_v2 = vpop.f32.mrb[54].mxu1  ;;  %v2239_v3 = vpop.f32.mrb[58].mxu0 }
 0xa4e   :  { %v3711_v4 = vpop.f32.mrb[55].mxu1  ;;  %v3729_v5 = vpop.f32.mrb[59].mxu0 }
 0xa4f   :  { %v2245_v12 = vpop.xlane.xlu1 %2244 }
 0xa50   :  { %v2267_v14 = vsub.f32 %v1914_v29, %v2245_v12 }
 0xa52   :  { %v2275_v9 = vmul.f32 1.442695, %v2267_v14 }
 0xa53   :  { %v2190_v6 = vpop.f32.mrb[56].mxu1 }
 0xa54   :  { %v3722_v7 = vpop.f32.mrb[57].mxu1  ;;  %v2261_v8 = vsel %vm2242_vm6, %v2190_v6, -inf  ;;  %4008 = vpow2.f32 %v2275_v9 }
 0xa55   :  { %2262 = vmax.xlane.f32.xlu0 %v2261_v8  ;;  %v2193_v10 = vpop.f32.mrb[58].mxu1 }
 0xa56   :  { %v3723_v11 = vpop.f32.mrb[59].mxu1 }
 0xa5e   :  { %1858 = vrot.lane.b32.xlu1 %v4856_v45, %s4314_s26  ;;  %v4009_v15 = vpop.eup %4008 }
 0xa5f   :  { %v2291_v16 = vsel %vm2242_vm6, %v4009_v15, 0.0 }
 0xa6b   :  { %1855 = vrot.lane.b32.xlu0 %v4856_v45, %s4327_s5 }
 0xa8a   :  { %2292 = vadd.xlane.f32.xlu0 %v2291_v16 }
 0xabe   :  { %v2248_v17 = vpop.xlane.xlu0 %2247 }
 0xabf   :  { %v2268_v18 = vsub.f32 %v1960_v38, %v2248_v17 }
 0xac1   :  { %v2277_v19 = vmul.f32 1.442695, %v2268_v18 }
 0xac3   :  { %4010 = vpow2.f32 %v2277_v19 }
 0xaca   :  { %v2251_v21 = vpop.xlane.xlu0 %2250 }
 0xacb   :  { %v2269_v22 = vsub.f32 %v2006_v43, %v2251_v21 }
 0xacd   :  { %v4933_v23 = vpop.eup %4010  ;;  %v2279_v25 = vmul.f32 1.442695, %v2269_v22 }
 0xace   :  { %v2294_v26 = vsel %vm2242_vm6, %v4933_v23, 0.0 }
 0xacf   :  { %4012 = vpow2.f32 %v2279_v25  ;;  %2295 = vadd.xlane.f32.xlu1 %v2294_v26 }
 0xad2   :  { %v2254_v27 = vpop.xlane.xlu1 %2253 }
 0xad3   :  { %v2270_v30 = vsub.f32 %v2052_v49, %v2254_v27 }
 0xad5   :  { %v2281_v39 = vmul.f32 1.442695, %v2270_v30 }
 0xad6   :  { %v2260_v24 = vpop.xlane.xlu1 %2259 }
 0xad7   :  { %v2272_v28 = vsub.f32 %v2144_v13, %v2260_v24 }
 0xad9   :  { %v4013_v29 = vpop.eup %4012  ;;  %v2285_v32 = vmul.f32 1.442695, %v2272_v28 }
 0xada   :  { %v2266_v34 = vpop.xlane.xlu1 %2265  ;;  %v2297_v35 = vsel %vm2242_vm6, %v4013_v29, 0.0  ;;  %v2257_v41 = vpop.xlane.xlu0 %2256 }
 0xadb   :  { %4014 = vpow2.f32 %v2285_v32  ;;  %v2274_v38 = vsub.f32 %v2236_v58, %v2266_v34  ;;  %2298 = vadd.xlane.f32.xlu0 %v2297_v35  ;;  %v2271_v50 = vsub.f32 %v4922_v59, %v2257_v41 }
 0xadd   :  { %v2289_v40 = vmul.f32 1.442695, %v2274_v38  ;;  %v2283_v51 = vmul.f32 1.442695, %v2271_v50 }
 0xade   :  { %v1859_v62 = vpop.permute.xlu1 %1858 }
 0xadf   :  { %4016 = vpow2.f32 %v2289_v40 }
 0xae0   :  { %4018 = vpow2.f32 %v2281_v39 }
 0xae1   :  { %4020 = vpow2.f32 %v2283_v51 }
 0xae2   :  { %v2263_v42 = vpop.xlane.xlu0 %2262 }
 0xae3   :  { %v2273_v52 = vsub.f32 %v2190_v6, %v2263_v42 }
 0xae5   :  { %v4938_v43 = vpop.eup %4014  ;;  %v2287_v53 = vmul.f32 1.442695, %v2273_v52  ;;  %v3925_v52 = vld [vmem:[#allocation14 + $0x8] sm:$0xff]  }
 0xae6   :  { %v1856_v44 = vpop.permute.xlu0 %1855  ;;  %v2306_v46 = vsel %vm2242_vm6, %v4938_v43, 0.0 }
 0xae7   :  { %2307 = vadd.xlane.f32.xlu1 %v2306_v46  ;;  %3737 = vmatpush3.bf16.msra.mxu0 %v1856_v44  ;;  %4022 = vpow2.f32 %v2287_v53 }
 0xae8   :  { %3748 = vmatprep.subr.bf16.mxu0 %v4325_v20 }
 0xae9   :  { %v4943_v47 = vpop.eup %4016 }
 0xaea   :  { %v2312_v48 = vsel %vm2242_vm6, %v4943_v47, 0.0  ;;  %v4019_v49 = vpop.eup %4018 }
 0xaeb   :  { %2313 = vadd.xlane.f32.xlu1 %v2312_v48  ;;  %v2300_v13 = vsel %vm2242_vm6, %v4019_v49, 0.0  ;;  %v4955_v54 = vpop.eup %4020 }
 0xaec   :  { %v2303_v55 = vsel %vm2242_vm6, %v4955_v54, 0.0 }
 0xaef   :  { %2301 = vadd.xlane.f32.xlu1 %v2300_v13  ;;  %v3924_v13 = vld [vmem:[#allocation14] sm:$0xff]  }
 0xaf1   :  { %1865 = vrot.lane.b32.xlu0 %v4861_v61, %s4327_s5  ;;  %v4959_v56 = vpop.eup %4022 }
 0xaf2   :  { %v2309_v57 = vsel %vm2242_vm6, %v4959_v56, 0.0 }
 0xb00   :  { %1861 = vrot.lane.b32.xlu1 %v4856_v45, %s4328_s1 }
 0xb04   :  { %1868 = vrot.lane.b32.xlu1 %v4861_v61, %s4314_s26 }
 0xb10   :  { %2304 = vadd.xlane.f32.xlu0 %v2303_v55 }
 0xb14   :  { %2310 = vadd.xlane.f32.xlu0 %v2309_v57 }
 0xb17   :  { %v2293_v58 = vpop.xlane.xlu0 %2292 }
 0xb18   :  { %4024 = vrcp.f32 %v2293_v58 }
 0xb22   :  { %v4025_v45 = vpop.eup %4024 }
 0xb23   :  { %v2323_v59 = vmul.f32 %v4025_v45, %v4009_v15  ;;  %v3927_v45 = vld [vmem:[#allocation14 + $0x18] sm:$0xff]  }
 0xb25   :  { %v2331_v60 = vpack.c.bf16 %v2323_v59, %v2323_v59 }
 0xb27   :  { %3733 = vmatmul.mubr.msk.bf16.vlgmr.msra.gmra.mrb[60].mxu1 %vm2242_vm6, %v2331_v60  ;;  %v3928_v60 = vld [vmem:[#allocation14 + $0x20] sm:$0xff]  }
 0xb28   :  { %3743 = vmatpush3.bf16.msra.mxu1 %v1859_v62  ;;  %3744 = vmatprep.mubr.msk.bf16.mxu1 %vm4326_vm0, %v4325_v20  ;;  %v3929_v62 = vld [vmem:[#allocation14 + $0x28] sm:$0xff]  }
 0xb29   :  { %3754 = vmatprep.subr.bf16.mxu1 %v4325_v20 }
 0xb2a   :  { %1871 = vrot.lane.b32.xlu0 %v4861_v61, %s4328_s1 }
 0xb5c   :  { %v2296_v63 = vpop.xlane.xlu1 %2295 }
 0xb5d   :  { %4026 = vrcp.f32 %v2296_v63  ;;  %v3930_v63 = vld [vmem:[#allocation14 + $0x30] sm:$0xff]  }
 0xb67   :  { %v4027_v1 = vpop.eup %4026 }
 0xb68   :  { %v2324_v2 = vmul.f32 %v4027_v1, %v4933_v23  ;;  %v2299_v3 = vpop.xlane.xlu0 %2298 }
 0xb69   :  { %4028 = vrcp.f32 %v2299_v3 }
 0xb6a   :  { %v2332_v4 = vpack.c.bf16 %v2324_v2, %v2324_v2 }
 0xb6c   :  { %3739 = vmatmul.mubr.msk.bf16.vlgmr.msra.gmra.mrb[60].mxu0 %vm2242_vm6, %v2332_v4  ;;  %v1866_v17 = vpop.permute.xlu0 %1865 }
 0xb6d   :  { %3750 = vmatprep.mubr.msk.bf16.mxu0 %vm4326_vm0, %v4325_v20 }
 0xb73   :  { %v4029_v5 = vpop.eup %4028 }
 0xb74   :  { %v2325_v6 = vmul.f32 %v4029_v5, %v4013_v29  ;;  %v2308_v7 = vpop.xlane.xlu1 %2307 }
 0xb76   :  { %v2333_v8 = vpack.c.bf16 %v2325_v6, %v2325_v6 }
 0xb78   :  { %v2314_v10 = vpop.xlane.xlu1 %2313  ;;  %3745 = vmatmul.mubr.msk.bf16.vlgmr.msra.gmra.mrb[64].mxu1 %vm2242_vm6, %v2333_v8 }
 0xb79   :  { %3755 = vmatpush3.bf16.msra.mxu1 %v4861_v61  ;;  %3756 = vmatprep.mubr.msk.bf16.mxu1 %vm4326_vm0, %v4325_v20 }
 0xb7a   :  { %3766 = vmatprep.subr.bf16.mxu1 %v4325_v20 }
 0xb7c   :  { %v2302_v11 = vpop.xlane.xlu1 %2301 }
 0xb7d   :  { %4030 = vrcp.f32 %v2302_v11 }
 0xb7e   :  { %4032 = vrcp.f32 %v2308_v7  ;;  %v3931_v7 = vld [vmem:[#allocation14 + $0x38] sm:$0xff]  }
 0xb7f   :  { %4034 = vrcp.f32 %v2314_v10 }
 0xb80   :  { %v1862_v12 = vpop.permute.xlu1 %1861 }
 0xb81   :  { %3749 = vmatpush3.bf16.msra.mxu0 %v1862_v12 }
 0xb82   :  { %3760 = vmatprep.subr.bf16.mxu0 %v4325_v20 }
 0xb84   :  { %v1869_v30 = vpop.permute.xlu1 %1868 }
 0xb87   :  { %v4031_v14 = vpop.eup %4030 }
 0xb88   :  { %v2326_v9 = vmul.f32 %v4031_v14, %v4019_v49  ;;  %v4033_v16 = vpop.eup %4032 }
 0xb89   :  { %v2328_v61 = vmul.f32 %v4033_v16, %v4938_v43  ;;  %v4035_v21 = vpop.eup %4034 }
 0xb8a   :  { %v2334_v15 = vpack.c.bf16 %v2326_v9, %v2326_v9  ;;  %v2330_v23 = vmul.f32 %v4035_v21, %v4943_v47 }
 0xb8b   :  { %v2336_v18 = vpack.c.bf16 %v2328_v61, %v2328_v61 }
 0xb8c   :  { %3751 = vmatmul.mubr.msk.bf16.vlgmr.msra.gmra.mrb[64].mxu0 %vm2242_vm6, %v2334_v15  ;;  %v2338_v26 = vpack.c.bf16 %v2330_v23, %v2330_v23 }
 0xb8d   :  { %3761 = vmatpush3.bf16.msra.mxu0 %v1866_v17  ;;  %3762 = vmatprep.mubr.msk.bf16.mxu0 %vm4326_vm0, %v4325_v20 }
 0xb8e   :  { %3772 = vmatprep.subr.bf16.mxu0 %v4325_v20 }
 0xb94   :  { %3763 = vmatmul.mubr.msk.bf16.vlgmr.msra.gmra.mrb[68].mxu0 %vm2242_vm6, %v2336_v18 }
 0xb95   :  { %3774 = vmatprep.mubr.msk.bf16.mxu0 %vm4326_vm0, %v4325_v20 }
 0xb9d   :  { %v2305_v19 = vpop.xlane.xlu0 %2304 }
 0xb9e   :  { %4036 = vrcp.f32 %v2305_v19 }
 0xba1   :  { %v2311_v22 = vpop.xlane.xlu0 %2310 }
 0xba2   :  { %4038 = vrcp.f32 %v2311_v22 }
 0xba5   :  { %v1872_v25 = vpop.permute.xlu0 %1871 }
 0xba6   :  { %3773 = vmatpush3.bf16.msra.mxu0 %v1872_v25 }
 0xba8   :  { %v4037_v27 = vpop.eup %4036 }
 0xba9   :  { %v2327_v24 = vmul.f32 %v4037_v27, %v4955_v54  ;;  %3775 = vmatmul.mubr.msk.bf16.vlgmr.msra.gmra.mrb[72].mxu0 %vm2242_vm6, %v2338_v26  ;;  %v3926_v54 = vld [vmem:[#allocation14 + $0x10] sm:$0xff]  }
 0xbaa   :  { %3009 = vmatprep.mubr.bf16.mxu0 %v4324_v0 }
 0xbab   :  { %v2335_v28 = vpack.c.bf16 %v2327_v24, %v2327_v24 }
 0xbac   :  { %v4039_v29 = vpop.eup %4038 }
 0xbad   :  { %3757 = vmatmul.mubr.msk.bf16.vlgmr.msra.gmra.mrb[68].mxu1 %vm2242_vm6, %v2335_v28  ;;  %v2329_v32 = vmul.f32 %v4039_v29, %v4959_v56 }
 0xbae   :  { %3767 = vmatpush3.bf16.msra.mxu1 %v1869_v30  ;;  %3768 = vmatprep.mubr.msk.bf16.mxu1 %vm4326_vm0, %v4325_v20 }
 0xbaf   :  { %3778 = vmatprep.subr.bf16.mxu1 %v4325_v20  ;;  %v2337_v34 = vpack.c.bf16 %v2329_v32, %v2329_v32 }
 0xbb5   :  { %3769 = vmatmul.mubr.msk.bf16.vlgmr.msra.gmra.mrb[72].mxu1 %vm2242_vm6, %v2337_v34  ;;  %v3358_v34 = vld [vmem:[%s5074_s14] ss:$0 sm:$0xff] }
 0xbb6   :  { %3794 = vmatprep.mubr.msk.bf16.mxu1 %vm4326_vm0, %v4325_v20  ;;  %3779 = vmatpush3.bf16.msra.mxu1 %v3924_v13 }
 0xbb7   :  { %3780 = vmatprep.subr.bf16.mxu1 %v4325_v20 }
 0xbba   :  { %3781 = vmatpush3.bf16.msra.mxu1 %v3925_v52 }
 0xbbb   :  { %3782 = vmatprep.subr.bf16.mxu1 %v4325_v20 }
 0xbbe   :  { %3783 = vmatpush3.bf16.msra.mxu1 %v3926_v54  ;;  %v3940_v54 = vld [vmem:[#allocation16 + $0x24] ss:$8 sps:$4 sm:$0xff]  }
 0xbbf   :  { %3784 = vmatprep.subr.bf16.mxu1 %v4325_v20 }
 0xbc2   :  { %3785 = vmatpush3.bf16.msra.mxu1 %v3927_v45  ;;  %v3944_v45 = vld [vmem:[#allocation16 + $0x40] ss:$8 sps:$4 sm:$0xff]  }
 0xbc3   :  { %3786 = vmatprep.subr.bf16.mxu1 %v4325_v20 }
 0xbc6   :  { %3787 = vmatpush3.bf16.msra.mxu1 %v3928_v60  ;;  %v3947_v60 = vld [vmem:[#allocation16 + $0x50] ss:$8 sps:$4 sm:$0xff]  }
 0xbc7   :  { %3788 = vmatprep.subr.bf16.mxu1 %v4325_v20 }
 0xbca   :  { %3789 = vmatpush3.bf16.msra.mxu1 %v3929_v62  ;;  %v3952_v62 = vld [vmem:[#allocation16 + $0x64] ss:$8 sps:$4 sm:$0xff]  }
 0xbcb   :  { %3790 = vmatprep.subr.bf16.mxu1 %v4325_v20 }
 0xbce   :  { %3791 = vmatpush3.bf16.msra.mxu1 %v3930_v63  ;;  %v3950_v63 = vld [vmem:[#allocation16 + $0x60] ss:$8 sps:$4 sm:$0xff]  }
 0xbcf   :  { %3792 = vmatprep.subr.bf16.mxu1 %v4325_v20 }
 0xbd2   :  { %3793 = vmatpush3.bf16.msra.mxu1 %v3931_v7  ;;  %v3960_v7 = vld [vmem:[#allocation17 + $0x50] sm:$0xff]  }
 0xbfa   :  { %v4999_v0 = vpop.f32.mrb[60].mxu1 }
 0xbfb   :  { %v3734_v35 = vpop.f32.mrb[61].mxu1 }
 0xbfc   :  { %v2379_v38 = vpop.f32.mrb[62].mxu1 }
 0xbfd   :  { %v3735_v39 = vpop.f32.mrb[63].mxu1 }
 0xc3f   :  { %v2419_v40 = vpop.f32.mrb[60].mxu0 }
 0xc40   :  { %v3740_v41 = vpop.f32.mrb[61].mxu0 }
 0xc41   :  { %v2422_v42 = vpop.f32.mrb[62].mxu0 }
 0xc42   :  { %v3741_v43 = vpop.f32.mrb[63].mxu0 }
 0xc4b   :  { %v2462_v44 = vpop.f32.mrb[64].mxu1 }
 0xc4c   :  { %v3746_v46 = vpop.f32.mrb[65].mxu1 }
 0xc4d   :  { %v2465_v47 = vpop.f32.mrb[66].mxu1  ;;  %v3934_v46 = vld [vmem:[#allocation16 + $0x4] ss:$8 sps:$4 sm:$0xff]  }
 0xc4e   :  { %v3747_v48 = vpop.f32.mrb[67].mxu1  ;;  %v3937_v47 = vld [vmem:[#allocation16 + $0x14] ss:$8 sps:$4 sm:$0xff]   ;;  %2977 = vmatprep.subr.bf16.mxu0 %v3934_v46 }
 0xc4f   :  { %v3935_v48 = vld [vmem:[#allocation16 + $0x10] ss:$8 sps:$4 sm:$0xff]  }
 0xc5f   :  { %v2505_v49 = vpop.f32.mrb[64].mxu0 }
 0xc60   :  { %v3752_v50 = vpop.f32.mrb[65].mxu0 }
 0xc61   :  { %v2508_v51 = vpop.f32.mrb[66].mxu0 }
 0xc62   :  { %v3753_v53 = vpop.f32.mrb[67].mxu0 }
 0xc67   :  { %v2591_v55 = vpop.f32.mrb[68].mxu0 }
 0xc68   :  { %v3837_v56 = vpack.i.bf16 %v2591_v55, %v2419_v40  ;;  %v3764_v57 = vpop.f32.mrb[69].mxu0  ;;  %v3938_v55 = vld [vmem:[#allocation16 + $0x20] ss:$8 sps:$4 sm:$0xff]  }
 0xc69   :  { %v2594_v58 = vpop.f32.mrb[70].mxu0  ;;  %v3941_v57 = vld [vmem:[#allocation16 + $0x30] ss:$8 sps:$4 sm:$0xff]  }
 0xc6a   :  { %3838 = vrot.lane.b32.xlu1 %v3837_v56, %s4328_s1  ;;  %v3765_v59 = vpop.f32.mrb[71].mxu0  ;;  %v3943_v56 = vld [vmem:[#allocation16 + $0x34] ss:$8 sps:$4 sm:$0xff]   ;;  %v3946_v58 = vld [vmem:[#allocation16 + $0x44] ss:$8 sps:$4 sm:$0xff]  }
 0xc6b   :  { %v3949_v59 = vld [vmem:[#allocation16 + $0x54] ss:$8 sps:$4 sm:$0xff]  }
 0xc7c   :  { %v2677_v1 = vpop.f32.mrb[72].mxu0 }
 0xc7d   :  { %v3847_v2 = vpack.i.bf16 %v2677_v1, %v2505_v49  ;;  %v3776_v3 = vpop.f32.mrb[73].mxu0  ;;  %v3955_v1 = vld [vmem:[#allocation16 + $0x74] ss:$8 sps:$4 sm:$0xff]  }
 0xc7e   :  { %v2680_v4 = vpop.f32.mrb[74].mxu0  ;;  %v3956_v3 = vld [vmem:[#allocation17 + $0x40] sm:$0xff]  }
 0xc7f   :  { %3848 = vrot.lane.b32.xlu1 %v3847_v2, %s4327_s5  ;;  %v3777_v5 = vpop.f32.mrb[75].mxu0  ;;  %v3953_v2 = vld [vmem:[#allocation16 + $0x70] ss:$8 sps:$4 sm:$0xff]   ;;  %v3957_v4 = vld [vmem:[#allocation17] sm:$0xff]   ;;  %3504 = vmatprep.subr.bf16.mxu1 %v3956_v3  ;;  %s3252_s5 = sshll.u32 %s4329_s0, 4  ;;  %s3253_s5 = int_to_ptr.vmem [resolvable:$true] %s3252_s5 }
 0xc80   :  { %v2548_v6 = vpop.f32.mrb[68].mxu1  ;;  %v3958_v5 = vld [vmem:[#allocation17 + $0x48] sm:$0xff]   ;;  %s4270_s1 = scalar_lea.vmem %s3253_s5, 256  ;;  %p4275_p11 = scmp.lt.s32.totalorder %s3253_s5, %s3253_s5 }
 0xc81   :  { %v3758_v8 = vpop.f32.mrb[69].mxu1  ;;  %p4271_p10 = scmp.ne.s32.totalorder %s3253_s5, %s4270_s1  ;;  %p4276_p12 = scmp.lt.s32.totalorder %s4270_s1, %s4270_s1 }
 0xc82   :  { %v2551_v10 = vpop.f32.mrb[70].mxu1  ;;  %v3961_v8 = vld [vmem:[#allocation17 + $0x10] sm:$0xff]  }
 0xc83   :  { %v3759_v11 = vpop.f32.mrb[71].mxu1  ;;  %v3962_v10 = vld [vmem:[#allocation17 + $0x58] sm:$0xff]   ;;  %p4277_p13 = por %p4276_p12, %p4275_p11 }
 0xc84   :  { %v3963_v11 = vld [vmem:[#allocation17 + $0x18] sm:$0xff]  }
 0xc85   :  { %p4278_p0 = pnand %p4277_p13, %p4271_p10 }
 0xc88   :  { %v2634_v12 = vpop.f32.mrb[72].mxu1 }
 0xc89   :  { %v3842_v14 = vpack.i.bf16 %v2634_v12, %v2462_v44  ;;  %v3770_v9 = vpop.f32.mrb[73].mxu1  ;;  %v3932_v44 = vld [vmem:[#allocation16] ss:$8 sps:$4 sm:$0xff]  }
 0xc8a   :  { %v2637_v15 = vpop.f32.mrb[74].mxu1  ;;  %2978 = vmatpush1.bf16.msra.mxu0 %v3932_v44  ;;  %v3964_v12 = vld [vmem:[#allocation17 + $0x60] sm:$0xff]   ;;  %v3966_v9 = vld [vmem:[#allocation17 + $0x68] sm:$0xff]  }
 0xc8b   :  { %3843 = vrot.lane.b32.xlu0 %v3842_v14, %s4314_s26  ;;  %v3771_v16 = vpop.f32.mrb[75].mxu1  ;;  %2979 = vmatprep.subr.bf16.mxu0 %v3937_v47  ;;  %v3965_v14 = vld [vmem:[#allocation17 + $0x20] sm:$0xff]  }
 0xc8e   :  { %2980 = vmatpush1.bf16.msra.mxu0 %v3935_v48 }
 0xc8f   :  { %2981 = vmatprep.subr.bf16.mxu0 %v3940_v54 }
 0xc92   :  { %2982 = vmatpush1.bf16.msra.mxu0 %v3938_v55 }
 0xc93   :  { %2983 = vmatprep.subr.bf16.mxu0 %v3943_v56 }
 0xc96   :  { %2984 = vmatpush1.bf16.msra.mxu0 %v3941_v57 }
 0xc97   :  { %2985 = vmatprep.subr.bf16.mxu0 %v3946_v58 }
 0xc9a   :  { %2986 = vmatpush1.bf16.msra.mxu0 %v3944_v45 }
 0xc9b   :  { %2987 = vmatprep.subr.bf16.mxu0 %v3949_v59 }
 0xc9e   :  { %2988 = vmatpush1.bf16.msra.mxu0 %v3947_v60 }
 0xc9f   :  { %2989 = vmatprep.subr.bf16.mxu0 %v3952_v62 }
 0xca2   :  { %2990 = vmatpush1.bf16.msra.mxu0 %v3950_v63 }
 0xca3   :  { %2991 = vmatprep.subr.bf16.mxu0 %v3955_v1 }
 0xca6   :  { %2992 = vmatpush1.bf16.msra.mxu0 %v3953_v2 }
 0xcdc   :  { %v3839_v17 = vpop.permute.xlu1 %3838 }
 0xcdd   :  { %v3841_v61 = vunpack.i.h.bf16 %v3839_v17  ;;  %v3840_v20 = vunpack.i.l.bf16 %v3839_v17 }
 0xcdf   :  { %v2695_v23 = vsel %vm522_vm1, %v4999_v0, %v3840_v20  ;;  %v2710_v25 = vsel %vm522_vm1, %v2548_v6, %v3841_v61  ;;  %v3959_v6 = vld [vmem:[#allocation17 + $0x8] sm:$0xff]  }
 0xcf1   :  { %v3849_v18 = vpop.permute.xlu1 %3848 }
 0xcf2   :  { %v3851_v26 = vunpack.i.h.bf16 %v3849_v18  ;;  %v3850_v27 = vunpack.i.l.bf16 %v3849_v18 }
 0xcfd   :  { %v3844_v19 = vpop.permute.xlu0 %3843 }
 0xcfe   :  { %v3846_v21 = vunpack.i.h.bf16 %v3844_v19  ;;  %v3845_v22 = vunpack.i.l.bf16 %v3844_v19 }
 0xd00   :  { %v2711_v24 = vsel %vm1370_vm4, %v2710_v25, %v3846_v21  ;;  %v2696_v28 = vsel %vm1370_vm4, %v2695_v23, %v3845_v22  ;;  %v3367_v22 = vld [vmem:[%s5075_s15] ss:$0 sm:$0xff] }
 0xd01   :  { %v2697_v29 = vsel %vm1372_vm5, %v2696_v28, %v3850_v27  ;;  %v2712_v30 = vsel %vm1372_vm5, %v2711_v24, %v3851_v26  ;;  %v3368_v27 = vld [vmem:[%s5076_s16] ss:$0 sm:$0xff] }
 0xd02   :  { %v2729_v32 = vpack.c.bf16 %v2712_v30, %v2697_v29 }
 0xd04   :  { %3795 = vmatmul.mubr.bf16.vlgmr.msra.gmra.mrb[76].mxu1 %v2729_v32  ;;  %v3967_v32 = vld [vmem:[#allocation17 + $0x28] sm:$0xff]  }
 0xd05   :  { %3505 = vmatpush3.bf16.msra.mxu1 %v3957_v4 }
 0xd06   :  { %3506 = vmatprep.subr.bf16.mxu1 %v3958_v5 }
 0xd09   :  { %3507 = vmatpush3.bf16.msra.mxu1 %v3959_v6 }
 0xd0a   :  { %3508 = vmatprep.subr.bf16.mxu1 %v3960_v7 }
 0xd0d   :  { %3509 = vmatpush3.bf16.msra.mxu1 %v3961_v8 }
 0xd0e   :  { %3510 = vmatprep.subr.bf16.mxu1 %v3962_v10 }
 0xd11   :  { %3511 = vmatpush3.bf16.msra.mxu1 %v3963_v11 }
 0xd12   :  { %3512 = vmatprep.subr.bf16.mxu1 %v3964_v12 }
 0xd15   :  { %3513 = vmatpush3.bf16.msra.mxu1 %v3965_v14 }
 0xd16   :  { %3514 = vmatprep.subr.bf16.mxu1 %v3966_v9 }
 0xd19   :  { %3515 = vmatpush3.bf16.msra.mxu1 %v3967_v32 }
 0xdd7   :  { %v2819_v35 = vpop.f32.mrb[76].mxu1 }
 0xdd8   :  { %v2820_v0 = vadd.f32 %v3358_v34, %v2819_v35  ;;  %v3796_v38 = vpop.f32.mrb[77].mxu1  ;;  %v3969_v35 = vld [vmem:[#allocation17 + $0x30] sm:$0xff]  }
 0xdd9   :  { %v2822_v39 = vpop.f32.mrb[78].mxu1  ;;  %v3971_v38 = vld [vmem:[#allocation17 + $0x38] sm:$0xff]  }
 0xdda   :  { %v2823_v40 = vadd.f32 %v3358_v34, %v2822_v39  ;;  %v3797_v41 = vpop.f32.mrb[79].mxu1  ;;  %v2826_v42 = vadd.f32 %v2820_v0, %v4843_v36  ;;  %v3968_v34 = vld [vmem:[#allocation17 + $0x70] sm:$0xff]   ;;  %v3970_v0 = vld [vmem:[#allocation17 + $0x78] sm:$0xff]   ;;  %v2885_v39 = vld [vmem:[%s5078_s18] sm:$0x3] }
 0xddb   :  { %3516 = vmatprep.subr.bf16.mxu1 %v3968_v34  ;;  %v2894_v41 = vrot.slane %v2885_v39, %v4631_v33 }
 0xddc   :  { %2828 = vadd.xlane.f32.xlu0 %v2826_v42  ;;  %v2827_v43 = vadd.f32 %v2823_v40, %v4845_v37  ;;  %3517 = vmatpush3.bf16.msra.mxu1 %v3969_v35  ;;  %v2890_v40 = vrot.slane %v2885_v39, %v4623_v31  ;;  %v3385_v31 = vld [vmem:[%s5080_s20] ss:$0 sm:$0xff] }
 0xddd   :  { %3518 = vmatprep.subr.bf16.mxu1 %v3970_v0 }
 0xdde   :  { %2830 = vadd.xlane.f32.xlu1 %v2827_v43 }
 0xde0   :  { %3519 = vmatpush3.bf16.msra.mxu1 %v3971_v38 }
 0xe69   :  { %v2829_v49 = vpop.xlane.xlu0 %2828 }
 0xe6a   :  { %v2832_v13 = vmul.f32 0.0078125, %v2829_v49 }
 0xe6b   :  { %v2831_v50 = vpop.xlane.xlu1 %2830 }
 0xe6c   :  { %v2834_v51 = vsub.f32 %v2826_v42, %v2832_v13  ;;  %v2833_v52 = vmul.f32 0.0078125, %v2831_v50 }
 0xe6e   :  { %v5023_v53 = vsub.f32 %v2827_v43, %v2833_v52  ;;  %v2836_v36 = vmul.f32 %v2834_v51, %v2834_v51 }
 0xe70   :  { %2838 = vadd.xlane.f32.xlu0 %v2836_v36  ;;  %v2837_v37 = vmul.f32 %v5023_v53, %v5023_v53 }
 0xe74   :  { %2840 = vadd.xlane.f32.xlu0 %v2837_v37 }
 0xefd   :  { %v2839_v15 = vpop.xlane.xlu0 %2838 }
 0xefe   :  { %v2842_v16 = vmul.f32 0.0078125, %v2839_v15 }
 0xf00   :  { %v2844_v17 = vadd.f32 1e-05, %v2842_v16  ;;  %v3402_v16 = vld [vmem:[%s5081_s21] ss:$0 sm:$0xff] }
 0xf01   :  { %v2841_v61 = vpop.xlane.xlu0 %2840 }
 0xf02   :  { %4040 = vrsqrt.f32 %v2844_v17  ;;  %v2843_v20 = vmul.f32 0.0078125, %v2841_v61 }
 0xf04   :  { %v2845_v18 = vadd.f32 1e-05, %v2843_v20  ;;  %v3403_v20 = vld [vmem:[%s5108_s30] ss:$0 sm:$0xff] }
 0xf06   :  { %4042 = vrsqrt.f32 %v2845_v18 }
 0xf0c   :  { %v4041_v19 = vpop.eup %4040 }
 0xf0d   :  { %v2848_v21 = vmul.f32 %v4041_v19, %v2834_v51 }
 0xf0f   :  { %v2857_v26 = vmul.f32 %v3367_v22, %v2848_v21 }
 0xf10   :  { %v4043_v23 = vpop.eup %4042 }
 0xf11   :  { %v2849_v25 = vmul.f32 %v4043_v23, %v5023_v53  ;;  %v2866_v28 = vadd.f32 %v3368_v27, %v2857_v26 }
 0xf13   :  { %v2858_v24 = vmul.f32 %v3367_v22, %v2849_v25 }
 0xf15   :  { %v2867_v29 = vadd.f32 %v3368_v27, %v2858_v24 }
 0xf17   :  { %v2884_v30 = vpack.c.bf16 %v2867_v29, %v2866_v28 }
 0xf19   :  { %3010 = vmatmul.mubr.bf16.vlgmr.msra.gmra.mrb[76].mxu0 %v2884_v30 }
 0xfec   :  { %v3011_v42 = vpop.f32.mrb[76].mxu0 }
 0xfed   :  { %v3012_v43 = vadd.f32 %v3011_v42, %v2890_v40  ;;  %v3013_v44 = vpop.f32.mrb[77].mxu0 }
 0xfee   :  { %v3014_v46 = vadd.f32 %v3013_v44, %v2894_v41  ;;  %v3015_v47 = vpop.f32.mrb[78].mxu0 }
 0xfef   :  { %v3016_v48 = vadd.f32 %v3015_v47, %v2890_v40  ;;  %v3017_v49 = vpop.f32.mrb[79].mxu0  ;;  %v3020_v50 = vmax.f32 %v3012_v43, 0.0 }
 0xff0   :  { %v3018_v13 = vadd.f32 %v3017_v49, %v2894_v41  ;;  %v3021_v52 = vmax.f32 %v3014_v46, 0.0 }
 0xff1   :  { %v3022_v51 = vmax.f32 %v3016_v48, 0.0 }
 0xff2   :  { %v3023_v53 = vmax.f32 %v3018_v13, 0.0 }
 0xff3   :  { %v3056_v36 = vpack.c.bf16 %v3022_v51, %v3020_v50 }
 0xff4   :  { %v3057_v37 = vpack.c.bf16 %v3023_v53, %v3021_v52 }
 0xff6   :  { %3193 = vmatprep.mubr.bf16.mxu1 %v3057_v37 }
 0xff7   :  { %3194 = vmatmul.mubr.bf16.vlgmr.msra.gmra.mrb[80].mxu1 %v3056_v36 }
0x10ca   :  { %v3520_v54 = vpop.f32.mrb[80].mxu1 }
0x10cb   :  { %v3521_v33 = vpop.f32.mrb[81].mxu1 }
0x10cc   :  { %v3522_v55 = vadd.f32 %v3521_v33, %v3520_v54  ;;  %v3523_v56 = vpop.f32.mrb[82].mxu1 }
0x10cd   :  { %v3524_v57 = vpop.f32.mrb[83].mxu1 }
0x10ce   :  { %v3196_v58 = vadd.f32 %v3522_v55, %v3385_v31  ;;  %v3525_v45 = vadd.f32 %v3524_v57, %v3523_v56 }
0x10d0   :  { %v3199_v59 = vadd.f32 %v3525_v45, %v3385_v31  ;;  %v3202_v60 = vadd.f32 %v3196_v58, %v2866_v28 }
0x10d2   :  { %3204 = vadd.xlane.f32.xlu1 %v3202_v60  ;;  %v3203_v62 = vadd.f32 %v3199_v59, %v2867_v29 }
0x10d4   :  { %3206 = vadd.xlane.f32.xlu0 %v3203_v62 }
0x115f   :  { %v3205_v63 = vpop.xlane.xlu1 %3204 }
0x1160   :  { %v3208_v1 = vmul.f32 0.0078125, %v3205_v63 }
0x1161   :  { %v3207_v2 = vpop.xlane.xlu0 %3206 }
0x1162   :  { %v3210_v3 = vsub.f32 %v3202_v60, %v3208_v1  ;;  %v3209_v4 = vmul.f32 0.0078125, %v3207_v2 }
0x1164   :  { %v3211_v5 = vsub.f32 %v3203_v62, %v3209_v4  ;;  %v3212_v6 = vmul.f32 %v3210_v3, %v3210_v3 }
0x1166   :  { %3214 = vadd.xlane.f32.xlu1 %v3212_v6  ;;  %v3213_v7 = vmul.f32 %v3211_v5, %v3211_v5 }
0x1168   :  { %3216 = vadd.xlane.f32.xlu0 %v3213_v7 }
0x11f3   :  { %v3215_v8 = vpop.xlane.xlu1 %3214 }
0x11f4   :  { %v3218_v10 = vmul.f32 0.0078125, %v3215_v8 }
0x11f5   :  { %v3217_v11 = vpop.xlane.xlu0 %3216 }
0x11f6   :  { %v3220_v12 = vadd.f32 1e-05, %v3218_v10  ;;  %v3219_v14 = vmul.f32 0.0078125, %v3217_v11 }
0x11f8   :  { %4044 = vrsqrt.f32 %v3220_v12  ;;  %v3221_v9 = vadd.f32 1e-05, %v3219_v14 }
0x11fa   :  { %4046 = vrsqrt.f32 %v3221_v9 }
0x1202   :  { %v4045_v15 = vpop.eup %4044 }
0x1203   :  { %v3224_v17 = vmul.f32 %v4045_v15, %v3210_v3 }
0x1204   :  { %v4047_v61 = vpop.eup %4046 }
0x1205   :  { %v3225_v18 = vmul.f32 %v4047_v61, %v3211_v5  ;;  %v3233_v19 = vmul.f32 %v3402_v16, %v3224_v17 }
0x1207   :  { %v3234_v21 = vmul.f32 %v3402_v16, %v3225_v18  ;;  %v3242_v22 = vadd.f32 %v3403_v20, %v3233_v19 }
0x1209   :  { %v3243_v23 = vadd.f32 %v3403_v20, %v3234_v21  ;;  %3244 = vst [vmem:[#allocation19] sm:$0xff] %v3242_v22 }
0x120b   :  { %3245 = vst [vmem:[#allocation19 + $0x8] sm:$0xff] %v3243_v23 }
0x120c   :  { %4281 = shalt.err (!%p4278_p0)
}
0x120d   :  { %s5109_s9 = sld [smem:[#allocation36_spill]] }
0x1213   :  { %s4282_s24 = scalar_lea.hbm %s5109_s9, 256 }
0x1214   :  { %p4283_p1 = scmp.ne.s32.totalorder %s5109_s9, %s4282_s24  ;;  %p4286_p2 = scmp.lt.u32.totalorder %s4282_s24, %s5109_s9 }
0x1216   :  { %p4288_p3 = pnand %p4286_p2, %p4283_p1 }
0x1218   :  { %4291 = shalt.err (!%p4288_p3)
}
0x1219   :  { %3255 = dma.vmem_to_hbm [thread:$0]  %s3253_s5, 256, %s5109_s9, [#allocation4]  }
0x121a   :  { %4304 = dma.done.wait [#allocation4], 256  }
0x121b   :  { %4305 = vsyncadd [#allocation4], 4294967040 }
0x121c   :  { %3259 = vsyncpa [#allocation3], 1 }
0x121d   :  { %3260 = vsyncpa [#allocation6], 1 }
0x121e   :  { %3261 = vsyncpa [#allocation9], 1 }
0x121f   :  { %3262 = vsyncpa [#allocation12], 1 }
0x1220   :  { %3263 = vsyncpa [#allocation15], 1 }
0x1221   :  { %3264 = vsyncpa [#allocation18], 1 }
0x1222   :  { %3265 = vsyncpa [#allocation4], 1 }

</bundles_post_ra>
